<compile_context>
chip_gen: v5e
topology: v5e:2x2
jax: 0.10.0
libtpu: 0.0.40
codegen_flags: <defaults>
</compile_context>

<pallas_src>
import functools

import numpy as np
import jax
import jax.numpy as jnp
from jax.experimental import pallas as pl
from jax.experimental.pallas import tpu as pltpu


def _mwdin_kernel(q_ref, s_ref, len_ref,
                  w1s_ref, w1qs_ref, w1q_ref, b1_ref,
                  w2_ref, b2_ref, w3r_ref, b3_ref, alpha_ref,
                  out_ref, *, windows_len, starts):
    BB, T, D = s_ref.shape
    H1 = w1s_ref.shape[1]

    q = q_ref[...]                                 # (BB, D)  query (already padded to D)
    s = s_ref[...]                                 # (BB, T, D)
    lens = len_ref[...]                            # (BB, 1) int32

    # ---- first MLP layer, concat folded into W1 slices -------------------------------
    qs = q[:, None, :] * s                         # (BB, T, D)
    s2 = s.reshape(BB * T, D)
    qs2 = qs.reshape(BB * T, D)

    h = (jnp.dot(s2, w1s_ref[...], preferred_element_type=jnp.float32)
         + jnp.dot(qs2, w1qs_ref[...], preferred_element_type=jnp.float32))
    qw = jnp.dot(q, w1q_ref[...], preferred_element_type=jnp.float32)     # (BB, H1)
    h = h.reshape(BB, T, H1) + qw[:, None, :] + b1_ref[...]
    h = jnp.maximum(h, 0.0).reshape(BB * T, H1)

    # ---- second MLP layer -------------------------------------------------------------
    h = jnp.dot(h, w2_ref[...], preferred_element_type=jnp.float32) + b2_ref[...]
    h = jnp.maximum(h, 0.0)                        # (BB*T, H2)

    # ---- final scorer as VPU multiply + lane reduce (avoid 1-column MXU matmul) -------
    logits = jnp.sum(h * w3r_ref[...], axis=-1, keepdims=True) + b3_ref[...]   # (BB*T, 1)
    # PReLU
    logits = jnp.where(logits > 0, logits, alpha_ref[...] * logits)
    logits = logits.reshape(BB, T, 1)

    # ---- sequence mask and weighted sequence ------------------------------------------
    pos = jax.lax.broadcasted_iota(jnp.int32, (BB, T, 1), 1)
    mask = pos < lens[:, :, None]                                               # (BB, T, 1)
    att = jnp.where(mask, logits, 0.0) * s                                      # (BB, T, D)

    # ---- static per-window segment mean (sum / clamped length) ------------------------
    parts = []
    for start, wl in zip(starts, windows_len):
        seg = jnp.sum(att[:, start:start + wl, :], axis=1)                      # (BB, D)
        seg_len = jnp.minimum(lens - start, wl)
        seg_len = jnp.maximum(seg_len, 1).astype(jnp.float32)                   # (BB, 1)
        parts.append(seg / seg_len)
    parts.append(q)                                                             # final query concat

    # lane-dense output block: (BB, (W+1)*D)
    out_ref[...] = jnp.concatenate(parts, axis=-1)


def multi_window_din_encoder(query, sequence, sequence_length, windows_len, params,
                             block_b=16):
    """Pure-JAX glue around the Pallas kernel (padding / weight folding / specs)."""
    w1, b1, w2, b2, w3, b3, alpha = params
    B, T, D = sequence.shape
    qd = query.shape[-1]
    sum_w = int(sum(windows_len))
    n_win = len(windows_len)
    starts = [int(x) for x in np.cumsum([0] + list(windows_len)[:-1])]
    H1 = w1.shape[1]
    H2 = w2.shape[1]
    out_dim = (n_win + 1) * D

    if T > sum_w:
        raise ValueError("max_seq_length > sum(windows_len) not supported (as in torch).")
    if qd > D:
        raise ValueError("query_dim > sequence_dim not supported yet.")

    # pad query to sequence_dim, pad sequence time axis to sum(windows_len)
    if qd < D:
        query = jnp.pad(query, ((0, 0), (0, D - qd)))
    if T < sum_w:
        sequence = jnp.pad(sequence, ((0, 0), (0, sum_w - T), (0, 0)))
    T = sum_w

    # batch-block the grid; pad batch to a multiple of the block
    BB = block_b
    Bp = ((B + BB - 1) // BB) * BB
    if Bp != B:
        pad = Bp - B
        query = jnp.pad(query, ((0, pad), (0, 0)))
        sequence = jnp.pad(sequence, ((0, pad), (0, 0), (0, 0)))
        sequence_length = jnp.pad(sequence_length, ((0, pad),))
    lens2d = sequence_length.astype(jnp.int32).reshape(Bp, 1)

    # fold the 3-way concat into W1 slices (attn_input = [sequence, q*sequence, query])
    w1_s = w1[:D]
    w1_qs = w1[D:2 * D]
    w1_q = w1[2 * D:]
    w3_row = w3.reshape(1, H2)
    b3_arr = jnp.asarray(b3, jnp.float32).reshape(1, 1)
    alpha_arr = jnp.asarray(alpha, jnp.float32).reshape(1, 1)

    kernel = functools.partial(
        _mwdin_kernel,
        windows_len=tuple(int(w) for w in windows_len),
        starts=tuple(starts))

    # NOTE: weight/bias blocks have constant index maps so they are not re-DMA'd across
    # grid steps; at these sizes their double-buffered VMEM footprint is negligible.
    out = pl.pallas_call(
        kernel,
        out_shape=jax.ShapeDtypeStruct((Bp, out_dim), jnp.float32),
        grid=(Bp // BB,),
        in_specs=[
            pl.BlockSpec((BB, D), lambda i: (i, 0)),        # query (padded)
            pl.BlockSpec((BB, T, D), lambda i: (i, 0, 0)),  # sequence
            pl.BlockSpec((BB, 1), lambda i: (i, 0)),        # sequence_length
            pl.BlockSpec((D, H1), lambda i: (0, 0)),        # W1 slice: sequence
            pl.BlockSpec((D, H1), lambda i: (0, 0)),        # W1 slice: q*sequence
            pl.BlockSpec((D, H1), lambda i: (0, 0)),        # W1 slice: query
            pl.BlockSpec((1, H1), lambda i: (0, 0)),        # b1
            pl.BlockSpec((H1, H2), lambda i: (0, 0)),       # W2
            pl.BlockSpec((1, H2), lambda i: (0, 0)),        # b2
            pl.BlockSpec((1, H2), lambda i: (0, 0)),        # W_linear (as row)
            pl.BlockSpec((1, 1), lambda i: (0, 0)),         # b_linear
            pl.BlockSpec((1, 1), lambda i: (0, 0)),         # PReLU alpha
        ],
        out_specs=pl.BlockSpec((BB, out_dim), lambda i: (i, 0)),
        compiler_params=pltpu.CompilerParams(
            dimension_semantics=("parallel",)),             # megacore-friendly batch axis
    )(query, sequence, lens2d, w1_s, w1_qs, w1_q, b1, w2, b2, w3_row, b3_arr, alpha_arr)
    return out[:B]


def multi_window_din_reference(query, sequence, sequence_length, windows_len, params):
    """Plain-JAX reference mirroring the PyTorch MultiWindowDINEncoder forward."""
    w1, b1, w2, b2, w3, b3, alpha = params
    B, T, D = sequence.shape
    qd = query.shape[-1]
    mask = (jnp.arange(T)[None, :] < sequence_length[:, None]).astype(jnp.float32)
    if qd < D:
        query = jnp.pad(query, ((0, 0), (0, D - qd)))
    queries = jnp.broadcast_to(query[:, None, :], (B, T, D))
    attn_in = jnp.concatenate([sequence, queries * sequence, queries], axis=-1)
    h = jnp.maximum(attn_in @ w1 + b1, 0.0)
    h = jnp.maximum(h @ w2 + b2, 0.0)
    logits = h @ w3 + b3                                      # (B, T, 1)
    logits = jnp.where(logits > 0, logits, alpha * logits)    # PReLU
    att = logits * mask[:, :, None] * sequence                # (B, T, D)
    sum_w = int(sum(windows_len))
    att = jnp.pad(att, ((0, 0), (0, sum_w - T), (0, 0)))
    starts = np.cumsum([0] + list(windows_len)[:-1])
    segs = []
    for start, wl in zip(starts, windows_len):
        start, wl = int(start), int(wl)
        seg = att[:, start:start + wl, :].sum(axis=1)         # (B, D)
        seg_len = jnp.minimum(sequence_length - start, wl)
        seg_len = jnp.maximum(seg_len, 1).astype(jnp.float32)
        segs.append(seg / seg_len[:, None])
    result = jnp.stack(segs, axis=1)                          # (B, W, D)
    out = jnp.concatenate([result, query[:, None, :]], axis=1)
    return out.reshape(B, -1)


if __name__ == "__main__":
    # Module config: sequence_dim=32, query_dim=16, windows_len=[2,3,3] (sum=8),
    # attn_mlp hidden_units=[64, 32].  Batch=32 so each grid step processes a
    # 16x8=128-row MLP slab and the grid has 2 parallel steps.
    B, T, D, QD = 32, 8, 32, 16
    H1, H2 = 64, 32
    WINDOWS = [2, 3, 3]

    key = jax.random.PRNGKey(0)
    ks = jax.random.split(key, 10)
    query = jax.random.normal(ks[0], (B, QD), dtype=jnp.float32)
    sequence = jax.random.normal(ks[1], (B, T, D), dtype=jnp.float32)
    sequence_length = jax.random.randint(ks[2], (B,), 0, T + 1).astype(jnp.int32)

    # Deterministic synthetic parameters ([in, out] layout; PReLU alpha init 0.25).
    w1 = jax.random.normal(ks[3], (3 * D, H1), dtype=jnp.float32) * 0.05
    b1 = jax.random.normal(ks[4], (1, H1), dtype=jnp.float32) * 0.01
    w2 = jax.random.normal(ks[5], (H1, H2), dtype=jnp.float32) * 0.05
    b2 = jax.random.normal(ks[6], (1, H2), dtype=jnp.float32) * 0.01
    w3 = jax.random.normal(ks[7], (H2, 1), dtype=jnp.float32) * 0.05
    b3 = jax.random.normal(ks[8], (1, 1), dtype=jnp.float32) * 0.01
    alpha = jnp.float32(0.25)
    params = (w1, b1, w2, b2, w3, b3, alpha)

    out = multi_window_din_encoder(query, sequence, sequence_length, WINDOWS, params,
                                   block_b=16)
    out = jax.block_until_ready(out)

    ref = multi_window_din_reference(query, sequence, sequence_length, WINDOWS, params)
    assert out.shape == (B, (len(WINDOWS) + 1) * D)
    assert jnp.allclose(out, ref, atol=1e-4, rtol=1e-4), "mismatch vs reference"

    print("KERNEL_OK")
</pallas_src>

<mosaic_0001>
module attributes {stable_mosaic.version = 11 : i64} {
  func.func @_mwdin_kernel(%arg0: i32, %arg1: memref<16x32xf32, #tpu.memory_space<vmem>>, %arg2: memref<16x8x32xf32, #tpu.memory_space<vmem>>, %arg3: memref<16x1xi32, #tpu.memory_space<vmem>>, %arg4: memref<32x64xf32, #tpu.memory_space<vmem>>, %arg5: memref<32x64xf32, #tpu.memory_space<vmem>>, %arg6: memref<32x64xf32, #tpu.memory_space<vmem>>, %arg7: memref<1x64xf32, #tpu.memory_space<vmem>>, %arg8: memref<64x32xf32, #tpu.memory_space<vmem>>, %arg9: memref<1x32xf32, #tpu.memory_space<vmem>>, %arg10: memref<1x32xf32, #tpu.memory_space<vmem>>, %arg11: memref<1x1xf32, #tpu.memory_space<vmem>>, %arg12: memref<1x1xf32, #tpu.memory_space<vmem>>, %arg13: memref<16x128xf32, #tpu.memory_space<vmem>>) attributes {dimension_semantics = [#tpu.dimension_semantics<parallel>], iteration_bounds = array<i64: 2>, scalar_prefetch = 0 : i64, scratch_operands = 0 : i64, tpu.core_type = #tpu.core_type<tc>, window_params = [{transform_indices = @transform_0, window_bounds = array<i64: 16, 32>}, {transform_indices = @transform_1, window_bounds = array<i64: 16, 8, 32>}, {transform_indices = @transform_2, window_bounds = array<i64: 16, 1>}, {pipeline_mode = #tpu.pipeline_mode<synchronous>, transform_indices = @transform_3, window_bounds = array<i64: 32, 64>}, {pipeline_mode = #tpu.pipeline_mode<synchronous>, transform_indices = @transform_4, window_bounds = array<i64: 32, 64>}, {pipeline_mode = #tpu.pipeline_mode<synchronous>, transform_indices = @transform_5, window_bounds = array<i64: 32, 64>}, {pipeline_mode = #tpu.pipeline_mode<synchronous>, transform_indices = @transform_6, window_bounds = array<i64: 1, 64>}, {pipeline_mode = #tpu.pipeline_mode<synchronous>, transform_indices = @transform_7, window_bounds = array<i64: 64, 32>}, {pipeline_mode = #tpu.pipeline_mode<synchronous>, transform_indices = @transform_8, window_bounds = array<i64: 1, 32>}, {pipeline_mode = #tpu.pipeline_mode<synchronous>, transform_indices = @transform_9, window_bounds = array<i64: 1, 32>}, {pipeline_mode = #tpu.pipeline_mode<synchronous>, transform_indices = @transform_10, window_bounds = array<i64: 1, 1>}, {pipeline_mode = #tpu.pipeline_mode<synchronous>, transform_indices = @transform_11, window_bounds = array<i64: 1, 1>}, {transform_indices = @transform_12, window_bounds = array<i64: 16, 128>}]} {
    %c0 = arith.constant 0 : index
    %c0_0 = arith.constant 0 : index
    %0 = vector.load %arg1[%c0, %c0_0] : memref<16x32xf32, #tpu.memory_space<vmem>>, vector<16x32xf32>
    %c0_1 = arith.constant 0 : index
    %c0_2 = arith.constant 0 : index
    %c0_3 = arith.constant 0 : index
    %1 = vector.load %arg2[%c0_1, %c0_2, %c0_3] : memref<16x8x32xf32, #tpu.memory_space<vmem>>, vector<16x8x32xf32>
    %c0_4 = arith.constant 0 : index
    %c0_5 = arith.constant 0 : index
    %2 = vector.load %arg3[%c0_4, %c0_5] : memref<16x1xi32, #tpu.memory_space<vmem>>, vector<16x1xi32>
    %3 = vector.shape_cast %0 : vector<16x32xf32> to vector<16x1x32xf32>
    %4 = vector.broadcast %3 : vector<16x1x32xf32> to vector<16x8x32xf32>
    %5 = arith.mulf %4, %1 : vector<16x8x32xf32>
    %6 = vector.shape_cast %1 : vector<16x8x32xf32> to vector<128x32xf32>
    %7 = vector.shape_cast %5 : vector<16x8x32xf32> to vector<128x32xf32>
    %c0_6 = arith.constant 0 : index
    %c0_7 = arith.constant 0 : index
    %8 = vector.load %arg4[%c0_6, %c0_7] : memref<32x64xf32, #tpu.memory_space<vmem>>, vector<32x64xf32>
    %cst = arith.constant dense<0.000000e+00> : vector<128x64xf32>
    %9 = tpu.matmul %6, %8, %cst {dimension_numbers = #tpu.dot_dimension_numbers<[1], [0], [0], [1], [0, 0, 1, 1], [], []>} : vector<128x32xf32>, vector<32x64xf32>, vector<128x64xf32> -> vector<128x64xf32>
    %c0_8 = arith.constant 0 : index
    %c0_9 = arith.constant 0 : index
    %10 = vector.load %arg5[%c0_8, %c0_9] : memref<32x64xf32, #tpu.memory_space<vmem>>, vector<32x64xf32>
    %cst_10 = arith.constant dense<0.000000e+00> : vector<128x64xf32>
    %11 = tpu.matmul %7, %10, %cst_10 {dimension_numbers = #tpu.dot_dimension_numbers<[1], [0], [0], [1], [0, 0, 1, 1], [], []>} : vector<128x32xf32>, vector<32x64xf32>, vector<128x64xf32> -> vector<128x64xf32>
    %12 = arith.addf %9, %11 : vector<128x64xf32>
    %c0_11 = arith.constant 0 : index
    %c0_12 = arith.constant 0 : index
    %13 = vector.load %arg6[%c0_11, %c0_12] : memref<32x64xf32, #tpu.memory_space<vmem>>, vector<32x64xf32>
    %cst_13 = arith.constant dense<0.000000e+00> : vector<16x64xf32>
    %14 = tpu.matmul %0, %13, %cst_13 {dimension_numbers = #tpu.dot_dimension_numbers<[1], [0], [0], [1], [0, 0, 1, 1], [], []>} : vector<16x32xf32>, vector<32x64xf32>, vector<16x64xf32> -> vector<16x64xf32>
    %15 = vector.shape_cast %12 : vector<128x64xf32> to vector<16x8x64xf32>
    %16 = vector.shape_cast %14 : vector<16x64xf32> to vector<16x1x64xf32>
    %17 = vector.broadcast %16 : vector<16x1x64xf32> to vector<16x8x64xf32>
    %18 = arith.addf %15, %17 : vector<16x8x64xf32>
    %c0_14 = arith.constant 0 : index
    %c0_15 = arith.constant 0 : index
    %19 = vector.load %arg7[%c0_14, %c0_15] : memref<1x64xf32, #tpu.memory_space<vmem>>, vector<1x64xf32>
    %20 = vector.shape_cast %19 : vector<1x64xf32> to vector<1x1x64xf32>
    %21 = vector.broadcast %20 : vector<1x1x64xf32> to vector<16x8x64xf32>
    %22 = arith.addf %18, %21 : vector<16x8x64xf32>
    %cst_16 = arith.constant 0.000000e+00 : f32
    %23 = vector.broadcast %cst_16 : f32 to vector<16x8x64xf32>
    %24 = arith.maximumf %22, %23 : vector<16x8x64xf32>
    %25 = vector.shape_cast %24 : vector<16x8x64xf32> to vector<128x64xf32>
    %c0_17 = arith.constant 0 : index
    %c0_18 = arith.constant 0 : index
    %26 = vector.load %arg8[%c0_17, %c0_18] : memref<64x32xf32, #tpu.memory_space<vmem>>, vector<64x32xf32>
    %cst_19 = arith.constant dense<0.000000e+00> : vector<128x32xf32>
    %27 = tpu.matmul %25, %26, %cst_19 {dimension_numbers = #tpu.dot_dimension_numbers<[1], [0], [0], [1], [0, 0, 1, 1], [], []>} : vector<128x64xf32>, vector<64x32xf32>, vector<128x32xf32> -> vector<128x32xf32>
    %c0_20 = arith.constant 0 : index
    %c0_21 = arith.constant 0 : index
    %28 = vector.load %arg9[%c0_20, %c0_21] : memref<1x32xf32, #tpu.memory_space<vmem>>, vector<1x32xf32>
    %29 = vector.broadcast %28 : vector<1x32xf32> to vector<128x32xf32>
    %30 = arith.addf %27, %29 : vector<128x32xf32>
    %cst_22 = arith.constant 0.000000e+00 : f32
    %31 = vector.broadcast %cst_22 : f32 to vector<128x32xf32>
    %32 = arith.maximumf %30, %31 : vector<128x32xf32>
    %c0_23 = arith.constant 0 : index
    %c0_24 = arith.constant 0 : index
    %33 = vector.load %arg10[%c0_23, %c0_24] : memref<1x32xf32, #tpu.memory_space<vmem>>, vector<1x32xf32>
    %34 = vector.broadcast %33 : vector<1x32xf32> to vector<128x32xf32>
    %35 = arith.mulf %32, %34 : vector<128x32xf32>
    %cst_25 = arith.constant dense<0.000000e+00> : vector<128xf32>
    %36 = vector.multi_reduction <add>, %35, %cst_25 [1] : vector<128x32xf32> to vector<128xf32>
    %37 = vector.shape_cast %36 : vector<128xf32> to vector<128x1xf32>
    %c0_26 = arith.constant 0 : index
    %c0_27 = arith.constant 0 : index
    %38 = vector.load %arg11[%c0_26, %c0_27] : memref<1x1xf32, #tpu.memory_space<vmem>>, vector<1x1xf32>
    %39 = vector.broadcast %38 : vector<1x1xf32> to vector<128x1xf32>
    %40 = arith.addf %37, %39 : vector<128x1xf32>
    %cst_28 = arith.constant 0.000000e+00 : f32
    %41 = vector.broadcast %cst_28 : f32 to vector<128x1xf32>
    %42 = arith.cmpf ogt, %40, %41 : vector<128x1xf32>
    %c0_29 = arith.constant 0 : index
    %c0_30 = arith.constant 0 : index
    %43 = vector.load %arg12[%c0_29, %c0_30] : memref<1x1xf32, #tpu.memory_space<vmem>>, vector<1x1xf32>
    %44 = vector.broadcast %43 : vector<1x1xf32> to vector<128x1xf32>
    %45 = arith.mulf %44, %40 : vector<128x1xf32>
    %46 = arith.select %42, %40, %45 : vector<128x1xi1>, vector<128x1xf32>
    %47 = vector.shape_cast %46 : vector<128x1xf32> to vector<16x8x1xf32>
    %48 = tpu.iota {dimensions = array<i32: 1>} : vector<16x8x1xi32>
    %49 = vector.shape_cast %2 : vector<16x1xi32> to vector<16x1x1xi32>
    %50 = vector.broadcast %49 : vector<16x1x1xi32> to vector<16x8x1xi32>
    %51 = arith.cmpi slt, %48, %50 : vector<16x8x1xi32>
    %cst_31 = arith.constant 0.000000e+00 : f32
    %52 = vector.broadcast %cst_31 : f32 to vector<16x8x1xf32>
    %53 = arith.select %51, %47, %52 : vector<16x8x1xi1>, vector<16x8x1xf32>
    %54 = vector.broadcast %53 : vector<16x8x1xf32> to vector<16x8x32xf32>
    %55 = arith.mulf %54, %1 : vector<16x8x32xf32>
    %56 = vector.extract_strided_slice %55 {offsets = [0, 0, 0], sizes = [16, 2, 32], strides = [1, 1, 1]} : vector<16x8x32xf32> to vector<16x2x32xf32>
    %cst_32 = arith.constant dense<0.000000e+00> : vector<16x32xf32>
    %57 = vector.multi_reduction <add>, %56, %cst_32 [1] : vector<16x2x32xf32> to vector<16x32xf32>
    %c0_i32 = arith.constant 0 : i32
    %58 = vector.broadcast %c0_i32 : i32 to vector<16x1xi32>
    %59 = arith.subi %2, %58 : vector<16x1xi32>
    %c2_i32 = arith.constant 2 : i32
    %60 = vector.broadcast %c2_i32 : i32 to vector<16x1xi32>
    %61 = arith.minsi %59, %60 : vector<16x1xi32>
    %c1_i32 = arith.constant 1 : i32
    %62 = vector.broadcast %c1_i32 : i32 to vector<16x1xi32>
    %63 = arith.maxsi %61, %62 : vector<16x1xi32>
    %64 = arith.sitofp %63 : vector<16x1xi32> to vector<16x1xf32>
    %65 = vector.broadcast %64 : vector<16x1xf32> to vector<16x32xf32>
    %66 = arith.divf %57, %65 : vector<16x32xf32>
    %67 = vector.extract_strided_slice %55 {offsets = [0, 2, 0], sizes = [16, 3, 32], strides = [1, 1, 1]} : vector<16x8x32xf32> to vector<16x3x32xf32>
    %cst_33 = arith.constant dense<0.000000e+00> : vector<16x32xf32>
    %68 = vector.multi_reduction <add>, %67, %cst_33 [1] : vector<16x3x32xf32> to vector<16x32xf32>
    %c2_i32_34 = arith.constant 2 : i32
    %69 = vector.broadcast %c2_i32_34 : i32 to vector<16x1xi32>
    %70 = arith.subi %2, %69 : vector<16x1xi32>
    %c3_i32 = arith.constant 3 : i32
    %71 = vector.broadcast %c3_i32 : i32 to vector<16x1xi32>
    %72 = arith.minsi %70, %71 : vector<16x1xi32>
    %c1_i32_35 = arith.constant 1 : i32
    %73 = vector.broadcast %c1_i32_35 : i32 to vector<16x1xi32>
    %74 = arith.maxsi %72, %73 : vector<16x1xi32>
    %75 = arith.sitofp %74 : vector<16x1xi32> to vector<16x1xf32>
    %76 = vector.broadcast %75 : vector<16x1xf32> to vector<16x32xf32>
    %77 = arith.divf %68, %76 : vector<16x32xf32>
    %78 = vector.extract_strided_slice %55 {offsets = [0, 5, 0], sizes = [16, 3, 32], strides = [1, 1, 1]} : vector<16x8x32xf32> to vector<16x3x32xf32>
    %cst_36 = arith.constant dense<0.000000e+00> : vector<16x32xf32>
    %79 = vector.multi_reduction <add>, %78, %cst_36 [1] : vector<16x3x32xf32> to vector<16x32xf32>
    %c5_i32 = arith.constant 5 : i32
    %80 = vector.broadcast %c5_i32 : i32 to vector<16x1xi32>
    %81 = arith.subi %2, %80 : vector<16x1xi32>
    %c3_i32_37 = arith.constant 3 : i32
    %82 = vector.broadcast %c3_i32_37 : i32 to vector<16x1xi32>
    %83 = arith.minsi %81, %82 : vector<16x1xi32>
    %c1_i32_38 = arith.constant 1 : i32
    %84 = vector.broadcast %c1_i32_38 : i32 to vector<16x1xi32>
    %85 = arith.maxsi %83, %84 : vector<16x1xi32>
    %86 = arith.sitofp %85 : vector<16x1xi32> to vector<16x1xf32>
    %87 = vector.broadcast %86 : vector<16x1xf32> to vector<16x32xf32>
    %88 = arith.divf %79, %87 : vector<16x32xf32>
    %89 = tpu.concatenate %66, %77, %88, %0 in 1 : vector<16x32xf32>, vector<16x32xf32>, vector<16x32xf32>, vector<16x32xf32> -> vector<16x128xf32>
    %c0_39 = arith.constant 0 : index
    %c0_40 = arith.constant 0 : index
    %90 = vector.load %arg13[%c0_39, %c0_40] : memref<16x128xf32, #tpu.memory_space<vmem>>, vector<16x128xf32>
    tpu.vector_store %arg13[%c0_39, %c0_40], %89 {strides = array<i32>} : memref<16x128xf32, #tpu.memory_space<vmem>>, vector<16x128xf32>,
    return
  }
  func.func @transform_0(%arg0: i32) -> (i32, i32) {
    %c0_i32 = arith.constant 0 : i32
    %c0_i32_0 = arith.constant 0 : i32
    return %arg0, %c0_i32 : i32, i32
  }
  func.func @transform_1(%arg0: i32) -> (i32, i32, i32) {
    %c0_i32 = arith.constant 0 : i32
    %c0_i32_0 = arith.constant 0 : i32
    %c0_i32_1 = arith.constant 0 : i32
    return %arg0, %c0_i32, %c0_i32_0 : i32, i32, i32
  }
  func.func @transform_2(%arg0: i32) -> (i32, i32) {
    %c0_i32 = arith.constant 0 : i32
    %c0_i32_0 = arith.constant 0 : i32
    return %arg0, %c0_i32 : i32, i32
  }
  func.func @transform_3(%arg0: i32) -> (i32, i32) {
    %c0_i32 = arith.constant 0 : i32
    %c0_i32_0 = arith.constant 0 : i32
    %c0_i32_1 = arith.constant 0 : i32
    return %c0_i32, %c0_i32_0 : i32, i32
  }
  func.func @transform_4(%arg0: i32) -> (i32, i32) {
    %c0_i32 = arith.constant 0 : i32
    %c0_i32_0 = arith.constant 0 : i32
    %c0_i32_1 = arith.constant 0 : i32
    return %c0_i32, %c0_i32_0 : i32, i32
  }
  func.func @transform_5(%arg0: i32) -> (i32, i32) {
    %c0_i32 = arith.constant 0 : i32
    %c0_i32_0 = arith.constant 0 : i32
    %c0_i32_1 = arith.constant 0 : i32
    return %c0_i32, %c0_i32_0 : i32, i32
  }
  func.func @transform_6(%arg0: i32) -> (i32, i32) {
    %c0_i32 = arith.constant 0 : i32
    %c0_i32_0 = arith.constant 0 : i32
    %c0_i32_1 = arith.constant 0 : i32
    return %c0_i32, %c0_i32_0 : i32, i32
  }
  func.func @transform_7(%arg0: i32) -> (i32, i32) {
    %c0_i32 = arith.constant 0 : i32
    %c0_i32_0 = arith.constant 0 : i32
    %c0_i32_1 = arith.constant 0 : i32
    return %c0_i32, %c0_i32_0 : i32, i32
  }
  func.func @transform_8(%arg0: i32) -> (i32, i32) {
    %c0_i32 = arith.constant 0 : i32
    %c0_i32_0 = arith.constant 0 : i32
    %c0_i32_1 = arith.constant 0 : i32
    return %c0_i32, %c0_i32_0 : i32, i32
  }
  func.func @transform_9(%arg0: i32) -> (i32, i32) {
    %c0_i32 = arith.constant 0 : i32
    %c0_i32_0 = arith.constant 0 : i32
    %c0_i32_1 = arith.constant 0 : i32
    return %c0_i32, %c0_i32_0 : i32, i32
  }
  func.func @transform_10(%arg0: i32) -> (i32, i32) {
    %c0_i32 = arith.constant 0 : i32
    %c0_i32_0 = arith.constant 0 : i32
    %c0_i32_1 = arith.constant 0 : i32
    return %c0_i32, %c0_i32_0 : i32, i32
  }
  func.func @transform_11(%arg0: i32) -> (i32, i32) {
    %c0_i32 = arith.constant 0 : i32
    %c0_i32_0 = arith.constant 0 : i32
    %c0_i32_1 = arith.constant 0 : i32
    return %c0_i32, %c0_i32_0 : i32, i32
  }
  func.func @transform_12(%arg0: i32) -> (i32, i32) {
    %c0_i32 = arith.constant 0 : i32
    %c0_i32_0 = arith.constant 0 : i32
    return %arg0, %c0_i32 : i32, i32
  }
}

</mosaic_0001>

<bundles_post_ra>
// kernel: tpu_custom_call.1
= control target key start
LH: loop header
LB: loop body
LE: loop exit
PB: predicated region body
PF: predicated region fallthrough
CT: control target
= control target key end

     0   :  { %s5665_s0 = inlined_call_operand.vmem [shape: f32[32,32], index: 0, kind: input, shape index: {}]   ;;  %s5666_s1 = inlined_call_operand.hbm [shape: f32[32,8,32], index: 1, kind: input, shape index: {}]   ;;  %s5667_s2 = inlined_call_operand.vmem [shape: s32[32,1], index: 2, kind: input, shape index: {}]   ;;  %s5668_s3 = inlined_call_operand.vmem [shape: f32[32,64], index: 3, kind: input, shape index: {}]   ;;  %s5669_s4 = inlined_call_operand.vmem [shape: f32[32,64], index: 4, kind: input, shape index: {}]   ;;  %s5670_s5 = inlined_call_operand.hbm [shape: f32[32,64], index: 5, kind: input, shape index: {}]   ;;  %s5671_s6 = inlined_call_operand.vmem [shape: f32[1,64], index: 6, kind: input, shape index: {}]   ;;  %s5672_s7 = inlined_call_operand.vmem [shape: f32[64,32], index: 7, kind: input, shape index: {}]   ;;  %s5673_s8 = inlined_call_operand.vmem [shape: f32[1,32], index: 8, kind: input, shape index: {}]   ;;  %s5674_s9 = inlined_call_operand.vmem [shape: f32[1,32], index: 9, kind: input, shape index: {}]   ;;  %s5675_s10 = inlined_call_operand.<no memory space> [shape: f32[1,1], index: 10, kind: input, shape index: {}]   ;;  %s5676_s12 = inlined_call_operand.hbm [shape: f32[32,128], index: 12, kind: output, shape index: {}]   ;;  %s5677_s11 = inlined_call_operand.<no memory space> [shape: f32[1,1], index: 11, kind: input, shape index: {}]  }
   0x1   :  { %5701 = sst [smem:[#allocation32_spill]] %s5670_s5  ;;  %v17_v0 = vstv %s5675_s10  ;;  %v19_v1 = vstv %s5677_s11 }
   0x2   :  { %18 = vst [vmem:[#allocation2] sm:$0x1] %v17_v0 }
   0x3   :  { %20 = vst [vmem:[#allocation3] sm:$0x1] %v19_v1 }
   0x4   :  { %21 = vsyncpa [#allocation5], 0 }
   0x5   :  { %23 = vsyncpa [#allocation5 + $0x1], 0 }
   0x6   :  { %24 = vsyncpa [#allocation8], 0 }
   0x7   :  { %25 = vsyncpa [#allocation6], 0 }
   0x8   :  { %27 = vsyncpa [#allocation6 + $0x1], 0  ;;  %s3463_s25 = smov 0   ;;  %s3465_s26 = smov 0  }
   0x9   :  { %s3467_s27 = smov 0   ;;  %s3469_s28 = smov 0  }
   0xa LB: > { %5702 = sst [smem:[#allocation13_spill]] %s3377_s27  ;;  %s3484_s10 = sadd.s32 4294967295, %s3381_s28   ;;  %s3381_s28 = sphi %s3469_s28, %s5931_s28   ;;  %s3377_s27 = sphi %s3467_s27, %s5928_s27   ;;  %s3373_s26 = sphi %s3465_s26, %s5930_s26   ;;  %s3369_s25 = sphi %s3463_s25, %s5929_s25  }
   0xb   : > { %s2970_s11 = sadd.s32 4294967294, %s3381_s28   ;;  %p79_p0 = scmp.ne.s32.totalorder %s3373_s26, %s3369_s25 }
   0xc   : > { %p80_p1 = scmp.eq.s32.totalorder %s3484_s10, 0  ;;  %p318_p2 = scmp.eq.s32.totalorder %s3484_s10, 1 }
   0xd   : > { %p324_p3 = scmp.eq.s32.totalorder %s2970_s11, 1  ;;  %p2971_p5 = scmp.ge.s32.totalorder %s3381_s28, 1 }
   0xe   : > { %p3493_p4 = por %p80_p1, %p79_p0  ;;  %p331_p7 = scmp.lt.s32.totalorder %s3381_s28, 3 }
   0xf   : > { %p3498_p6 = por %p324_p3, %p79_p0  ;;  %s5706_s5 = sld [smem:[#allocation32_spill]] }
  0x10   : > { %p3506_p8 = pnand %p2971_p5, %p331_p7  ;;  %s3383_s17 = smov [#allocation7]  }
  0x11   : > { %s5704_s30 = scalar_select %p3498_p6, 1, 0 }
  0x12   : > { %p3070_p9 = pneg %p3506_p8  ;;  %s350_s18 = sshll.u32 %s3383_s17, 4  ;;  %s351_s18 = int_to_ptr.vmem [resolvable:$true] %s350_s18 }
  0x13   : > { %5705 = sst [smem:[#allocation14_spill]] %s5704_s30  ;;  %s3516_s19 = sadd.s32 1, %s3381_s28  }
  0x14   : > { %p3071_p10 = pnand %p3070_p9, %p80_p1  ;;  %s5679_s20 = smov 128  }
  0x15   : > { %s348_s15 = sshll.u32 %s5706_s5, 4  ;;  %s5680_s21 = smov 8   ;;  %s349_s15 = int_to_ptr.hbm [resolvable:$true] %s348_s15 }
  0x16   : > { %3073 = dma.hbm_to_vmem [thread:$0]  (!%p3071_p10), %s349_s15, 512, %s351_s18, [#allocation8], %s5679_s20, %s5679_s20, %s5680_s21  }
  0x17   : > { %s63_s22 = ssub.s32 %s3381_s28, %s3516_s19  ;;  %s66_s23 = sadd.s32 1, %s3377_s27 }
  0x18   : > { %p64_p12 = scmp.eq.s32.totalorder %s63_s22, 0  ;;  %p73_p13 = scmp.ne.s32.totalorder %s3377_s27, %s3373_s26 }
  0x19   : > { %p74_p0 = scmp.eq.s32.totalorder %s3381_s28, 0  ;;  %p3083_p5 = scmp.lt.s32.totalorder %s3381_s28, 2 }
  0x1a   : > { %s3528_s24 = scalar_select %p64_p12, %s3377_s27, %s66_s23  }
  0x1b   : > { %p3532_p3 = por %p318_p2, %p73_p13  ;;  %s391_s13 = sand.u32 1, %s3377_s27  }
  0x1c   : > { %5708 = sst [smem:[#allocation15_spill]] %s3528_s24  ;;  %s3044_s14 = sshll.u32 %s3381_s28, 7 }
  0x1d   : > { %p75_p7 = por %p74_p0, %p73_p13  ;;  %s2974_s17 = sshll.u32 %s391_s13, 7 }
  0x1e   : > { %s400_s15 = scalar_lea.hbm %s5666_s1, %s3044_s14  ;;  %s395_s22 = scalar_lea.vmem [#allocation4], %s2974_s17 }
  0x1f   : > { %s401_s18 = sshll.u32 %s400_s15, 4  ;;  %s403_s20 = sshll.u32 %s395_s22, 4  ;;  %s402_s18 = int_to_ptr.hbm [resolvable:$true] %s401_s18  ;;  %s404_s20 = int_to_ptr.vmem [resolvable:$true] %s403_s20 }
  0x20   : > { %p3542_p9 = pnand %p3083_p5, %p75_p7  ;;  %s392_s21 = scalar_lea.sflag [#allocation5], %s391_s13 }
  0x21   : > { %s3281_s24 = sshra.s32 %s402_s18, 4  ;;  %s3288_s14 = scalar_lea.hbm %s5666_s1, 256  ;;  %s3282_s24 = int_to_ptr.hbm [resolvable:$true] %s3281_s24 }
  0x22   : > { %s3283_s27 = scalar_lea.hbm %s3282_s24, 128  ;;  %p3285_p10 = pneg %p3542_p9 }
  0x23   : > { %p3284_p2 = scmp.ne.s32.totalorder %s3282_s24, %s3283_s27  ;;  %p3289_p0 = scmp.lt.s32.totalorder %s3282_s24, %s5666_s1 }
  0x24   : > { %p3290_p5 = scmp.lt.s32.totalorder %s3288_s14, %s3283_s27 }
  0x25   : > { %p3286_p12 = pnand %p3285_p10, %p3284_p2 }
  0x26   : > { %p3291_p7 = por %p3290_p5, %p3289_p0 }
  0x27   : > { %p3287_p13 = pneg %p3286_p12 }
  0x29   : > { %p3292_p11 = pnand %p3291_p7, %p3287_p13 }
  0x2b   : > { %3295 = shalt.err (!%p3292_p11)
}
  0x2c   : > { %s5711_s13 = smov 8   ;;  %s5712_s22 = smov 128  }
  0x2d   : > { %3077 = dma.hbm_to_vmem [thread:$0]  (!%p3542_p9), %s402_s18, 2048, %s404_s20, %s392_s21, %s5712_s22, %s5712_s22, %s5711_s13  }
  0x2e   : > { %424 = sbr.rel (%p3506_p8) target bundleno = 869 (0x365), region = 68 }
  0x33   : > { %s3562_s5 = sand.u32 1, %s3373_s26  }
  0x34   : > { %s2978_s24 = sshll.u32 %s3562_s5, 7  ;;  %s427_s27 = scalar_lea.sflag [#allocation5], %s3562_s5 }
  0x35   : > { %s3566_s30 = scalar_lea.vmem [#allocation4], %s2978_s24 }
  0x36   : > { %3356 = dma.done.wait (%p3493_p4), %s427_s27, 2048  }
  0x37   : > { %3358 = vsyncadd (%p3493_p4), %s427_s27, 4294965248 }
  0x38   : > { %3360 = dma.done.wait (%p80_p1), [#allocation8], 512  }
  0x39   : > { %3362 = vsyncadd (%p80_p1), [#allocation8], 4294966784  ;;  %s2981_s16 = sshll.u32 %s3484_s10, 1  ;;  %v592_v2 = vld [vmem:[%s5669_s4 + $0x18] sm:$0xff]  ;;  %v591_v4 = vld [vmem:[%s5669_s4 + $0x10] sm:$0xff]  ;;  %vm5692_vm0 = vcmask 261120  }
  0x3a   : > { %p488_p8 = scmp.lt.s32.totalorder %s2981_s16, 3  ;;  %v588_v3 = vld [vmem:[%s5668_s3 + $0x18] sm:$0xff]  ;;  %654 = vmatpush.msra.mxu0 %v592_v2  ;;  %3046 = vmatpush.msra.mxu2 %v592_v2  ;;  %v587_v5 = vld [vmem:[%s5668_s3 + $0x10] sm:$0xff]  ;;  %v590_v6 = vld [vmem:[%s5669_s4 + $0x8] sm:$0xff]  ;;  %vm5691_vm1 = vcmask 523264   ;;  %s3388_s18 = smov 32  }
  0x3b   : > { %767 = vmatpush.msra.mxu1 %v588_v3  ;;  %v586_v8 = vld [vmem:[%s5668_s3 + $0x8] sm:$0xff]  ;;  %v589_v11 = vld [vmem:[%s5669_s4] sm:$0xff]  ;;  %v517_v25 = vld [vmem:[%s3566_s30 + $0x70] sm:$0xff]  ;;  %s3389_s29 = smov 96   ;;  %s3045_s23 = sshll.u32 %s3484_s10, 4 }
  0x3c   : > { %s5933_s16 = smov (!%p488_p8, %s2981_s16), 3  ;;  %655 = vmatpush.msra.mxu0 %v591_v4  ;;  %3047 = vmatpush.msra.mxu2 %v591_v4  ;;  %v503_v9 = vld [vmem:[%s3566_s30] sm:$0xff]  ;;  %v516_v17 = vld [vmem:[%s3566_s30 + $0x68] sm:$0xff]  ;;  %v823_v27 = vld [vmem:[#allocation7 + $0x18] sm:$0xff]  ;;  %s2859_s15 = scalar_lea.hbm %s5676_s12, %s3045_s23 }
  0x3d   : > { %s2982_s20 = sshll.u32 %s5933_s16, 3  ;;  %768 = vmatpush.msra.mxu1 %v587_v5  ;;  %v585_v14 = vld [vmem:[%s5668_s3] sm:$0xff]  ;;  %v504_v22 = vld [vmem:[%s3566_s30 + $0x8] sm:$0xff]  ;;  %v505_v31 = vld [vmem:[%s3566_s30 + $0x10] sm:$0xff]  ;;  %s2862_s10 = sshll.u32 %s2859_s15, 4  ;;  %s2863_s10 = int_to_ptr.hbm [resolvable:$true] %s2862_s10 }
  0x3e   : > { %s3597_s27 = scalar_lea.vmem %s5665_s0, %s2982_s20  ;;  %656 = vmatpush.msra.mxu0 %v590_v6  ;;  %3048 = vmatpush.msra.mxu2 %v590_v6  ;;  %v822_v32 = vld [vmem:[#allocation7 + $0x10] sm:$0xff]  ;;  %v821_v34 = vld [vmem:[#allocation7 + $0x8] sm:$0xff]  ;;  %v518_v36 = vld [vmem:[%s3566_s30 + $0x78] sm:$0xff]  ;;  %s3772_s22 = scalar_lea.vmem %s5667_s2, %s2982_s20 }
  0x3f   : > { %v3603_v7 = vld [vmem:[%s3597_s27] sm:$0xff]  ;;  %v3614_v12 = vld [vmem:[%s3597_s27 + $0x8] sm:$0xff]  ;;  %769 = vmatpush.msra.mxu1 %v586_v8  ;;  %v509_v53 = vld [vmem:[%s3566_s30 + $0x30] sm:$0xff]  ;;  %s2848_s16 = scalar_lea.sflag [#allocation6], %s3562_s5  ;;  %s3325_s20 = sshra.s32 %s2863_s10, 4  ;;  %s3326_s20 = int_to_ptr.hbm [resolvable:$true] %s3325_s20 }
  0x40   : > { %v537_v10 = vperm.slane %v3603_v7, 0  ;;  %v523_v13 = vrot.slane %v3603_v7, 1  ;;  %v534_v16 = vrot.slane %v3614_v12, 5  ;;  %657 = vmatpush.msra.mxu0 %v589_v11  ;;  %3049 = vmatpush.msra.mxu2 %v589_v11  ;;  %v535_v19 = vrot.slane %v3614_v12, 6  ;;  %v820_v38 = vld [vmem:[#allocation7] sm:$0xff]  ;;  %v506_v41 = vld [vmem:[%s3566_s30 + $0x18] sm:$0xff]  ;;  %p3332_p9 = scmp.lt.s32.totalorder %s3326_s20, %s5676_s12 }
  0x41   : > { %770 = vmatpush.msra.mxu1 %v585_v14  ;;  %v524_v26 = vrot.slane %v3603_v7, 2  ;;  %v536_v29 = vrot.slane %v3614_v12, 7  ;;  %v525_v37 = vrot.slane %v3603_v7, 3  ;;  %v526_v43 = vrot.slane %v3603_v7, 4  ;;  %v507_v45 = vld [vmem:[%s3566_s30 + $0x20] sm:$0xff]  ;;  %v508_v49 = vld [vmem:[%s3566_s30 + $0x28] sm:$0xff] }
  0x42   : > { %v569_v15 = vmul.f32 %v537_v10, %v503_v9  ;;  %v550_v18 = vperm.slane %v534_v16, 0  ;;  %v538_v20 = vperm.slane %v523_v13, 0  ;;  %3050 = vmatpush.msrb.mxu2 %v588_v3  ;;  %3001 = vmatmul.msk.f32.vlgmr.msra.gmra.mxu1 %vm5692_vm0, %v503_v9  ;;  %v551_v23 = vperm.slane %v535_v19, 0  ;;  %v510_v57 = vld [vmem:[%s3566_s30 + $0x38] sm:$0xff]  ;;  %v511_v60 = vld [vmem:[%s3566_s30 + $0x40] sm:$0xff]  ;;  %v512_v0 = vld [vmem:[%s3566_s30 + $0x48] sm:$0xff] }
  0x43   : > { %v539_v30 = vperm.slane %v524_v26, 0  ;;  %v552_v33 = vperm.slane %v536_v29, 0  ;;  %v540_v40 = vperm.slane %v525_v37, 0  ;;  %v541_v44 = vperm.slane %v526_v43, 0  ;;  %v513_v4 = vld [vmem:[%s3566_s30 + $0x50] sm:$0xff]  ;;  %v515_v13 = vld [vmem:[%s3566_s30 + $0x60] sm:$0xff] }
  0x44   : > { %2985 = vmatmul.msk.f32.vlgmr.msra.gmra.mxu0 %vm5692_vm0, %v569_v15  ;;  %v582_v21 = vmul.f32 %v550_v18, %v516_v17  ;;  %3051 = vmatpush.msrb.mxu2 %v587_v5  ;;  %v570_v24 = vmul.f32 %v538_v20, %v504_v22  ;;  %v583_v28 = vmul.f32 %v551_v23, %v517_v25  ;;  %v527_v47 = vrot.slane %v3603_v7, 5  ;;  %v957_v23 = vld [vmem:[%s5672_s7 + $0x30] sm:$0xff]  ;;  %v955_v26 = vld [vmem:[%s5672_s7 + $0x20] sm:$0xff]  ;;  %v954_v29 = vld [vmem:[%s5672_s7 + $0x18] sm:$0xff]  ;;  %s3327_s24 = scalar_lea.hbm %s3326_s20, 16 }
  0x45   : > { %v571_v35 = vmul.f32 %v539_v30, %v505_v31  ;;  %v584_v39 = vmul.f32 %v552_v33, %v518_v36  ;;  %v572_v42 = vmul.f32 %v540_v40, %v506_v41  ;;  %v573_v46 = vmul.f32 %v541_v44, %v507_v45  ;;  %v953_v30 = vld [vmem:[%s5672_s7 + $0x10] sm:$0xff]  ;;  %p3328_p1 = scmp.ne.s32.totalorder %s3326_s20, %s3327_s24 }
  0x46   : > { %2998 = vmatmul.msk.f32.vlgmr.msra.gmra.mxu2 %vm5692_vm0, %v582_v21  ;;  %v542_v48 = vperm.slane %v527_v47, 0  ;;  %v528_v51 = vrot.slane %v3603_v7, 6  ;;  %v529_v55 = vrot.slane %v3603_v7, 7  ;;  %v545_v59 = vperm.slane %v3614_v12, 0 }
  0x47   : > { %3052 = vmatpush.msrb.mxu2 %v586_v8  ;;  %v530_v62 = vrot.slane %v3614_v12, 1  ;;  %v531_v2 = vrot.slane %v3614_v12, 2  ;;  %v532_v6 = vrot.slane %v3614_v12, 3  ;;  %v514_v8 = vld [vmem:[%s3566_s30 + $0x58] sm:$0xff]  ;;  %v533_v10 = vrot.slane %v3614_v12, 4  ;;  %p3329_p4 = pnand %p3328_p1, %p3532_p3 }
  0x48   : > { %v574_v50 = vmul.f32 %v542_v48, %v508_v49  ;;  %v543_v52 = vperm.slane %v528_v51, 0  ;;  %v544_v56 = vperm.slane %v529_v55, 0  ;;  %v577_v61 = vmul.f32 %v545_v59, %v511_v60 }
  0x49   : > { %3053 = vmatpush.msrb.mxu2 %v585_v14  ;;  %v546_v63 = vperm.slane %v530_v62, 0  ;;  %v547_v3 = vperm.slane %v531_v2, 0  ;;  %v549_v11 = vperm.slane %v533_v10, 0  ;;  %p3330_p11 = pneg %p3329_p4 }
  0x4a   : > { %3002 = vmatmul.msk.f32.gmra.mxu1 %vm5692_vm0, %v504_v22  ;;  %v575_v54 = vmul.f32 %v543_v52, %v509_v53  ;;  %v576_v58 = vmul.f32 %v544_v56, %v510_v57  ;;  %v958_v22 = vld [vmem:[%s5672_s7 + $0x38] sm:$0xff] }
  0x4b   : > { %840 = vmatpush.msra.mxu2 %v823_v27  ;;  %v578_v1 = vmul.f32 %v546_v63, %v512_v0  ;;  %v579_v5 = vmul.f32 %v547_v3, %v513_v4  ;;  %v581_v14 = vmul.f32 %v549_v11, %v515_v13  ;;  %3054 = vmatpush.msra.mxu3 %v958_v22 }
  0x4c   : > { %2986 = vmatmul.msk.f32.gmra.mxu0 %vm5692_vm0, %v570_v24  ;;  %v956_v24 = vld [vmem:[%s5672_s7 + $0x28] sm:$0xff] }
  0x4d   : > { %841 = vmatpush.msra.mxu2 %v822_v32  ;;  %3055 = vmatpush.msra.mxu3 %v957_v23  ;;  %v951_v32 = vld [vmem:[%s5672_s7] sm:$0xff] }
  0x4e   : > { %2999 = vmatmul.msk.f32.gmra.mxu2 %vm5692_vm0, %v583_v28 }
  0x4f   : > { %842 = vmatpush.msra.mxu2 %v821_v34  ;;  %3056 = vmatpush.msra.mxu3 %v956_v24 }
  0x51   : > { %843 = vmatpush.msra.mxu2 %v820_v38  ;;  %3057 = vmatpush.msra.mxu3 %v955_v26 }
  0x52   : > { %3003 = vmatmul.msk.f32.gmra.mxu1 %vm5692_vm0, %v505_v31  ;;  %v952_v31 = vld [vmem:[%s5672_s7 + $0x8] sm:$0xff] }
  0x53   : > { %3058 = vmatpush.msra.mxu3 %v954_v29 }
  0x54   : > { %2987 = vmatmul.msk.f32.gmra.mxu0 %vm5692_vm0, %v571_v35 }
  0x55   : > { %3059 = vmatpush.msra.mxu3 %v953_v30 }
  0x56   : > { %3000 = vmatmul.msk.f32.gmra.mxu2 %vm5692_vm0, %v584_v39 }
  0x57   : > { %3060 = vmatpush.msra.mxu3 %v952_v31 }
  0x59   : > { %3061 = vmatpush.msra.mxu3 %v951_v32 }
  0x5a   : > { %3004 = vmatmul.msk.f32.gmra.mxu1 %vm5692_vm0, %v506_v41 }
  0x5c   : > { %2988 = vmatmul.msk.f32.gmra.mxu0 %vm5692_vm0, %v572_v42 }
  0x5e   : > { %3014 = vmatmul.msk.f32.vlgmr.msrb.gmra.mxu2 %vm5692_vm0, %v516_v17 }
  0x5f   : > { %1020 = vmatpush.msrb.mxu2 %v958_v22 }
  0x61   : > { %1021 = vmatpush.msrb.mxu2 %v957_v23 }
  0x62   : > { %3005 = vmatmul.msk.f32.gmra.mxu1 %vm5692_vm0, %v507_v45 }
  0x63   : > { %1022 = vmatpush.msrb.mxu2 %v956_v24 }
  0x64   : > { %2989 = vmatmul.msk.f32.gmra.mxu0 %vm5692_vm0, %v573_v46 }
  0x65   : > { %1023 = vmatpush.msrb.mxu2 %v955_v26 }
  0x66   : > { %3015 = vmatmul.msk.f32.gmra.mxu2 %vm5692_vm0, %v517_v25 }
  0x67   : > { %1024 = vmatpush.msrb.mxu2 %v954_v29 }
  0x69   : > { %1025 = vmatpush.msrb.mxu2 %v953_v30 }
  0x6a   : > { %3006 = vmatmul.msk.f32.gmra.mxu1 %vm5692_vm0, %v508_v49  ;;  %v3720_v49 = vld [vmem:[%s5671_s6] ss:$0 sm:$0xff] }
  0x6b   : > { %1026 = vmatpush.msrb.mxu2 %v952_v31 }
  0x6c   : > { %2990 = vmatmul.msk.f32.gmra.mxu0 %vm5692_vm0, %v574_v50 }
  0x6d   : > { %1027 = vmatpush.msrb.mxu2 %v951_v32 }
  0x6e   : > { %3016 = vmatmul.msk.f32.gmra.mxu2 %vm5692_vm0, %v518_v36 }
  0x72   : > { %3007 = vmatmul.msk.f32.gmra.mxu1 %vm5692_vm0, %v509_v53 }
  0x74   : > { %2991 = vmatmul.msk.f32.gmra.mxu0 %vm5692_vm0, %v575_v54 }
  0x76   : > { %3017 = vmatmul.msk.f32.vlgmr.msra.gmra.mxu2 %vm5692_vm0, %v3603_v7  ;;  %v548_v7 = vperm.slane %v532_v6, 0 }
  0x78   : > { %v580_v9 = vmul.f32 %v548_v7, %v514_v8 }
  0x7a   : > { %3008 = vmatmul.msk.f32.gmra.mxu1 %vm5692_vm0, %v510_v57 }
  0x7c   : > { %2992 = vmatmul.msk.f32.gmra.mxu0 %vm5692_vm0, %v576_v58 }
  0x7e   : > { %3018 = vmatmul.msk.f32.gmra.mxu2 %vm5692_vm0, %v3614_v12 }
  0x82   : > { %3009 = vmatmul.msk.f32.gmra.mxu1 %vm5692_vm0, %v511_v60 }
  0x84   : > { %2993 = vmatmul.msk.f32.gmra.mxu0 %vm5692_vm0, %v577_v61 }
  0x8a   : > { %3010 = vmatmul.msk.f32.gmra.mxu1 %vm5692_vm0, %v512_v0 }
  0x8c   : > { %2994 = vmatmul.msk.f32.gmra.mxu0 %vm5692_vm0, %v578_v1 }
  0x92   : > { %3011 = vmatmul.msk.f32.gmra.mxu1 %vm5692_vm0, %v513_v4 }
  0x94   : > { %2995 = vmatmul.msk.f32.gmra.mxu0 %vm5692_vm0, %v579_v5 }
  0x9a   : > { %3012 = vmatmul.msk.f32.gmra.mxu1 %vm5692_vm0, %v514_v8 }
  0x9c   : > { %2996 = vmatmul.msk.f32.gmra.mxu0 %vm5692_vm0, %v580_v9 }
  0xa2   : > { %3013 = vmatmul.msk.f32.gmra.mxu1 %vm5692_vm0, %v515_v13 }
  0xa4   : > { %2997 = vmatmul.msk.f32.gmra.mxu0 %vm5692_vm0, %v581_v14 }
  0xbf   : > { %v772_v16 = vpop.f32.mrf.mxu1 }
  0xc1   : > { %v659_v15 = vpop.f32.mrf.mxu0 }
  0xc2   : > { %v773_v46 = vadd.f32 %v772_v16, %v659_v15 }
  0xc7   : > { %v775_v19 = vpop.f32.mrf.mxu1 }
  0xc9   : > { %v662_v17 = vpop.f32.mrf.mxu0  ;;  %v698_v18 = vpop.f32.mrf.mxu2 }
  0xca   : > { %v776_v55 = vadd.f32 %v775_v19, %v662_v17 }
  0xcf   : > { %v3687_v12 = vpop.f32.mrf.mxu1 }
  0xd1   : > { %v3685_v20 = vpop.f32.mrf.mxu0  ;;  %v701_v21 = vpop.f32.mrf.mxu2 }
  0xd2   : > { %v779_v9 = vadd.f32 %v3687_v12, %v3685_v20 }
  0xd7   : > { %v3703_v28 = vpop.f32.mrf.mxu1 }
  0xd9   : > { %v3698_v25 = vpop.f32.mrf.mxu0  ;;  %v704_v27 = vpop.f32.mrf.mxu2 }
  0xdf   : > { %v784_v36 = vpop.f32.mrf.mxu1 }
  0xe1   : > { %v811_v33 = vpop.f32.mrf.mxu2  ;;  %v671_v35 = vpop.f32.mrf.mxu0 }
  0xe2   : > { %v812_v34 = vadd.f32 %v811_v33, %v698_v18  ;;  %v785_v47 = vadd.f32 %v784_v36, %v671_v35 }
  0xe7   : > { %v787_v40 = vpop.f32.mrf.mxu1 }
  0xe9   : > { %v814_v37 = vpop.f32.mrf.mxu2  ;;  %v674_v39 = vpop.f32.mrf.mxu0 }
  0xea   : > { %v815_v38 = vadd.f32 %v814_v37, %v701_v21  ;;  %v788_v57 = vadd.f32 %v787_v40, %v674_v39  ;;  %v782_v39 = vadd.f32 %v3703_v28, %v3698_v25 }
  0xef   : > { %v790_v44 = vpop.f32.mrf.mxu1 }
  0xf1   : > { %v817_v41 = vpop.f32.mrf.mxu2  ;;  %v677_v43 = vpop.f32.mrf.mxu0 }
  0xf2   : > { %v818_v42 = vadd.f32 %v817_v41, %v704_v27  ;;  %v791_v10 = vadd.f32 %v790_v44, %v677_v43 }
  0xf7   : > { %v793_v62 = vpop.f32.mrf.mxu1 }
  0xf9   : > { %v845_v45 = vpop.f32.mrf.mxu2  ;;  %v680_v61 = vpop.f32.mrf.mxu0 }
  0xfa   : > { %v867_v48 = vperm.slane %v845_v45, 0  ;;  %v856_v50 = vrot.slane %v845_v45, 4  ;;  %v853_v51 = vrot.slane %v845_v45, 1  ;;  %v857_v52 = vrot.slane %v845_v45, 5 }
  0xfb   : > { %v854_v2 = vrot.slane %v845_v45, 2  ;;  %v858_v5 = vrot.slane %v845_v45, 6  ;;  %v855_v16 = vrot.slane %v845_v45, 3  ;;  %v859_v23 = vrot.slane %v845_v45, 7 }
  0xfc   : > { %v899_v53 = vadd.f32 %v867_v48, %v773_v46  ;;  %v871_v54 = vperm.slane %v856_v50, 0  ;;  %v868_v56 = vperm.slane %v853_v51, 0  ;;  %v872_v60 = vperm.slane %v857_v52, 0 }
  0xfd   : > { %v869_v8 = vperm.slane %v854_v2, 0  ;;  %v873_v13 = vperm.slane %v858_v5, 0  ;;  %v870_v33 = vperm.slane %v855_v16, 0 }
  0xfe   : > { %v919_v58 = vadd.f32 %v3720_v49, %v899_v53  ;;  %v903_v59 = vadd.f32 %v871_v54, %v785_v47  ;;  %v900_v1 = vadd.f32 %v868_v56, %v776_v55  ;;  %v904_v4 = vadd.f32 %v872_v60, %v788_v57 }
  0xff   : > { %v901_v19 = vadd.f32 %v869_v8, %v779_v9  ;;  %v796_v27 = vpop.f32.mrf.mxu1  ;;  %v905_v12 = vadd.f32 %v873_v13, %v791_v10 }
 0x100   : > { %v935_v63 = vmax.f32 %v919_v58, 0.0  ;;  %v923_v0 = vadd.f32 %v3720_v49, %v903_v59  ;;  %v920_v7 = vadd.f32 %v3720_v49, %v900_v1  ;;  %v924_v11 = vadd.f32 %v3720_v49, %v904_v4 }
 0x101   : > { %v3725_v6 = vpop.f32.mrf.mxu2  ;;  %v683_v26 = vpop.f32.mrf.mxu0  ;;  %v921_v32 = vadd.f32 %v3720_v49, %v901_v19  ;;  %v925_v40 = vadd.f32 %v3720_v49, %v905_v12  ;;  %v3776_v19 = vld [vmem:[%s3772_s22] sm:$0xff]  ;;  %v3386_v12 = vmov 0  }
 0x102   : > { %3019 = vmatmul.msk.f32.vlgmr.msrb.gmra.mxu2 %vm5691_vm1, %v935_v63  ;;  %v939_v3 = vmax.f32 %v923_v0, 0.0  ;;  %v864_v14 = vrot.slane %v3725_v6, 5  ;;  %v865_v15 = vrot.slane %v3725_v6, 6  ;;  %v866_v17 = vrot.slane %v3725_v6, 7  ;;  %3127 = vset.pattern.permute.xlu2 %v3386_v12 }
 0x103   : > { %v936_v18 = vmax.f32 %v920_v7, 0.0  ;;  %v940_v20 = vmax.f32 %v924_v11, 0.0  ;;  %v937_v41 = vmax.f32 %v921_v32, 0.0  ;;  %v941_v44 = vmax.f32 %v925_v40, 0.0  ;;  %3129 = vset.pattern.permute.xlu0 %v3386_v12  ;;  %3128 = vset.pattern.permute.xlu1 %v3386_v12 }
 0x104   : > { %3023 = vmatmul.msk.f32.vlgmr.msra.gmra.mxu3 %vm5691_vm1, %v939_v3  ;;  %v880_v21 = vperm.slane %v864_v14, 0  ;;  %v881_v22 = vperm.slane %v865_v15, 0  ;;  %v882_v24 = vperm.slane %v866_v17, 0  ;;  %v797_v45 = vadd.f32 %v796_v27, %v683_v26 }
 0x105   : > { %v875_v46 = vperm.slane %v3725_v6, 0  ;;  %v860_v52 = vrot.slane %v3725_v6, 1  ;;  %v862_v4 = vrot.slane %v3725_v6, 3  ;;  %v863_v15 = vrot.slane %v3725_v6, 4 }
 0x106   : > { %v912_v29 = vadd.f32 %v880_v21, %v812_v34  ;;  %v913_v30 = vadd.f32 %v881_v22, %v815_v38  ;;  %v914_v31 = vadd.f32 %v882_v24, %v818_v42  ;;  %v794_v34 = vadd.f32 %v793_v62, %v680_v61  ;;  %v3779_v21 = vld [vmem:[%s3772_s22 + $0x8] sm:$0xff] }
 0x107   : > { %v874_v38 = vperm.slane %v859_v23, 0  ;;  %v902_v42 = vadd.f32 %v870_v33, %v782_v39  ;;  %v799_v48 = vpop.f32.mrf.mxu1  ;;  %v907_v28 = vadd.f32 %v875_v46, %v797_v45  ;;  %v876_v56 = vperm.slane %v860_v52, 0 }
 0x108   : > { %v3739_v35 = vadd.f32 %v3720_v49, %v912_v29  ;;  %v3742_v36 = vadd.f32 %v3720_v49, %v913_v30  ;;  %v3745_v37 = vadd.f32 %v3720_v49, %v914_v31  ;;  %v861_v61 = vrot.slane %v3725_v6, 2 }
 0x109   : > { %v906_v43 = vadd.f32 %v874_v38, %v794_v34  ;;  %v686_v47 = vpop.f32.mrf.mxu0  ;;  %v922_v50 = vadd.f32 %v3720_v49, %v902_v42  ;;  %v927_v54 = vadd.f32 %v3720_v49, %v907_v28  ;;  %v878_v8 = vperm.slane %v862_v4, 0 }
 0x10a   : > { %3020 = vmatmul.msk.f32.gmra.mxu2 %vm5691_vm1, %v936_v18  ;;  %v800_v55 = vadd.f32 %v799_v48, %v686_v47  ;;  %v877_v63 = vperm.slane %v861_v61, 0  ;;  %v879_v18 = vperm.slane %v863_v15, 0  ;;  %v3035_v23 = vadd.s32 4294967294, %v3776_v19  ;;  %v3797_v47 = vld [vmem:[%s5673_s8] ss:$0 sm:$0xff] }
 0x10b   : > { %v926_v25 = vadd.f32 %v3720_v49, %v906_v43  ;;  %v938_v51 = vmax.f32 %v922_v50, 0.0  ;;  %v943_v59 = vmax.f32 %v927_v54, 0.0  ;;  %v3037_v24 = vadd.s32 4294967291, %v3776_v19 }
 0x10c   : > { %3024 = vmatmul.msk.f32.gmra.mxu3 %vm5691_vm1, %v940_v20  ;;  %v908_v60 = vadd.f32 %v876_v56, %v800_v55  ;;  %v3038_v26 = vadd.s32 4294967291, %v3779_v21  ;;  %v3036_v27 = vadd.s32 4294967294, %v3779_v21  ;;  %vm1957_vm2 = vcmp.lt.s32.totalorder %v3035_v23, 3 }
 0x10d   : > { %v942_v53 = vmax.f32 %v926_v25, 0.0  ;;  %v1958_v29 = vsel %vm1957_vm2, %v3035_v23, 3  ;;  %vm2391_vm3 = vcmp.lt.s32.totalorder %v3037_v24, 3  ;;  %v949_v45 = vmax.f32 %v3742_v36, 0.0 }
 0x10e   : > { %v928_v0 = vadd.f32 %v3720_v49, %v908_v60  ;;  %vm2393_vm4 = vcmp.lt.s32.totalorder %v3038_v26, 3  ;;  %vm1959_vm5 = vcmp.lt.s32.totalorder %v3036_v27, 3  ;;  %vm1961_vm6 = vcmp.gt.s32.totalorder %v1958_v29, 1 }
 0x10f   : > { %v802_v58 = vpop.f32.mrf.mxu1  ;;  %v2392_v30 = vsel %vm2391_vm3, %v3037_v24, 3  ;;  %v2394_v31 = vsel %vm2393_vm4, %v3038_v26, 3  ;;  %v1960_v32 = vsel %vm1959_vm5, %v3036_v27, 3  ;;  %v1962_v33 = vsel %vm1961_vm6, %v1958_v29, 1 }
 0x110   : > { %v944_v5 = vmax.f32 %v928_v0, 0.0  ;;  %vm2395_vm7 = vcmp.gt.s32.totalorder %v2392_v30, 1  ;;  %vm1963_vm8 = vcmp.gt.s32.totalorder %v1960_v32, 1  ;;  %v1965_v39 = vcvt.s32.f32 %v1962_v33 }
 0x111   : > { %v689_v57 = vpop.f32.mrf.mxu0  ;;  %v2396_v34 = vsel %vm2395_vm7, %v2392_v30, 1  ;;  %vm2397_vm9 = vcmp.gt.s32.totalorder %v2394_v31, 1  ;;  %v950_v46 = vmax.f32 %v3745_v37, 0.0 }
 0x112   : > { %3021 = vmatmul.msk.f32.gmra.mxu2 %vm5691_vm1, %v937_v41  ;;  %v803_v62 = vadd.f32 %v802_v58, %v689_v57  ;;  %v2399_v40 = vcvt.s32.f32 %v2396_v34  ;;  %1969 = vperm.xlu2 %3127, %v1965_v39   ;;  %v2398_v42 = vsel %vm2397_vm9, %v2394_v31, 1 }
 0x113   : > { %v2400_v43 = vcvt.s32.f32 %v2398_v42 }
 0x114   : > { %3025 = vmatmul.msk.f32.gmra.mxu3 %vm5691_vm1, %v941_v44  ;;  %v909_v3 = vadd.f32 %v877_v63, %v803_v62  ;;  %2403 = vperm.xlu0 %3129, %v2399_v40   ;;  %v948_v44 = vmax.f32 %v3739_v35, 0.0  ;;  %v3803_v35 = vld [vmem:[%s5674_s9] ss:$0 sm:$0xff] }
 0x116   : > { %v929_v9 = vadd.f32 %v3720_v49, %v909_v3 }
 0x117   : > { %v805_v2 = vpop.f32.mrf.mxu1 }
 0x118   : > { %v945_v14 = vmax.f32 %v929_v9, 0.0 }
 0x119   : > { %v692_v1 = vpop.f32.mrf.mxu0 }
 0x11a   : > { %3022 = vmatmul.msk.f32.gmra.mxu2 %vm5691_vm1, %v938_v51  ;;  %v806_v7 = vadd.f32 %v805_v2, %v692_v1  ;;  %2407 = vperm.xlu2 %3127, %v2400_v43  }
 0x11c   : > { %3026 = vmatmul.msk.f32.gmra.mxu3 %vm5691_vm1, %v942_v53  ;;  %v910_v10 = vadd.f32 %v878_v8, %v806_v7 }
 0x11e   : > { %v930_v17 = vadd.f32 %v3720_v49, %v910_v10 }
 0x11f   : > { %v808_v13 = vpop.f32.mrf.mxu1 }
 0x120   : > { %v946_v6 = vmax.f32 %v930_v17, 0.0 }
 0x121   : > { %v695_v11 = vpop.f32.mrf.mxu0 }
 0x122   : > { %v809_v16 = vadd.f32 %v808_v13, %v695_v11 }
 0x124   : > { %3027 = vmatmul.msk.f32.gmra.mxu3 %vm5691_vm1, %v943_v59  ;;  %v911_v22 = vadd.f32 %v879_v18, %v809_v16 }
 0x126   : > { %v931_v20 = vadd.f32 %v3720_v49, %v911_v22  ;;  %v1964_v49 = vsel %vm1963_vm8, %v1960_v32, 1 }
 0x127   : > { %v1966_v41 = vcvt.s32.f32 %v1964_v49 }
 0x128   : > { %v947_v38 = vmax.f32 %v931_v20, 0.0 }
 0x129   : > { %1973 = vperm.xlu1 %3128, %v1966_v41  }
 0x12c   : > { %3028 = vmatmul.msk.f32.gmra.mxu3 %vm5691_vm1, %v944_v5 }
 0x134   : > { %3029 = vmatmul.msk.f32.gmra.mxu3 %vm5691_vm1, %v945_v14 }
 0x13c   : > { %3030 = vmatmul.msk.f32.gmra.mxu3 %vm5691_vm1, %v946_v6 }
 0x144   : > { %3031 = vmatmul.msk.f32.gmra.mxu3 %vm5691_vm1, %v947_v38 }
 0x14c   : > { %3032 = vmatmul.msk.f32.gmra.mxu3 %vm5691_vm1, %v948_v44 }
 0x154   : > { %3033 = vmatmul.msk.f32.gmra.mxu3 %vm5691_vm1, %v949_v45 }
 0x15c   : > { %3034 = vmatmul.msk.f32.gmra.mxu3 %vm5691_vm1, %v950_v46 }
 0x185   : > { %v1029_v48 = vpop.f32.mrf.mxu2 }
 0x186   : > { %v1030_v50 = vadd.f32 %v3797_v47, %v1029_v48 }
 0x187   : > { %v1041_v36 = vpop.f32.mrf.mxu3 }
 0x188   : > { %v1077_v25 = vmax.f32 %v1030_v50, 0.0  ;;  %v1042_v28 = vadd.f32 %v3797_v47, %v1041_v36 }
 0x18a   : > { %v1081_v37 = vmax.f32 %v1042_v28, 0.0  ;;  %v1097_v51 = vmul.f32 %v3803_v35, %v1077_v25 }
 0x18c   : > { %v1113_v52 = vsel %vm5692_vm0, %v1097_v51, 0.0  ;;  %v1101_v53 = vmul.f32 %v3803_v35, %v1081_v37 }
 0x18d   : > { %1114 = vadd.xlane.f32.xlu0 %v1113_v52  ;;  %v1032_v54 = vpop.f32.mrf.mxu2 }
 0x18e   : > { %v1033_v55 = vadd.f32 %v3797_v47, %v1032_v54  ;;  %v1125_v56 = vsel %vm5692_vm0, %v1101_v53, 0.0 }
 0x18f   : > { %1126 = vadd.xlane.f32.xlu2 %v1125_v56  ;;  %v1044_v57 = vpop.f32.mrf.mxu3 }
 0x190   : > { %v1078_v58 = vmax.f32 %v1033_v55, 0.0  ;;  %v1045_v59 = vadd.f32 %v3797_v47, %v1044_v57 }
 0x192   : > { %v1082_v60 = vmax.f32 %v1045_v59, 0.0  ;;  %v1098_v61 = vmul.f32 %v3803_v35, %v1078_v58 }
 0x194   : > { %v1116_v62 = vsel %vm5692_vm0, %v1098_v61, 0.0  ;;  %v1102_v63 = vmul.f32 %v3803_v35, %v1082_v60 }
 0x195   : > { %1117 = vadd.xlane.f32.xlu0 %v1116_v62  ;;  %v1035_v0 = vpop.f32.mrf.mxu2 }
 0x196   : > { %v1036_v1 = vadd.f32 %v3797_v47, %v1035_v0  ;;  %v1128_v2 = vsel %vm5692_vm0, %v1102_v63, 0.0  ;;  %v3850_v63 = vpop.permute.xlu2 %1969 }
 0x197   : > { %1129 = vadd.xlane.f32.xlu2 %v1128_v2  ;;  %v1047_v3 = vpop.f32.mrf.mxu3  ;;  %vm2010_vm12 = vweird.f32 %v3850_v63 }
 0x198   : > { %v1079_v4 = vmax.f32 %v1036_v1, 0.0  ;;  %v1048_v5 = vadd.f32 %v3797_v47, %v1047_v3  ;;  %v1975_v1 = vrot.slane %v3850_v63, 1  ;;  %v3856_v3 = vrot.slane %v3850_v63, 3 }
 0x19a   : > { %v1083_v7 = vmax.f32 %v1048_v5, 0.0  ;;  %v1099_v8 = vmul.f32 %v3803_v35, %v1079_v4  ;;  %3135 = vrcp.f32 %v1975_v1  ;;  %vm2025_vm10 = vweird.f32 %v1975_v1 }
 0x19b   : > { %3137 = vrcp.f32 %v3850_v63  ;;  %vm2055_vm15 = vweird.f32 %v3856_v3 }
 0x19c   : > { %v1119_v9 = vsel %vm5692_vm0, %v1099_v8, 0.0  ;;  %v1103_v10 = vmul.f32 %v3803_v35, %v1083_v7  ;;  %3139 = vrcp.f32 %v3856_v3 }
 0x19d   : > { %1120 = vadd.xlane.f32.xlu1 %v1119_v9  ;;  %v1038_v11 = vpop.f32.mrf.mxu2 }
 0x19e   : > { %v1039_v13 = vadd.f32 %v3797_v47, %v1038_v11  ;;  %v1131_v14 = vsel %vm5692_vm0, %v1103_v10, 0.0  ;;  %v3874_v11 = vpop.permute.xlu0 %2403 }
 0x19f   : > { %1132 = vadd.xlane.f32.xlu0 %v1131_v14  ;;  %v1050_v15 = vpop.f32.mrf.mxu3  ;;  %v3878_v14 = vpop.permute.xlu1 %1973 }
 0x1a0   : > { %v1080_v16 = vmax.f32 %v1039_v13, 0.0  ;;  %v1051_v17 = vadd.f32 %v3797_v47, %v1050_v15  ;;  %v3860_v4 = vpop.eup %3135 }
 0x1a1   : > { %v3864_v5 = vpop.eup %3137  ;;  %v2021_v7 = vmul.f32 %v3860_v4, %v1975_v1  ;;  %vm2026_vm11 = vweird.f32 %v3860_v4 }
 0x1a2   : > { %v1100_v18 = vmul.f32 %v3803_v35, %v1080_v16  ;;  %v1084_v22 = vmax.f32 %v1051_v17, 0.0  ;;  %v2006_v9 = vmul.f32 %v3864_v5, %v3850_v63  ;;  %v3881_v17 = vrot.slane %v3850_v63, 2  ;;  %vm3900_vm14 = vmor %vm2025_vm10, %vm2026_vm11 }
 0x1a3   : > { %v2022_v10 = vsub.f32 1.0, %v2021_v7  ;;  %vm2011_vm13 = vweird.f32 %v3864_v5 }
 0x1a4   : > { %v1122_v6 = vsel %vm5692_vm0, %v1100_v18, 0.0  ;;  %v1104_v26 = vmul.f32 %v3803_v35, %v1084_v22  ;;  %v2007_v16 = vsub.f32 1.0, %v2006_v9  ;;  %vm3927_vm3 = vmor %vm2010_vm12, %vm2011_vm13 }
 0x1a5   : > { %1123 = vadd.xlane.f32.xlu1 %v1122_v6  ;;  %v2023_v18 = vmul.f32 %v3860_v4, %v2022_v10  ;;  %v1233_v6 = vlaneseq }
 0x1a6   : > { %v1134_v20 = vsel %vm5692_vm0, %v1104_v26, 0.0 }
 0x1a7   : > { %v1053_v23 = vpop.f32.mrf.mxu3 }
 0x1a8   : > { %v1054_v24 = vadd.f32 %v3797_v47, %v1053_v23 }
 0x1aa   : > { %v1085_v27 = vmax.f32 %v1054_v24, 0.0  ;;  %v2031_v24 = vand.u32 2147483648, %v1975_v1 }
 0x1ac   : > { %v1105_v12 = vmul.f32 %v3803_v35, %v1085_v27  ;;  %v2008_v27 = vmul.f32 %v3864_v5, %v2007_v16 }
 0x1ad   : > { %1135 = vadd.xlane.f32.xlu1 %v1134_v20  ;;  %v3895_v20 = vld [vmem:[#allocation2] ss:$0 sm:$0xff] }
 0x1ae   : > { %v1137_v29 = vsel %vm5692_vm0, %v1105_v12, 0.0  ;;  %v2024_v12 = vadd.f32 %v3860_v4, %v2023_v18 }
 0x1af   : > { %1138 = vadd.xlane.f32.xlu2 %v1137_v29  ;;  %v1056_v30 = vpop.f32.mrf.mxu3  ;;  %v2029_v29 = vand.u32 2147483647, %v1975_v1  ;;  %v3970_v1 = vrot.slane %v3874_v11, 3 }
 0x1b0   : > { %v1057_v31 = vadd.f32 %v3797_v47, %v1056_v30 }
 0x1b1   : > { %vm2030_vm4 = vcmp.eq.f32.partialorder %v2029_v29, 8.507059e+37 }
 0x1b2   : > { %v1086_v32 = vmax.f32 %v1057_v31, 0.0 }
 0x1b4   : > { %v1106_v33 = vmul.f32 %v3803_v35, %v1086_v32 }
 0x1b6   : > { %v1140_v39 = vsel %vm5692_vm0, %v1106_v33, 0.0 }
 0x1b7   : > { %1141 = vadd.xlane.f32.xlu0 %v1140_v39  ;;  %v1059_v34 = vpop.f32.mrf.mxu3  ;;  %v3911_v39 = vld [vmem:[#allocation3] ss:$0 sm:$0xff] }
 0x1b8   : > { %v1060_v49 = vadd.f32 %v3797_v47, %v1059_v34  ;;  %v3913_v34 = vshrl.u32 %v1233_v6, 7 }
 0x1ba   : > { %v1087_v38 = vmax.f32 %v1060_v49, 0.0  ;;  %v1249_v49 = vperm.slane %v3776_v19, 0 }
 0x1bc   : > { %v1107_v40 = vmul.f32 %v3803_v35, %v1087_v38  ;;  %v2016_v38 = vand.u32 2147483648, %v3850_v63  ;;  %vm1265_vm7 = vcmp.lt.s32.totalorder %v3913_v34, %v1249_v49 }
 0x1be   : > { %v1143_v41 = vsel %vm5692_vm0, %v1107_v40, 0.0  ;;  %v2017_v9 = vor.u32 1.1754944e-38, %v2016_v38 }
 0x1bf   : > { %1144 = vadd.xlane.f32.xlu1 %v1143_v41  ;;  %v1062_v42 = vpop.f32.mrf.mxu3 }
 0x1c0   : > { %v1063_v43 = vadd.f32 %v3797_v47, %v1062_v42  ;;  %v2032_v42 = vor.u32 1.1754944e-38, %v2031_v24  ;;  %v1239_v24 = vrot.slane %v3776_v19, 5 }
 0x1c2   : > { %v1088_v44 = vmax.f32 %v1063_v43, 0.0 }
 0x1c4   : > { %v1108_v45 = vmul.f32 %v3803_v35, %v1088_v44  ;;  %v2061_v44 = vand.u32 2147483648, %v3856_v3 }
 0x1c6   : > { %v1146_v46 = vsel %vm5692_vm0, %v1108_v45, 0.0  ;;  %v2009_v45 = vadd.f32 %v3864_v5, %v2008_v27 }
 0x1c7   : > { %1147 = vadd.xlane.f32.xlu2 %v1146_v46  ;;  %v1065_v48 = vpop.f32.mrf.mxu3 }
 0x1c8   : > { %v1066_v50 = vadd.f32 %v3797_v47, %v1065_v48 }
 0x1ca   : > { %v1089_v36 = vmax.f32 %v1066_v50, 0.0  ;;  %v2028_v50 = vsel %vm3900_vm14, %v3860_v4, %v2024_v12 }
 0x1cc   : > { %v1109_v25 = vmul.f32 %v3803_v35, %v1089_v36 }
 0x1ce   : > { %v1149_v28 = vsel %vm5692_vm0, %v1109_v25, 0.0  ;;  %v2059_v25 = vand.u32 2147483647, %v3856_v3 }
 0x1cf   : > { %v1068_v37 = vpop.f32.mrf.mxu3  ;;  %1150 = vadd.xlane.f32.xlu0 %v1149_v28 }
 0x1d0   : > { %v1069_v51 = vadd.f32 %v3797_v47, %v1068_v37  ;;  %vm3965_vm8 = vcmp.eq.f32.partialorder %v2059_v25, 8.507059e+37 }
 0x1d2   : > { %v1090_v52 = vmax.f32 %v1069_v51, 0.0  ;;  %v1235_v51 = vrot.slane %v3776_v19, 1 }
 0x1d4   : > { %v1110_v53 = vmul.f32 %v3803_v35, %v1090_v52  ;;  %v1238_v52 = vrot.slane %v3776_v19, 4  ;;  %v1250_v4 = vperm.slane %v1235_v51, 0 }
 0x1d6   : > { %v1152_v54 = vsel %vm5692_vm0, %v1110_v53, 0.0  ;;  %v3949_v53 = vrot.slane %v3874_v11, 1  ;;  %vm1266_vm13 = vcmp.lt.s32.totalorder %v3913_v34, %v1250_v4 }
 0x1d7   : > { %v1071_v55 = vpop.f32.mrf.mxu3  ;;  %1153 = vadd.xlane.f32.xlu1 %v1152_v54  ;;  %v2014_v54 = vand.u32 2147483647, %v3850_v63 }
 0x1d8   : > { %v1072_v56 = vadd.f32 %v3797_v47, %v1071_v55 }
 0x1d9   : > { %vm3973_vm9 = vcmp.eq.f32.partialorder %v2014_v54, 8.507059e+37 }
 0x1da   : > { %v1091_v57 = vmax.f32 %v1072_v56, 0.0 }
 0x1dc   : > { %v1111_v58 = vmul.f32 %v3803_v35, %v1091_v57  ;;  %v3955_v57 = vsel %vm2030_vm4, %v2032_v42, %v2028_v50  ;;  %v1254_v50 = vperm.slane %v1239_v24, 0  ;;  %vm2040_vm4 = vweird.f32 %v3881_v17 }
 0x1de   : > { %v1155_v59 = vsel %vm5692_vm0, %v1111_v58, 0.0 }
 0x1df   : > { %v1074_v60 = vpop.f32.mrf.mxu3  ;;  %1156 = vadd.xlane.f32.xlu2 %v1155_v59  ;;  %v2062_v59 = vor.u32 1.1754944e-38, %v2061_v44  ;;  %v1240_v44 = vrot.slane %v3776_v19, 6 }
 0x1e0   : > { %v1075_v61 = vadd.f32 %v3797_v47, %v1074_v60  ;;  %v3862_v47 = vpop.permute.xlu2 %2407  ;;  %v2013_v60 = vsel %vm3927_vm3, %v3864_v5, %v2009_v45 }
 0x1e1   : > { %3141 = vrcp.f32 %v3862_v47  ;;  %v3890_v23 = vrot.slane %v3862_v47, 1  ;;  %v3907_v32 = vrot.slane %v3862_v47, 2  ;;  %vm2564_vm10 = vweird.f32 %v3862_v47 }
 0x1e2   : > { %v1092_v62 = vmax.f32 %v1075_v61, 0.0  ;;  %3143 = vrcp.f32 %v3874_v11  ;;  %v2570_v10 = vand.u32 2147483648, %v3862_v47  ;;  %v4009_v49 = vsel %vm3973_vm9, %v2017_v9, %v2013_v60 }
 0x1e3   : > { %3145 = vrcp.f32 %v3878_v14 }
 0x1e4   : > { %v1112_v0 = vmul.f32 %v3803_v35, %v1092_v62  ;;  %v3866_v35 = vpop.eup %3139  ;;  %3147 = vrcp.f32 %v3881_v17  ;;  %v2571_v38 = vor.u32 1.1754944e-38, %v2570_v10  ;;  %v4051_v10 = vrot.slane %v3874_v11, 2 }
 0x1e5   : > { %v2051_v8 = vmul.f32 %v3866_v35, %v3856_v3  ;;  %vm2056_vm2 = vweird.f32 %v3866_v35  ;;  %3149 = vrcp.f32 %v3890_v23 }
 0x1e6   : > { %v1158_v2 = vsel %vm5692_vm0, %v1112_v0, 0.0  ;;  %vm3939_vm5 = vmor %vm2055_vm15, %vm2056_vm2  ;;  %3151 = vrcp.f32 %v3949_v53  ;;  %v1237_v0 = vrot.slane %v3776_v19, 3 }
 0x1e7   : > { %1159 = vadd.xlane.f32.xlu0 %v1158_v2  ;;  %v3876_v13 = vpop.eup %3141  ;;  %v2052_v15 = vsub.f32 1.0, %v2051_v8  ;;  %3153 = vrcp.f32 %v3970_v1 }
 0x1e8   : > { %v2560_v22 = vmul.f32 %v3876_v13, %v3862_v47  ;;  %v3909_v33 = vpop.eup %3143  ;;  %vm2565_vm11 = vweird.f32 %v3876_v13  ;;  %3155 = vrcp.f32 %v3907_v32 }
 0x1e9   : > { %v2053_v26 = vmul.f32 %v3866_v35, %v2052_v15  ;;  %v3918_v40 = vpop.eup %3145  ;;  %vm3996_vm15 = vmor %vm2564_vm10, %vm2565_vm11  ;;  %3157 = vrcp.f32 %v4051_v10 }
 0x1ea   : > { %v2561_v31 = vsub.f32 1.0, %v2560_v22  ;;  %v3944_v28 = vpop.eup %3147  ;;  %v2568_v22 = vand.u32 2147483647, %v3862_v47 }
 0x1eb   : > { %v2054_v43 = vadd.f32 %v3866_v35, %v2053_v26  ;;  %v3963_v61 = vpop.eup %3149  ;;  %v2036_v15 = vmul.f32 %v3944_v28, %v3881_v17  ;;  %v1236_v26 = vrot.slane %v3776_v19, 2 }
 0x1ec   : > { %v2562_v2 = vmul.f32 %v3876_v13, %v2561_v31  ;;  %v4011_v42 = vpop.eup %3151  ;;  %vm2569_vm3 = vcmp.eq.f32.partialorder %v2568_v22, 8.507059e+37  ;;  %v2575_v60 = vmul.f32 %v3963_v61, %v3890_v23 }
 0x1ed   : > { %v2058_v58 = vsel %vm3939_vm5, %v3866_v35, %v2054_v43  ;;  %v1253_v35 = vperm.slane %v1238_v52, 0  ;;  %v1251_v36 = vperm.slane %v1236_v26, 0  ;;  %v4021_v25 = vpop.eup %3153  ;;  %vm2041_vm5 = vweird.f32 %v3944_v28 }
 0x1ee   : > { %v2563_v18 = vadd.f32 %v3876_v13, %v2562_v2  ;;  %v4005_v31 = vsel %vm3965_vm8, %v2062_v59, %v2058_v58  ;;  %v2455_v52 = vmul.f32 %v4011_v42, %v3949_v53  ;;  %v1255_v58 = vperm.slane %v1240_v44, 0 }
 0x1ef   : > { %vm1269_vm14 = vcmp.lt.s32.totalorder %v3913_v34, %v1253_v35  ;;  %v2046_v59 = vand.u32 2147483648, %v3881_v17  ;;  %vm1267_vm8 = vcmp.lt.s32.totalorder %v3913_v34, %v1251_v36  ;;  %v2485_v2 = vmul.f32 %v4021_v25, %v3970_v1 }
 0x1f0   : > { %v2567_v45 = vsel %vm3996_vm15, %v3876_v13, %v2563_v18  ;;  %v2044_v13 = vand.u32 2147483647, %v3881_v17  ;;  %v2576_v26 = vsub.f32 1.0, %v2575_v60 }
 0x1f1   : > { %v4029_v54 = vsel %vm2569_vm3, %v2571_v38, %v2567_v45  ;;  %vm2460_vm3 = vweird.f32 %v4011_v42 }
 0x1f2   : > { %vm4043_vm10 = vcmp.eq.f32.partialorder %v2044_v13, 8.507059e+37  ;;  %v2577_v36 = vmul.f32 %v3963_v61, %v2576_v26  ;;  %v2465_v13 = vand.u32 2147483648, %v3949_v53 }
 0x1f4   : > { %v4115_v7 = vadd.f32 %v3963_v61, %v2577_v36 }
 0x200   : > { %v1115_v41 = vpop.xlane.xlu0 %1114 }
 0x201   : > { %v1165_v48 = vadd.f32 %v3895_v20, %v1115_v41  ;;  %v2037_v41 = vsub.f32 1.0, %v2036_v15 }
 0x202   : > { %v1127_v37 = vpop.xlane.xlu2 %1126 }
 0x203   : > { %v1201_v55 = vmul.f32 %v3911_v39, %v1165_v48  ;;  %v1169_v56 = vadd.f32 %v3895_v20, %v1127_v37  ;;  %vm1181_vm6 = vcmp.gt.f32.partialorder %v1165_v48, 0.0 }
 0x205   : > { %v1217_v62 = vsel %vm1181_vm6, %v1165_v48, %v1201_v55  ;;  %v1205_v5 = vmul.f32 %v3911_v39, %v1169_v56  ;;  %vm1185_vm12 = vcmp.gt.f32.partialorder %v1169_v56, 0.0  ;;  %v2038_v55 = vmul.f32 %v3944_v28, %v2037_v41 }
 0x206   : > { %v1281_v3 = vsel %vm1265_vm7, %v1217_v62, 0.0  ;;  %vm1270_vm7 = vcmp.lt.s32.totalorder %v3913_v34, %v1254_v50  ;;  %v2126_v50 = vmul.f32 %v3918_v40, %v3878_v14 }
 0x207   : > { %1299 = vperm.xlu1 %3128, %v1281_v3   ;;  %v1221_v30 = vsel %vm1185_vm12, %v1169_v56, %v1205_v5  ;;  %v2456_v5 = vsub.f32 1.0, %v2455_v52  ;;  %v2039_v9 = vadd.f32 %v3944_v28, %v2038_v55  ;;  %vm1271_vm12 = vcmp.lt.s32.totalorder %v3913_v34, %v1255_v58  ;;  %v4091_v58 = vpop.eup %3155 }
 0x208   : > { %v1118_v8 = vpop.xlane.xlu0 %1117  ;;  %v1285_v48 = vsel %vm1269_vm14, %v1221_v30, 0.0  ;;  %v2583_v30 = vand.u32 2147483647, %v3890_v23  ;;  %vm2459_vm14 = vweird.f32 %v3949_v53 }
 0x209   : > { %v1166_v16 = vadd.f32 %v3895_v20, %v1118_v8  ;;  %v2440_v8 = vmul.f32 %v3909_v33, %v3874_v11 }
 0x20a   : > { %v1130_v6 = vpop.xlane.xlu2 %1129 }
 0x20b   : > { %v1202_v12 = vmul.f32 %v3911_v39, %v1166_v16  ;;  %v1170_v29 = vadd.f32 %v3895_v20, %v1130_v6  ;;  %vm1182_vm2 = vcmp.gt.f32.partialorder %v1166_v16, 0.0  ;;  %v2486_v6 = vsub.f32 1.0, %v2485_v2 }
 0x20c   : > { %v2441_v44 = vsub.f32 1.0, %v2440_v8 }
 0x20d   : > { %v1218_v43 = vsel %vm1182_vm2, %v1166_v16, %v1202_v12  ;;  %v1206_v37 = vmul.f32 %v3911_v39, %v1170_v29  ;;  %vm1186_vm6 = vcmp.gt.f32.partialorder %v1170_v29, 0.0  ;;  %v1252_v12 = vperm.slane %v1237_v0, 0 }
 0x20e   : > { %v1282_v46 = vsel %vm1266_vm13, %v1218_v43, 0.0  ;;  %vm4063_vm13 = vmor %vm2040_vm4, %vm2041_vm5  ;;  %v2457_v43 = vmul.f32 %v4011_v42, %v2456_v5  ;;  %v2442_v52 = vmul.f32 %v3909_v33, %v2441_v44  ;;  %vm2489_vm4 = vweird.f32 %v3970_v1 }
 0x20f   : > { %1304 = vperm.xlu2 %3127, %v1282_v46   ;;  %1319 = vperm.xlu1 %3128, %v1285_v48   ;;  %v1222_v35 = vsel %vm1186_vm6, %v1170_v29, %v1206_v37  ;;  %v2047_v29 = vor.u32 1.1754944e-38, %v2046_v59  ;;  %v2043_v45 = vsel %vm4063_vm13, %v3944_v28, %v2039_v9  ;;  %v2585_v46 = vand.u32 2147483648, %v3890_v23  ;;  %vm4095_vm6 = vmor %vm2459_vm14, %vm2460_vm3 }
 0x210   : > { %v1121_v51 = vpop.xlane.xlu1 %1120  ;;  %v1286_v18 = vsel %vm1270_vm7, %v1222_v35, 0.0  ;;  %v2487_v48 = vmul.f32 %v4021_v25, %v2486_v6  ;;  %vm1268_vm2 = vcmp.lt.s32.totalorder %v3913_v34, %v1252_v12  ;;  %v2458_v28 = vadd.f32 %v4011_v42, %v2457_v43 }
 0x211   : > { %v1167_v56 = vadd.f32 %v3895_v20, %v1121_v51  ;;  %v2495_v51 = vand.u32 2147483648, %v3970_v1  ;;  %vm2490_vm5 = vweird.f32 %v4021_v25  ;;  %v4101_v0 = vsel %vm4043_vm10, %v2047_v29, %v2043_v45 }
 0x212   : > { %v1133_v62 = vpop.xlane.xlu0 %1132  ;;  %vm2579_vm7 = vweird.f32 %v3890_v23  ;;  %v4105_v2 = vor.u32 1.1754944e-38, %v2585_v46  ;;  %v4112_v35 = vrot.slane %v3878_v14, 1  ;;  %v2466_v5 = vor.u32 1.1754944e-38, %v2465_v13 }
 0x213   : > { %v1203_v3 = vmul.f32 %v3911_v39, %v1167_v56  ;;  %v1171_v4 = vadd.f32 %v3895_v20, %v1133_v62  ;;  %vm1183_vm9 = vcmp.gt.f32.partialorder %v1167_v56, 0.0  ;;  %v2127_v62 = vsub.f32 1.0, %v2126_v50 }
 0x214   : > { %v4126_v9 = vadd.f32 %v3909_v33, %v2442_v52  ;;  %v2496_v6 = vor.u32 1.1754944e-38, %v2495_v51  ;;  %vm2130_vm14 = vweird.f32 %v3878_v14  ;;  %3159 = vrcp.f32 %v4112_v35 }
 0x215   : > { %v1207_v15 = vmul.f32 %v3911_v39, %v1171_v4  ;;  %v1219_v16 = vsel %vm1183_vm9, %v1167_v56, %v1203_v3  ;;  %vm1187_vm11 = vcmp.gt.f32.partialorder %v1171_v4, 0.0  ;;  %v2463_v56 = vand.u32 2147483647, %v3949_v53  ;;  %v4107_v3 = vpop.eup %3157  ;;  %vm4121_vm9 = vmor %vm2489_vm4, %vm2490_vm5 }
 0x216   : > { %v1283_v22 = vsel %vm1267_vm8, %v1219_v16, 0.0  ;;  %vm2580_vm8 = vweird.f32 %v3963_v61  ;;  %v2488_v53 = vadd.f32 %v4021_v25, %v2487_v48  ;;  %v4130_v16 = vrot.slane %v3878_v14, 2 }
 0x217   : > { %1324 = vperm.xlu2 %3127, %v1286_v18   ;;  %1309 = vperm.xlu0 %3129, %v1283_v22   ;;  %v1223_v27 = vsel %vm1187_vm11, %v1171_v4, %v1207_v15  ;;  %v2493_v4 = vand.u32 2147483647, %v3970_v1  ;;  %v2450_v15 = vand.u32 2147483648, %v3874_v11  ;;  %v1257_v18 = vperm.slane %v3779_v21, 0 }
 0x218   : > { %v1124_v38 = vpop.xlane.xlu1 %1123  ;;  %v1287_v41 = vsel %vm1271_vm12, %v1223_v27, 0.0  ;;  %v2462_v22 = vsel %vm4095_vm6, %v4011_v42, %v2458_v28  ;;  %vm4136_vm10 = vcmp.eq.f32.partialorder %v2463_v56, 8.507059e+37  ;;  %vm2444_vm11 = vweird.f32 %v3874_v11 }
 0x219   : > { %v1168_v17 = vadd.f32 %v3895_v20, %v1124_v38  ;;  %1329 = vperm.xlu1 %3128, %v1287_v41   ;;  %vm2445_vm12 = vweird.f32 %v3909_v33  ;;  %v2128_v26 = vmul.f32 %v3918_v40, %v2127_v62  ;;  %v2470_v27 = vmul.f32 %v4107_v3, %v4051_v10 }
 0x21a   : > { %v2492_v42 = vsel %vm4121_vm9, %v4021_v25, %v2488_v53  ;;  %vm4149_vm13 = vcmp.eq.f32.partialorder %v2493_v4, 8.507059e+37  ;;  %v2448_v38 = vand.u32 2147483647, %v3874_v11  ;;  %v2134_v41 = vand.u32 2147483647, %v3878_v14  ;;  %vm4169_vm4 = vmor %vm2444_vm11, %vm2445_vm12 }
 0x21b   : > { %v1204_v37 = vmul.f32 %v3911_v39, %v1168_v17  ;;  %vm1184_vm15 = vcmp.gt.f32.partialorder %v1168_v17, 0.0  ;;  %vm4160_vm3 = vcmp.lt.s32.totalorder %v3913_v34, %v1257_v18  ;;  %v1242_v44 = vrot.slane %v3779_v21, 1  ;;  %vm4223_vm12 = vmor %vm2579_vm7, %vm2580_vm8 }
 0x21c   : > { %vm4175_vm5 = vcmp.eq.f32.partialorder %v2583_v30, 8.507059e+37  ;;  %v2129_v46 = vadd.f32 %v3918_v40, %v2128_v26  ;;  %v2471_v48 = vsub.f32 1.0, %v2470_v27  ;;  %3161 = vrcp.f32 %v4130_v16 }
 0x21d   : > { %v1220_v55 = vsel %vm1184_vm15, %v1168_v17, %v1204_v37  ;;  %vm2131_vm15 = vweird.f32 %v3918_v40  ;;  %v4182_v50 = vrot.slane %v3878_v14, 3  ;;  %v4186_v37 = vsel %vm4136_vm10, %v2466_v5, %v2462_v22 }
 0x21e   : > { %v1284_v59 = vsel %vm1268_vm2, %v1220_v55, 0.0  ;;  %vm4192_vm6 = vmor %vm2130_vm14, %vm2131_vm15  ;;  %v2136_v28 = vand.u32 2147483648, %v3878_v14  ;;  %v4198_v13 = vrot.slane %v3862_v47, 3  ;;  %v4204_v52 = vsel %vm4149_vm13, %v2496_v6, %v2492_v42 }
 0x21f   : > { %1314 = vperm.xlu2 %3127, %v1284_v59   ;;  %v2447_v55 = vsel %vm4169_vm4, %v3909_v33, %v4126_v9  ;;  %v2451_v56 = vor.u32 1.1754944e-38, %v2450_v15  ;;  %v1258_v59 = vperm.slane %v1242_v44, 0  ;;  %vm4210_vm9 = vcmp.eq.f32.partialorder %v2448_v38, 8.507059e+37  ;;  %v4227_v33 = vpop.eup %3159 }
 0x220   : > { %vm4214_vm10 = vcmp.eq.f32.partialorder %v2134_v41, 8.507059e+37  ;;  %vm2474_vm11 = vweird.f32 %v4051_v10  ;;  %v4229_v4 = vpop.xlane.xlu1 %1135  ;;  %v2133_v8 = vsel %vm4192_vm6, %v3918_v40, %v2129_v46  ;;  %v2472_v9 = vmul.f32 %v4107_v3, %v2471_v48 }
 0x221   : > { %v2590_v15 = vmul.f32 %v4091_v58, %v3907_v32  ;;  %3163 = vrcp.f32 %v4182_v50  ;;  %v2137_v18 = vor.u32 1.1754944e-38, %v2136_v28  ;;  %vm2475_vm7 = vweird.f32 %v4107_v3 }
 0x222   : > { %v1139_v24 = vpop.xlane.xlu2 %1138  ;;  %3165 = vrcp.f32 %v4198_v13  ;;  %v4241_v22 = vpop.eup %3161  ;;  %v2478_v1 = vand.u32 2147483647, %v4051_v10  ;;  %v2480_v40 = vand.u32 2147483648, %v4051_v10  ;;  %v2151_v6 = vand.u32 2147483648, %v4112_v35  ;;  %vm4269_vm15 = vmor %vm2474_vm11, %vm2475_vm7 }
 0x223   : > { %v1173_v12 = vadd.f32 %v3895_v20, %v1139_v24  ;;  %v2582_v24 = vsel %vm4223_vm12, %v3963_v61, %v4115_v7  ;;  %vm2594_vm8 = vweird.f32 %v3907_v32  ;;  %vm1274_vm14 = vcmp.lt.s32.totalorder %v3913_v34, %v1258_v59 }
 0x224   : > { %v1243_v27 = vrot.slane %v3779_v21, 2  ;;  %v2473_v42 = vadd.f32 %v4107_v3, %v2472_v9  ;;  %v2141_v29 = vmul.f32 %v4227_v33, %v4112_v35  ;;  %v2591_v38 = vsub.f32 1.0, %v2590_v15 }
 0x225   : > { %v1209_v43 = vmul.f32 %v3911_v39, %v1173_v12  ;;  %vm1189_vm2 = vcmp.gt.f32.partialorder %v1173_v12, 0.0  ;;  %v4263_v7 = vsel %vm4214_vm10, %v2137_v18, %v2133_v8  ;;  %v2156_v25 = vmul.f32 %v4241_v22, %v4130_v16 }
 0x226   : > { %v2481_v48 = vor.u32 1.1754944e-38, %v2480_v40  ;;  %v4286_v10 = vsel %vm4175_vm5, %v4105_v2, %v2582_v24  ;;  %v1259_v30 = vperm.slane %v1243_v27, 0  ;;  %v4290_v28 = vor.u32 1.1754944e-38, %v2151_v6 }
 0x227   : > { %v1225_v36 = vsel %vm1189_vm2, %v1173_v12, %v1209_v43  ;;  %v4256_v12 = vsel %vm4210_vm9, %v2451_v56, %v2447_v55  ;;  %v2149_v43 = vand.u32 2147483647, %v4112_v35  ;;  %v4276_v44 = vpop.eup %3163  ;;  %vm4278_vm2 = vcmp.eq.f32.partialorder %v2478_v1, 8.507059e+37 }
 0x228   : > { %v1289_v51 = vsel %vm4160_vm3, %v1225_v36, 0.0  ;;  %vm2145_vm3 = vweird.f32 %v4112_v35  ;;  %v4288_v36 = vpop.eup %3165  ;;  %vm2160_vm4 = vweird.f32 %v4130_v16  ;;  %v2477_v56 = vsel %vm4269_vm15, %v4107_v3, %v2473_v42 }
 0x229   : > { %1339 = vperm.xlu2 %3127, %v1289_v51   ;;  %v2164_v51 = vand.u32 2147483647, %v4130_v16  ;;  %v2142_v59 = vsub.f32 1.0, %v2141_v29  ;;  %v2166_v45 = vand.u32 2147483648, %v4130_v16  ;;  %v2592_v2 = vmul.f32 %v4091_v58, %v2591_v38 }
 0x22a   : > { %v1142_v5 = vpop.xlane.xlu0 %1141  ;;  %v2157_v62 = vsub.f32 1.0, %v2156_v25  ;;  %vm2595_vm5 = vweird.f32 %v4091_v58  ;;  %v2598_v53 = vand.u32 2147483647, %v3907_v32  ;;  %v2171_v8 = vmul.f32 %v4276_v44, %v4182_v50 }
 0x22b   : > { %v1174_v23 = vadd.f32 %v3895_v20, %v1142_v5  ;;  %v2600_v5 = vand.u32 2147483648, %v3907_v32  ;;  %v2605_v3 = vmul.f32 %v4288_v36, %v4198_v13  ;;  %v4308_v9 = vrot.slane %v3874_v11, 4  ;;  %vm4332_vm7 = vmor %vm2594_vm8, %vm2595_vm5 }
 0x22c   : > { %vm1275_vm9 = vcmp.lt.s32.totalorder %v3913_v34, %v1259_v30  ;;  %v4315_v18 = vsel %vm4278_vm2, %v2481_v48, %v2477_v56  ;;  %v2143_v1 = vmul.f32 %v4227_v33, %v2142_v59  ;;  %v4318_v40 = vor.u32 1.1754944e-38, %v2166_v45 }
 0x22d   : > { %v1210_v26 = vmul.f32 %v3911_v39, %v1174_v23  ;;  %vm1190_vm13 = vcmp.gt.f32.partialorder %v1174_v23, 0.0  ;;  %v2593_v6 = vadd.f32 %v4091_v58, %v2592_v2  ;;  %vm2146_vm10 = vweird.f32 %v4227_v33 }
 0x22e   : > { %vm4322_vm11 = vcmp.eq.f32.partialorder %v2149_v43, 8.507059e+37  ;;  %v2158_v27 = vmul.f32 %v4241_v22, %v2157_v62  ;;  %vm2161_vm12 = vweird.f32 %v4241_v22  ;;  %v2172_v41 = vsub.f32 1.0, %v2171_v8  ;;  %vm4358_vm8 = vmor %vm2145_vm3, %vm2146_vm10 }
 0x22f   : > { %v1226_v61 = vsel %vm1190_vm13, %v1174_v23, %v1210_v26  ;;  %v1244_v23 = vrot.slane %v3779_v21, 3  ;;  %vm4336_vm13 = vcmp.eq.f32.partialorder %v2164_v51, 8.507059e+37  ;;  %v2606_v43 = vsub.f32 1.0, %v2605_v3  ;;  %vm4368_vm5 = vmor %vm2160_vm4, %vm2161_vm12 }
 0x230   : > { %v1290_v17 = vsel %vm1274_vm14, %v1226_v61, 0.0  ;;  %vm4340_vm14 = vcmp.eq.f32.partialorder %v2598_v53, 8.507059e+37  ;;  %vm2175_vm15 = vweird.f32 %v4182_v50  ;;  %3167 = vrcp.f32 %v4308_v9 }
 0x231   : > { %1344 = vperm.xlu1 %3128, %v1290_v17   ;;  %v1260_v25 = vperm.slane %v1244_v23, 0  ;;  %v2601_v17 = vor.u32 1.1754944e-38, %v2600_v5  ;;  %v2144_v46 = vadd.f32 %v4227_v33, %v2143_v1  ;;  %v2597_v48 = vsel %vm4332_vm7, %v4091_v58, %v2593_v6 }
 0x232   : > { %v1145_v55 = vpop.xlane.xlu1 %1144  ;;  %v2179_v30 = vand.u32 2147483647, %v4182_v50  ;;  %v2181_v51 = vand.u32 2147483648, %v4182_v50  ;;  %v1241_v56 = vrot.slane %v3776_v19, 7  ;;  %v2159_v45 = vadd.f32 %v4241_v22, %v2158_v27 }
 0x233   : > { %v1175_v60 = vadd.f32 %v3895_v20, %v1145_v55  ;;  %vm2176_vm2 = vweird.f32 %v4276_v44  ;;  %v2173_v19 = vmul.f32 %v4276_v44, %v2172_v41  ;;  %v2607_v35 = vmul.f32 %v4288_v36, %v2606_v43 }
 0x234   : > { %v4375_v2 = vrot.slane %v3874_v11, 5  ;;  %v1245_v16 = vrot.slane %v3779_v21, 4  ;;  %v2148_v53 = vsel %vm4358_vm8, %v4227_v33, %v2144_v46  ;;  %v4388_v5 = vsel %vm4340_vm14, %v2601_v17, %v2597_v48  ;;  %vm4404_vm10 = vmor %vm2175_vm15, %vm2176_vm2  ;;  %v4457_v48 = vld [vmem:[%s3772_s22 + $0x8] sm:$0xff] }
 0x235   : > { %v1211_v15 = vmul.f32 %v3911_v39, %v1175_v60  ;;  %vm1191_vm6 = vcmp.gt.f32.partialorder %v1175_v60, 0.0  ;;  %vm2609_vm4 = vweird.f32 %v4198_v13  ;;  %v2613_v21 = vand.u32 2147483647, %v4198_v13 }
 0x236   : > { %v4392_v8 = vpop.eup %3167  ;;  %v2615_v23 = vand.u32 2147483648, %v4198_v13  ;;  %v2174_v1 = vadd.f32 %v4276_v44, %v2173_v19  ;;  %3169 = vrcp.f32 %v4375_v2  ;;  %v4410_v27 = vperm.slane %v1241_v56, 0 }
 0x237   : > { %v1227_v24 = vsel %vm1191_vm6, %v1175_v60, %v1211_v15  ;;  %v4378_v60 = vrot.slane %v3874_v11, 6  ;;  %vm1276_vm6 = vcmp.lt.s32.totalorder %v3913_v34, %v1260_v25  ;;  %v2163_v15 = vsel %vm4368_vm5, %v4241_v22, %v2159_v45 }
 0x238   : > { %v1291_v29 = vsel %vm1275_vm9, %v1227_v24, 0.0  ;;  %vm2610_vm9 = vweird.f32 %v4288_v36  ;;  %v2608_v24 = vadd.f32 %v4288_v36, %v2607_v35  ;;  %v1261_v22 = vperm.slane %v1245_v16, 0 }
 0x239   : > { %1349 = vperm.xlu0 %3129, %v1291_v29   ;;  %vm4412_vm12 = vcmp.eq.f32.partialorder %v2179_v30, 8.507059e+37  ;;  %vm4420_vm7 = vmor %vm2609_vm4, %vm2610_vm9  ;;  %3171 = vrcp.f32 %v4378_v60  ;;  %v4428_v61 = vsel %vm4322_vm11, %v4290_v28, %v2148_v53  ;;  %v2182_v41 = vor.u32 1.1754944e-38, %v2181_v51 }
 0x23a   : > { %v1148_v32 = vpop.xlane.xlu2 %1147  ;;  %v4431_v43 = vrot.slane %v3874_v11, 7  ;;  %v2500_v13 = vmul.f32 %v4392_v8, %v4308_v9  ;;  %v4439_v17 = vsel %vm4336_vm13, %v4318_v40, %v2163_v15  ;;  %vm4441_vm14 = vcmp.eq.f32.partialorder %v2613_v21, 8.507059e+37 }
 0x23b   : > { %v1176_v55 = vadd.f32 %v3895_v20, %v1148_v32  ;;  %v2510_v28 = vand.u32 2147483648, %v4308_v9  ;;  %v1172_v11 = vadd.f32 %v3895_v20, %v4229_v4  ;;  %v2178_v26 = vsel %vm4404_vm10, %v4276_v44, %v2174_v1 }
 0x23c   : > { %v2612_v46 = vsel %vm4420_vm7, %v4288_v36, %v2608_v24  ;;  %v2616_v38 = vor.u32 1.1754944e-38, %v2615_v23  ;;  %vm1277_vm13 = vcmp.lt.s32.totalorder %v3913_v34, %v1261_v22  ;;  %v1246_v30 = vrot.slane %v4457_v48, 5  ;;  %v4462_v4 = vpop.eup %3169 }
 0x23d   : > { %v1212_v62 = vmul.f32 %v3911_v39, %v1176_v55  ;;  %vm1192_vm3 = vcmp.gt.f32.partialorder %v1176_v55, 0.0  ;;  %vm1272_vm15 = vcmp.lt.s32.totalorder %v3913_v34, %v4410_v27  ;;  %v2501_v44 = vsub.f32 1.0, %v2500_v13 }
 0x23e   : > { %vm2504_vm8 = vweird.f32 %v4308_v9  ;;  %v2508_v36 = vand.u32 2147483647, %v4308_v9  ;;  %3173 = vrcp.f32 %v4431_v43  ;;  %v4471_v56 = vsel %vm4412_vm12, %v2182_v41, %v2178_v26 }
 0x23f   : > { %v1228_v3 = vsel %vm1192_vm3, %v1176_v55, %v1212_v62  ;;  %v4467_v51 = vpop.eup %3171  ;;  %v4473_v59 = vor.u32 1.1754944e-38, %v2510_v28  ;;  %v2525_v45 = vand.u32 2147483648, %v4375_v2  ;;  %v4478_v19 = vsel %vm4441_vm14, %v2616_v38, %v2612_v46 }
 0x240   : > { %v1292_v33 = vsel %vm1276_vm6, %v1228_v3, 0.0  ;;  %v2523_v35 = vand.u32 2147483647, %v4375_v2  ;;  %v4482_v62 = vrot.slane %v3850_v63, 4  ;;  %v1208_v16 = vmul.f32 %v3911_v39, %v1172_v11 }
 0x241   : > { %1354 = vperm.xlu1 %3128, %v1292_v33   ;;  %v1262_v53 = vperm.slane %v1246_v30, 0  ;;  %vm1508_vm2 = vcmp.lt.s32.totalorder %v4457_v48, 2  ;;  %v2515_v3 = vmul.f32 %v4462_v4, %v4375_v2  ;;  %vm1188_vm5 = vcmp.gt.f32.partialorder %v1172_v11, 0.0 }
 0x242   : > { %v1151_v29 = vpop.xlane.xlu0 %1150  ;;  %v2502_v21 = vmul.f32 %v4392_v8, %v2501_v44  ;;  %v2530_v23 = vmul.f32 %v4467_v51, %v4378_v60  ;;  %v4492_v33 = vrot.slane %v3850_v63, 5  ;;  %vm2505_vm3 = vweird.f32 %v4392_v8 }
 0x243   : > { %v1177_v25 = vadd.f32 %v3895_v20, %v1151_v29  ;;  %v4496_v6 = vor.u32 1.1754944e-38, %v2525_v45  ;;  %v4499_v24 = vrot.slane %v3850_v63, 6  ;;  %v1247_v42 = vrot.slane %v4457_v48, 6 }
 0x244   : > { %v4501_v22 = vpop.eup %3173  ;;  %v1509_v50 = vsel %vm1508_vm2, %v4457_v48, 2  ;;  %vm2519_vm6 = vweird.f32 %v4375_v2  ;;  %v2540_v29 = vand.u32 2147483648, %v4378_v60  ;;  %3175 = vrcp.f32 %v4482_v62 }
 0x245   : > { %v1213_v40 = vmul.f32 %v3911_v39, %v1177_v25  ;;  %vm1193_vm11 = vcmp.gt.f32.partialorder %v1177_v25, 0.0  ;;  %vm1278_vm9 = vcmp.lt.s32.totalorder %v3913_v34, %v1262_v53  ;;  %v1224_v13 = vsel %vm1188_vm5, %v1172_v11, %v1208_v16 }
 0x246   : > { %vm2534_vm10 = vweird.f32 %v4378_v60  ;;  %vm4513_vm12 = vcmp.eq.f32.partialorder %v2508_v36, 8.507059e+37  ;;  %v2516_v28 = vsub.f32 1.0, %v2515_v3  ;;  %v2531_v26 = vsub.f32 1.0, %v2530_v23  ;;  %v3232_v36 = vld [vmem:[%s3772_s22] sm:$0xff] }
 0x247   : > { %v1229_v55 = vsel %vm1193_vm11, %v1177_v25, %v1213_v40  ;;  %v2503_v25 = vadd.f32 %v4392_v8, %v2502_v21  ;;  %3177 = vrcp.f32 %v4492_v33  ;;  %vm1512_vm7 = vcmp.gt.s32.totalorder %v1509_v50, 1  ;;  %vm4532_vm11 = vmor %vm2504_vm8, %vm2505_vm3 }
 0x248   : > { %v1293_v58 = vsel %vm1277_vm13, %v1229_v55, 0.0  ;;  %v2545_v38 = vmul.f32 %v4501_v22, %v4431_v43  ;;  %3179 = vrcp.f32 %v4499_v24  ;;  %v1288_v40 = vsel %vm1272_vm15, %v1224_v13, 0.0 }
 0x249   : > { %1359 = vperm.xlu0 %3129, %v1293_v58   ;;  %v1263_v30 = vperm.slane %v1247_v42, 0  ;;  %v4525_v44 = vrot.slane %v3850_v63, 7  ;;  %vm1506_vm14 = vcmp.lt.s32.totalorder %v3232_v36, 2  ;;  %vm2520_vm13 = vweird.f32 %v4462_v4 }
 0x24a   : > { %v1154_v15 = vpop.xlane.xlu1 %1153  ;;  %v2538_v27 = vand.u32 2147483647, %v4378_v60  ;;  %v4538_v45 = vor.u32 1.1754944e-38, %v2540_v29  ;;  %v4540_v63 = vpop.eup %3175  ;;  %v1513_v16 = vsel %vm1512_vm7, %v1509_v50, 1  ;;  %v2517_v53 = vmul.f32 %v4462_v4, %v2516_v28  ;;  %vm4579_vm7 = vmor %vm2519_vm6, %vm2520_vm13 }
 0x24b   : > { %v1178_v1 = vadd.f32 %v3895_v20, %v1154_v15  ;;  %v2532_v3 = vmul.f32 %v4467_v51, %v2531_v26  ;;  %vm2535_vm15 = vweird.f32 %v4467_v51  ;;  %vm4547_vm8 = vcmp.eq.f32.partialorder %v2523_v35, 8.507059e+37 }
 0x24c   : > { %v2546_v21 = vsub.f32 1.0, %v2545_v38  ;;  %vm2549_vm2 = vweird.f32 %v4431_v43  ;;  %v2553_v23 = vand.u32 2147483647, %v4431_v43  ;;  %vm1279_vm5 = vcmp.lt.s32.totalorder %v3913_v34, %v1263_v30 }
 0x24d   : > { %v1214_v41 = vmul.f32 %v3911_v39, %v1178_v1  ;;  %vm1194_vm4 = vcmp.gt.f32.partialorder %v1178_v1, 0.0  ;;  %v1507_v42 = vsel %vm1506_vm14, %v3232_v36, 2  ;;  %v2507_v50 = vsel %vm4532_vm11, %v4392_v8, %v2503_v25  ;;  %vm4592_vm14 = vmor %vm2534_vm10, %vm2535_vm15 }
 0x24e   : > { %3181 = vrcp.f32 %v4525_v44  ;;  %v1248_v13 = vrot.slane %v4457_v48, 7  ;;  %v2518_v26 = vadd.f32 %v4462_v4, %v2517_v53  ;;  %v2555_v8 = vand.u32 2147483648, %v4431_v43 }
 0x24f   : > { %v1230_v46 = vsel %vm1194_vm4, %v1178_v1, %v1214_v41  ;;  %v4553_v1 = vpop.eup %3177  ;;  %v1515_v41 = vcvt.s32.f32 %v1513_v16  ;;  %vm4565_vm4 = vcmp.eq.f32.partialorder %v2538_v27, 8.507059e+37  ;;  %v4573_v25 = vrot.slane %v3878_v14, 4 }
 0x250   : > { %v1294_v11 = vsel %vm1278_vm9, %v1230_v46, 0.0  ;;  %v4561_v35 = vpop.eup %3179  ;;  %v2533_v46 = vadd.f32 %v4467_v51, %v2532_v3  ;;  %vm1510_vm9 = vcmp.gt.s32.totalorder %v1507_v42, 1  ;;  %v2081_v2 = vmul.f32 %v4553_v1, %v4492_v33 }
 0x251   : > { %1364 = vperm.xlu2 %3127, %v1294_v11   ;;  %1334 = vperm.xlu0 %3129, %v1288_v40   ;;  %v2547_v11 = vmul.f32 %v4501_v22, %v2546_v21  ;;  %v2066_v40 = vmul.f32 %v4540_v63, %v4482_v62  ;;  %v2096_v27 = vmul.f32 %v4561_v35, %v4499_v24  ;;  %v1264_v30 = vperm.slane %v1248_v13, 0 }
 0x252   : > { %v1157_v58 = vpop.xlane.xlu2 %1156  ;;  %v4606_v60 = vsel %vm4513_vm12, %v4473_v59, %v2507_v50  ;;  %vm2550_vm6 = vweird.f32 %v4501_v22  ;;  %vm4609_vm10 = vcmp.eq.f32.partialorder %v2553_v23, 8.507059e+37  ;;  %v2522_v21 = vsel %vm4579_vm7, %v4462_v4, %v2518_v26 }
 0x253   : > { %v1179_v9 = vadd.f32 %v3895_v20, %v1157_v58  ;;  %v4601_v58 = vrot.slane %v3878_v14, 5  ;;  %3183 = vrcp.f32 %v4573_v25  ;;  %v2537_v32 = vsel %vm4592_vm14, %v4467_v51, %v2533_v46  ;;  %vm4635_vm13 = vmor %vm2549_vm2, %vm2550_vm6 }
 0x254   : > { %v4613_v53 = vpop.eup %3181  ;;  %v2067_v23 = vsub.f32 1.0, %v2066_v40  ;;  %v4625_v50 = vrot.slane %v3878_v14, 6  ;;  %v2097_v13 = vsub.f32 1.0, %v2096_v27  ;;  %vm1280_vm11 = vcmp.lt.s32.totalorder %v3913_v34, %v1264_v30 }
 0x255   : > { %v1215_v29 = vmul.f32 %v3911_v39, %v1179_v9  ;;  %vm1195_vm3 = vcmp.gt.f32.partialorder %v1179_v9, 0.0  ;;  %3185 = vrcp.f32 %v4601_v58  ;;  %v4642_v51 = vsel %vm4547_vm8, %v4496_v6, %v2522_v21 }
 0x256   : > { %vm2070_vm15 = vweird.f32 %v4482_v62  ;;  %v4648_v34 = vrot.slane %v3878_v14, 7  ;;  %v2068_v43 = vmul.f32 %v4540_v63, %v2067_v23  ;;  %3187 = vrcp.f32 %v4625_v50 }
 0x257   : > { %v1231_v38 = vsel %vm1195_vm3, %v1179_v9, %v1215_v29  ;;  %v1511_v9 = vsel %vm1510_vm9, %v1507_v42, 1  ;;  %v2556_v29 = vor.u32 1.1754944e-38, %v2555_v8  ;;  %v2082_v42 = vsub.f32 1.0, %v2081_v2 }
 0x258   : > { %v1295_v36 = vsel %vm1279_vm5, %v1231_v38, 0.0  ;;  %v1514_v26 = vcvt.s32.f32 %v1511_v9  ;;  %v2074_v8 = vand.u32 2147483647, %v4482_v62  ;;  %v4658_v6 = vsel %vm4565_vm4, %v4538_v45, %v2537_v32 }
 0x259   : > { %1369 = vperm.xlu1 %3128, %v1295_v36   ;;  %1522 = vperm.xlu0 %3129, %v1515_v41   ;;  %v2548_v41 = vadd.f32 %v4501_v22, %v2547_v11  ;;  %v4653_v38 = vpop.eup %3183  ;;  %v2076_v48 = vand.u32 2147483648, %v4482_v62  ;;  %vm2071_vm8 = vweird.f32 %v4540_v63  ;;  %v2083_v11 = vmul.f32 %v4553_v1, %v2082_v42 }
 0x25a   : > { %v1160_v3 = vpop.xlane.xlu0 %1159  ;;  %vm2085_vm2 = vweird.f32 %v4492_v33  ;;  %v2098_v40 = vmul.f32 %v4561_v35, %v2097_v13  ;;  %vm2086_vm5 = vweird.f32 %v4553_v1  ;;  %v2091_v45 = vand.u32 2147483648, %v4492_v33  ;;  %vm4684_vm9 = vmor %vm2070_vm15, %vm2071_vm8 }
 0x25b   : > { %v1180_v59 = vadd.f32 %v3895_v20, %v1160_v3  ;;  %v2552_v14 = vsel %vm4635_vm13, %v4501_v22, %v2548_v41  ;;  %v4668_v36 = vpop.eup %3185  ;;  %3189 = vrcp.f32 %v4648_v34  ;;  %v2069_v22 = vadd.f32 %v4540_v63, %v2068_v43  ;;  %vm4700_vm14 = vmor %vm2085_vm2, %vm2086_vm5 }
 0x25c   : > { %vm2100_vm3 = vweird.f32 %v4499_v24  ;;  %vm2101_vm4 = vweird.f32 %v4561_v35  ;;  %v2186_v55 = vmul.f32 %v4653_v38, %v4573_v25  ;;  %v4680_v2 = vsel %vm4609_vm10, %v2556_v29, %v2552_v14  ;;  %v4693_v21 = vpop.eup %3187 }
 0x25d   : > { %v1216_v4 = vmul.f32 %v3911_v39, %v1180_v59  ;;  %vm1196_vm12 = vcmp.gt.f32.partialorder %v1180_v59, 0.0  ;;  %v2111_v39 = vmul.f32 %v4613_v53, %v4525_v44  ;;  %vm4688_vm7 = vcmp.eq.f32.partialorder %v2074_v8, 8.507059e+37  ;;  %vm4709_vm6 = vmor %vm2100_vm3, %vm2101_vm4 }
 0x25e   : > { %v2077_v3 = vor.u32 1.1754944e-38, %v2076_v48  ;;  %v2106_v9 = vand.u32 2147483648, %v4499_v24  ;;  %v2089_v16 = vand.u32 2147483647, %v4492_v33  ;;  %v2099_v29 = vadd.f32 %v4561_v35, %v2098_v40 }
 0x25f   : > { %v1232_v46 = vsel %vm1196_vm12, %v1180_v59, %v1216_v4  ;;  %v2112_v28 = vsub.f32 1.0, %v2111_v39  ;;  %v2084_v59 = vadd.f32 %v4553_v1, %v2083_v11  ;;  %v2104_v32 = vand.u32 2147483647, %v4499_v24 }
 0x260   : > { %v1296_v15 = vsel %vm1280_vm11, %v1232_v46, 0.0  ;;  %v2092_v23 = vor.u32 1.1754944e-38, %v2091_v45  ;;  %v2121_v13 = vand.u32 2147483648, %v4525_v44  ;;  %v2201_v4 = vmul.f32 %v4668_v36, %v4601_v58 }
 0x261   : > { %1518 = vperm.xlu1 %3128, %v1514_v26   ;;  %1374 = vperm.xlu2 %3127, %v1296_v15   ;;  %v2113_v42 = vmul.f32 %v4613_v53, %v2112_v28  ;;  %v2073_v33 = vsel %vm4684_vm9, %v4540_v63, %v2069_v22  ;;  %vm2115_vm10 = vweird.f32 %v4525_v44  ;;  %v2187_v26 = vsub.f32 1.0, %v2186_v55  ;;  %v4724_v20 = vpop.eup %3189 }
 0x262   : > { %v4722_v24 = vrot.slane %v3862_v47, 4  ;;  %v2107_v39 = vor.u32 1.1754944e-38, %v2106_v9  ;;  %vm2116_vm12 = vweird.f32 %v4613_v53  ;;  %v2119_v46 = vand.u32 2147483647, %v4525_v44 }
 0x263   : > { %v2216_v43 = vmul.f32 %v4693_v21, %v4625_v50  ;;  %v2088_v63 = vsel %vm4700_vm14, %v4553_v1, %v2084_v59  ;;  %vm2090_vm11 = vcmp.eq.f32.partialorder %v2089_v16, 8.507059e+37  ;;  %v2103_v15 = vsel %vm4709_vm6, %v4561_v35, %v2099_v29  ;;  %vm4745_vm15 = vmor %vm2115_vm10, %vm2116_vm12  ;;  %v3233_v59 = vld [vmem:[%s3566_s30 + $0x8] sm:$0xff] }
 0x264   : > { %vm2105_vm13 = vcmp.eq.f32.partialorder %v2104_v32, 8.507059e+37  ;;  %v4738_v14 = vsel %vm4688_vm7, %v2077_v3, %v2073_v33  ;;  %v4741_v48 = vadd.f32 %v4613_v53, %v2113_v42  ;;  %v2122_v11 = vor.u32 1.1754944e-38, %v2121_v13 }
 0x265   : > { %v2202_v40 = vsub.f32 1.0, %v2201_v4  ;;  %v2188_v45 = vmul.f32 %v4653_v38, %v2187_v26  ;;  %v2194_v35 = vand.u32 2147483647, %v4573_v25  ;;  %v2231_v28 = vmul.f32 %v4724_v20, %v4648_v34 }
 0x266   : > { %3191 = vrcp.f32 %v4722_v24  ;;  %v4754_v22 = vsel %vm2090_vm11, %v2092_v23, %v2088_v63  ;;  %v4756_v55 = vsel %vm2105_vm13, %v2107_v39, %v2103_v15  ;;  %vm4758_vm8 = vcmp.eq.f32.partialorder %v2119_v46, 8.507059e+37 }
 0x267   : > { %v2217_v44 = vsub.f32 1.0, %v2216_v43  ;;  %v4763_v30 = vrot.slane %v3862_v47, 5  ;;  %vm2190_vm2 = vweird.f32 %v4573_v25  ;;  %vm2191_vm5 = vweird.f32 %v4653_v38 }
 0x268   : > { %v2196_v3 = vand.u32 2147483648, %v4573_v25  ;;  %v4769_v9 = vrot.slane %v3862_v47, 6  ;;  %v2118_v16 = vsel %vm4745_vm15, %v4613_v53, %v4741_v48  ;;  %v2203_v29 = vmul.f32 %v4668_v36, %v2202_v40  ;;  %vm4788_vm9 = vmor %vm2190_vm2, %vm2191_vm5 }
 0x269   : > { %v1305_v8 = vpop.permute.xlu2 %1304  ;;  %v4780_v32 = vrot.slane %v3862_v47, 7  ;;  %v2189_v23 = vadd.f32 %v4653_v38, %v2188_v45  ;;  %vm4783_vm3 = vcmp.eq.f32.partialorder %v2194_v35, 8.507059e+37  ;;  %v2209_v41 = vand.u32 2147483647, %v4601_v58 }
 0x26a   : > { %v4772_v62 = vmul.f32 %v3233_v59, %v1305_v8  ;;  %v2232_v42 = vsub.f32 1.0, %v2231_v28  ;;  %vm1842_vm4 = vcmask 256000   ;;  %vm2205_vm7 = vweird.f32 %v4601_v58 }
 0x26b   : > { %vm2206_vm14 = vweird.f32 %v4668_v36  ;;  %v2218_v47 = vmul.f32 %v4693_v21, %v2217_v44  ;;  %v2197_v33 = vor.u32 1.1754944e-38, %v2196_v3  ;;  %v2211_v26 = vand.u32 2147483648, %v4601_v58 }
 0x26c   : > { %v4795_v53 = vpop.eup %3191  ;;  %vm2220_vm6 = vweird.f32 %v4625_v50  ;;  %3193 = vrcp.f32 %v4763_v30  ;;  %v1811_v39 = vrot.slane %v4772_v62, 2  ;;  %v2204_v46 = vadd.f32 %v4668_v36, %v2203_v29  ;;  %vm4809_vm12 = vmor %vm2205_vm7, %vm2206_vm14 }
 0x26d   : > { %vm2221_vm10 = vweird.f32 %v4693_v21  ;;  %3195 = vrcp.f32 %v4769_v9  ;;  %v2193_v43 = vsel %vm4788_vm9, %v4653_v38, %v2189_v23  ;;  %vm4813_vm11 = vcmp.eq.f32.partialorder %v2209_v41, 8.507059e+37 }
 0x26e   : > { %v2226_v63 = vand.u32 2147483648, %v4625_v50  ;;  %v2233_v15 = vmul.f32 %v4724_v20, %v2232_v42  ;;  %v2246_v48 = vrot.slane %v4772_v62, 5  ;;  %v2219_v40 = vadd.f32 %v4693_v21, %v2218_v47  ;;  %vm4826_vm13 = vmor %vm2220_vm6, %vm2221_vm10 }
 0x26f   : > { %v2224_v1 = vand.u32 2147483647, %v4625_v50  ;;  %v2620_v38 = vmul.f32 %v4795_v53, %v4722_v24  ;;  %v2212_v45 = vor.u32 1.1754944e-38, %v2211_v26  ;;  %vm2235_vm15 = vweird.f32 %v4648_v34 }
 0x270   : > { %vm2236_vm2 = vweird.f32 %v4724_v20  ;;  %3197 = vrcp.f32 %v4780_v32  ;;  %v1850_v28 = vsel %vm1842_vm4, %v1811_v39, 0.0  ;;  %v2208_v44 = vsel %vm4809_vm12, %v4668_v36, %v2204_v46 }
 0x271   : > { %v4797_v4 = vpop.permute.xlu2 %1324  ;;  %v2239_v3 = vand.u32 2147483647, %v4648_v34  ;;  %v2241_v50 = vand.u32 2147483648, %v4648_v34  ;;  %vm5696_vm5 = vcmask 254976   ;;  %v4843_v29 = vsel %vm4758_vm8, %v2122_v11, %v2118_v16  ;;  %vm4856_vm7 = vmor %vm2235_vm15, %vm2236_vm2 }
 0x272   : > { %v4839_v59 = vpop.eup %3193  ;;  %5813 = vst [vmem:[#allocation16_spill] sm:$0xff] %v4843_v29  ;;  %v2227_v23 = vor.u32 1.1754944e-38, %v2226_v63  ;;  %v2234_v41 = vadd.f32 %v4724_v20, %v2233_v15  ;;  %v2284_v13 = vsel %vm1842_vm4, %v2246_v48, 0.0  ;;  %v2223_v36 = vsel %vm4826_vm13, %v4693_v21, %v2219_v40 }
 0x273   : > { %v4846_v42 = vpop.eup %3195  ;;  %vm2225_vm9 = vcmp.eq.f32.partialorder %v2224_v1, 8.507059e+37  ;;  %v2621_v11 = vsub.f32 1.0, %v2620_v38  ;;  %v1851_v16 = vrot.slane %v1850_v28, 4  ;;  %v4862_v47 = vsel %vm4783_vm3, %v2197_v33, %v2193_v43 }
 0x274   : > { %5816 = vst [vmem:[#allocation17_spill] sm:$0xff] %v4862_v47  ;;  %v4866_v26 = vsel %vm4813_vm11, %v2212_v45, %v2208_v44  ;;  %vm2624_vm8 = vweird.f32 %v4722_v24  ;;  %vm4869_vm14 = vcmp.eq.f32.partialorder %v2239_v3, 8.507059e+37  ;;  %v2242_v34 = vor.u32 1.1754944e-38, %v2241_v50  ;;  %v3234_v45 = vld [vmem:[%s3566_s30 + $0x18] sm:$0xff] }
 0x275   : > { %5817 = vst [vmem:[#allocation18_spill] sm:$0xff] %v4866_v26  ;;  %vm2625_vm6 = vweird.f32 %v4795_v53  ;;  %v2635_v39 = vmul.f32 %v4839_v59, %v4763_v30  ;;  %v2285_v33 = vrot.slane %v2284_v13, 4  ;;  %v4878_v43 = vsel %vm2225_vm9, %v2227_v23, %v2223_v36 }
 0x276   : > { %v4876_v25 = vpop.eup %3197  ;;  %5820 = vst [vmem:[#allocation19_spill] sm:$0xff] %v4878_v43  ;;  %v2238_v8 = vsel %vm4856_vm7, %v4724_v20, %v2234_v41  ;;  %v2650_v58 = vmul.f32 %v4846_v42, %v4769_v9  ;;  %v1401_v63 = vsel %vm5696_vm5, %v4772_v62, 0.0  ;;  %v2622_v15 = vmul.f32 %v4795_v53, %v2621_v11  ;;  %vm4915_vm12 = vmor %vm2624_vm8, %vm2625_vm6 }
 0x277   : > { %v2628_v48 = vand.u32 2147483647, %v4722_v24  ;;  %v2630_v40 = vand.u32 2147483648, %v4722_v24  ;;  %v1852_v1 = vadd.f32 %v1851_v16, %v1850_v28  ;;  %vm2639_vm3 = vweird.f32 %v4763_v30  ;;  %v3235_v28 = vld [vmem:[%s3566_s30 + $0x28] sm:$0xff] }
 0x278   : > { %v2643_v38 = vand.u32 2147483647, %v4763_v30  ;;  %v2645_v20 = vand.u32 2147483648, %v4763_v30  ;;  %v4898_v44 = vsel %vm4869_vm14, %v2242_v34, %v2238_v8  ;;  %v2636_v62 = vsub.f32 1.0, %v2635_v39 }
 0x279   : > { %v1315_v46 = vpop.permute.xlu2 %1314  ;;  %5821 = vst [vmem:[#allocation20_spill] sm:$0xff] %v4898_v44  ;;  %v2665_v3 = vmul.f32 %v4876_v25, %v4780_v32  ;;  %v1402_v50 = vrot.slane %v1401_v63, 4  ;;  %v2286_v23 = vadd.f32 %v2285_v33, %v2284_v13  ;;  %v1382_v41 = vmul.f32 %v3235_v28, %v4797_v4 }
 0x27a   : > { %v4894_v35 = vmul.f32 %v3234_v45, %v1315_v46  ;;  %v2651_v36 = vsub.f32 1.0, %v2650_v58  ;;  %v2623_v27 = vadd.f32 %v4795_v53, %v2622_v15  ;;  %vm4905_vm10 = vcmp.eq.f32.partialorder %v2628_v48, 8.507059e+37 }
 0x27b   : > { %v2658_v16 = vand.u32 2147483647, %v4769_v9  ;;  %v2660_v21 = vand.u32 2147483648, %v4769_v9  ;;  %v1853_v34 = vrot.slane %v1852_v1, 2  ;;  %v2631_v4 = vor.u32 1.1754944e-38, %v2630_v40 }
 0x27c   : > { %v2646_v39 = vor.u32 1.1754944e-38, %v2645_v20  ;;  %vm2654_vm11 = vweird.f32 %v4769_v9  ;;  %v1813_v33 = vrot.slane %v4894_v35, 2  ;;  %v2637_v46 = vmul.f32 %v4839_v59, %v2636_v62 }
 0x27d   : > { %v2666_v8 = vsub.f32 1.0, %v2665_v3  ;;  %vm2669_vm13 = vweird.f32 %v4780_v32  ;;  %v1403_v58 = vadd.f32 %v1402_v50, %v1401_v63  ;;  %v2287_v15 = vrot.slane %v2286_v23, 2  ;;  %v1300_v50 = vpop.permute.xlu1 %1299 }
 0x27e   : > { %v1815_v48 = vrot.slane %v1382_v41, 2  ;;  %vm4923_vm15 = vcmp.eq.f32.partialorder %v2643_v38, 8.507059e+37  ;;  %v2652_v45 = vmul.f32 %v4846_v42, %v2651_v36  ;;  %v2627_v40 = vsel %vm4915_vm12, %v4795_v53, %v2623_v27 }
 0x27f   : > { %vm2640_vm2 = vweird.f32 %v4839_v59  ;;  %vm4932_vm9 = vcmp.eq.f32.partialorder %v2658_v16, 8.507059e+37  ;;  %v2661_v62 = vor.u32 1.1754944e-38, %v2660_v21  ;;  %v1854_v63 = vadd.f32 %v1853_v34, %v1852_v1 }
 0x280   : > { %v1429_v38 = vsel %vm5696_vm5, %v1382_v41, 0.0  ;;  %v2250_v3 = vrot.slane %v1382_v41, 5  ;;  %vm2655_vm7 = vweird.f32 %v4846_v42  ;;  %v1864_v28 = vsel %vm1842_vm4, %v1813_v33, 0.0  ;;  %vm4947_vm8 = vmor %vm2639_vm3, %vm2640_vm2  ;;  %v3236_v33 = vld [vmem:[%s3566_s30] sm:$0xff] }
 0x281   : > { %v2248_v36 = vrot.slane %v4894_v35, 5  ;;  %v2638_v53 = vadd.f32 %v4839_v59, %v2637_v46  ;;  %v2667_v27 = vmul.f32 %v4876_v25, %v2666_v8  ;;  %v1404_v16 = vrot.slane %v1403_v58, 2  ;;  %vm4955_vm14 = vmor %vm2654_vm11, %vm2655_vm7 }
 0x282   : > { %v2288_v13 = vadd.f32 %v2287_v15, %v2286_v23  ;;  %v1878_v21 = vsel %vm1842_vm4, %v1815_v48, 0.0  ;;  %v2653_v41 = vadd.f32 %v4846_v42, %v2652_v45  ;;  %v1430_v34 = vrot.slane %v1429_v38, 4 }
 0x283   : > { %v1377_v44 = vmul.f32 %v3236_v33, %v1300_v50  ;;  %vm2670_vm6 = vweird.f32 %v4876_v25  ;;  %v2673_v23 = vand.u32 2147483647, %v4780_v32  ;;  %v1855_v30 = vrot.slane %v1854_v63, 1  ;;  %v1340_v46 = vpop.permute.xlu2 %1339 }
 0x284   : > { %v2312_v8 = vsel %vm1842_vm4, %v2250_v3, 0.0  ;;  %v1865_v15 = vrot.slane %v1864_v28, 4  ;;  %v2675_v48 = vand.u32 2147483648, %v4780_v32  ;;  %v1879_v45 = vrot.slane %v1878_v21, 4  ;;  %vm4977_vm3 = vmor %vm2669_vm13, %vm2670_vm6 }
 0x285   : > { %v2298_v43 = vsel %vm1842_vm4, %v2248_v36, 0.0  ;;  %v4966_v9 = vsel %vm4905_vm10, %v2631_v4, %v2627_v40  ;;  %v2668_v50 = vadd.f32 %v4876_v25, %v2667_v27  ;;  %v1405_v33 = vadd.f32 %v1404_v16, %v1403_v58 }
 0x286   : > { %5834 = vst [vmem:[#allocation21_spill] sm:$0xff] %v4966_v9  ;;  %v2289_v26 = vrot.slane %v2288_v13, 1  ;;  %v2642_v47 = vsel %vm4947_vm8, %v4839_v59, %v2638_v53  ;;  %v2657_v3 = vsel %vm4955_vm14, %v4846_v42, %v2653_v41  ;;  %v1431_v11 = vadd.f32 %v1430_v34, %v1429_v38  ;;  %v1320_v34 = vpop.permute.xlu1 %1319 }
 0x287   : > { %v2313_v4 = vrot.slane %v2312_v8, 4  ;;  %v1810_v40 = vrot.slane %v1377_v44, 2  ;;  %vm4981_vm10 = vcmp.eq.f32.partialorder %v2673_v23, 8.507059e+37  ;;  %v1856_v27 = vadd.f32 %v1855_v30, %v1854_v63 }
 0x288   : > { %v1866_v16 = vadd.f32 %v1865_v15, %v1864_v28  ;;  %v2299_v59 = vrot.slane %v2298_v43, 4  ;;  %v2676_v53 = vor.u32 1.1754944e-38, %v2675_v48  ;;  %v1880_v1 = vadd.f32 %v1879_v45, %v1878_v21  ;;  %v3238_v48 = vld [vmem:[%s3566_s30 + $0x20] sm:$0xff] }
 0x289   : > { %v4987_v32 = vsel %vm4923_vm15, %v2646_v39, %v2642_v47  ;;  %v4991_v42 = vsel %vm4932_vm9, %v2661_v62, %v2657_v3  ;;  %v2672_v38 = vsel %vm4977_vm3, %v4876_v25, %v2668_v50  ;;  %v1406_v41 = vrot.slane %v1405_v33, 1  ;;  %v3237_v25 = vld [vmem:[%s3566_s30 + $0x40] sm:$0xff] }
 0x28a   : > { %5839 = vst [vmem:[#allocation22_spill] sm:$0xff] %v4987_v32  ;;  %v2290_v63 = vadd.f32 %v2289_v26, %v2288_v13  ;;  %v1415_v28 = vsel %vm5696_vm5, %v4894_v35, 0.0  ;;  %v2245_v21 = vrot.slane %v1377_v44, 5  ;;  %v1432_v24 = vrot.slane %v1431_v11, 2  ;;  %v1310_v13 = vpop.permute.xlu0 %1309 }
 0x28b   : > { %5840 = vst [vmem:[#allocation23_spill] sm:$0xff] %v4991_v42  ;;  %v2314_v23 = vadd.f32 %v2313_v4, %v2312_v8  ;;  %v1394_v47 = vsel %vm5696_vm5, %v1377_v44, 0.0  ;;  %v1843_v39 = vsel %vm1842_vm4, %v1810_v40, 0.0  ;;  %v5001_v20 = vmul.f32 %v3955_v57, %v1856_v27  ;;  %v3239_v40 = vld [vmem:[%s3566_s30 + $0x10] sm:$0xff] }
 0x28c   : > { %v1867_v62 = vrot.slane %v1866_v16, 2  ;;  %v2300_v30 = vadd.f32 %v2299_v59, %v2298_v43  ;;  %v5004_v26 = vmul.f32 %v3237_v25, %v1340_v46  ;;  %v1881_v15 = vrot.slane %v1880_v1, 2 }
 0x28d   : > { %v1416_v35 = vrot.slane %v1415_v28, 4  ;;  %v1381_v45 = vmul.f32 %v3238_v48, %v1320_v34  ;;  %v5009_v8 = vsel %vm4981_vm10, %v2676_v53, %v2672_v38  ;;  %v5011_v44 = vadd.f32 %v1406_v41, %v1405_v33 }
 0x28e   : > { %5841 = vst [vmem:[#allocation24_spill] sm:$0xff] %v5004_v26  ;;  %v1395_v50 = vrot.slane %v1394_v47, 4  ;;  %v1844_v57 = vrot.slane %v1843_v39, 4  ;;  %v2277_v3 = vsel %vm1842_vm4, %v2245_v21, 0.0  ;;  %v5015_v43 = vmul.f32 %v4186_v37, %v2290_v63 }
 0x28f   : > { %5842 = vst [vmem:[#allocation25_spill] sm:$0xff] %v5009_v8  ;;  %v5017_v36 = vadd.f32 %v1432_v24, %v1431_v11  ;;  %v2315_v4 = vrot.slane %v2314_v23, 2  ;;  %v5020_v27 = vmul.f32 %v3239_v40, %v1310_v13  ;;  %v1868_v58 = vadd.f32 %v1867_v62, %v1866_v16 }
 0x290   : > { %5843 = vst [vmem:[#allocation26_spill] sm:$0xff] %v5011_v44  ;;  %v2301_v53 = vrot.slane %v2300_v30, 2  ;;  %v1818_v33 = vrot.slane %v5004_v26, 2  ;;  %v1882_v46 = vadd.f32 %v1881_v15, %v1880_v1  ;;  %v1417_v38 = vadd.f32 %v1416_v35, %v1415_v28 }
 0x291   : > { %5844 = vst [vmem:[#allocation27_spill] sm:$0xff] %v5017_v36  ;;  %v2278_v41 = vrot.slane %v2277_v3, 4  ;;  %v2249_v34 = vrot.slane %v1381_v45, 5  ;;  %v1396_v21 = vadd.f32 %v1395_v50, %v1394_v47  ;;  %v1845_v25 = vadd.f32 %v1844_v57, %v1843_v39 }
 0x292   : > { %v1814_v37 = vrot.slane %v1381_v45, 2  ;;  %v2253_v11 = vrot.slane %v5004_v26, 5  ;;  %v2316_v24 = vadd.f32 %v2315_v4, %v2314_v23  ;;  %v1422_v13 = vsel %vm5696_vm5, %v1381_v45, 0.0  ;;  %v1330_v45 = vpop.permute.xlu1 %1329 }
 0x293   : > { %v1812_v48 = vrot.slane %v5020_v27, 2  ;;  %v1869_v16 = vrot.slane %v1868_v58, 1  ;;  %v2302_v62 = vadd.f32 %v2301_v53, %v2300_v30  ;;  %v1899_v40 = vsel %vm1842_vm4, %v1818_v33, 0.0 }
 0x294   : > { %v2247_v1 = vrot.slane %v5020_v27, 5  ;;  %v1883_v28 = vrot.slane %v1882_v46, 1  ;;  %v1418_v15 = vrot.slane %v1417_v38, 2  ;;  %v2279_v47 = vadd.f32 %v2278_v41, %v2277_v3 }
 0x295   : > { %v2305_v39 = vsel %vm1842_vm4, %v2249_v34, 0.0  ;;  %v1397_v35 = vrot.slane %v1396_v21, 2  ;;  %v1846_v50 = vrot.slane %v1845_v25, 2  ;;  %v1871_v57 = vsel %vm1842_vm4, %v1814_v37, 0.0 }
 0x296   : > { %v2333_v23 = vsel %vm1842_vm4, %v2253_v11, 0.0  ;;  %v2317_v4 = vrot.slane %v2316_v24, 1  ;;  %v1423_v59 = vrot.slane %v1422_v13, 4  ;;  %v1900_v63 = vrot.slane %v1899_v40, 4 }
 0x297   : > { %v1857_v30 = vsel %vm1842_vm4, %v1812_v48, 0.0  ;;  %v1870_v53 = vadd.f32 %v1869_v16, %v1868_v58  ;;  %v2303_v33 = vrot.slane %v2302_v62, 1  ;;  %v2306_v26 = vrot.slane %v2305_v39, 4 }
 0x298   : > { %v2291_v44 = vsel %vm1842_vm4, %v2247_v1, 0.0  ;;  %v5035_v3 = vadd.f32 %v1418_v15, %v1417_v38  ;;  %v2280_v41 = vrot.slane %v2279_v47, 2  ;;  %v1872_v34 = vrot.slane %v1871_v57, 4 }
 0x299   : > { %v2334_v8 = vrot.slane %v2333_v23, 4  ;;  %v5038_v42 = vadd.f32 %v1397_v35, %v1396_v21  ;;  %v1847_v11 = vadd.f32 %v1846_v50, %v1845_v25  ;;  %v1858_v32 = vrot.slane %v1857_v30, 4 }
 0x29a   : > { %5845 = vst [vmem:[#allocation28_spill] sm:$0xff] %v5035_v3  ;;  %v5040_v9 = vadd.f32 %v1883_v28, %v1882_v46  ;;  %v1424_v48 = vadd.f32 %v1423_v59, %v1422_v13  ;;  %v1901_v58 = vadd.f32 %v1900_v63, %v1899_v40  ;;  %v2292_v16 = vrot.slane %v2291_v44, 4  ;;  %v3240_v59 = vld [vmem:[%s3566_s30 + $0x30] sm:$0xff] }
 0x29b   : > { %5846 = vst [vmem:[#allocation29_spill] sm:$0xff] %v5038_v42  ;;  %v5042_v29 = vadd.f32 %v2317_v4, %v2316_v24  ;;  %v5045_v38 = vmul.f32 %v4005_v31, %v1870_v53  ;;  %v2304_v1 = vadd.f32 %v2303_v33, %v2302_v62  ;;  %v2307_v15 = vadd.f32 %v2306_v26, %v2305_v39  ;;  %v3241_v31 = vld [vmem:[%s3566_s30 + $0x48] sm:$0xff] }
 0x29c   : > { %v2281_v21 = vadd.f32 %v2280_v41, %v2279_v47  ;;  %v1873_v35 = vadd.f32 %v1872_v34, %v1871_v57  ;;  %v2335_v25 = vadd.f32 %v2334_v8, %v2333_v23  ;;  %v1848_v46 = vrot.slane %v1847_v11, 1 }
 0x29d   : > { %v1859_v28 = vadd.f32 %v1858_v32, %v1857_v30  ;;  %v1383_v63 = vmul.f32 %v3240_v59, %v1330_v45  ;;  %v1425_v24 = vrot.slane %v1424_v48, 2  ;;  %v1902_v40 = vrot.slane %v1901_v58, 2 }
 0x29e   : > { %v2293_v4 = vadd.f32 %v2292_v16, %v2291_v44  ;;  %v5054_v26 = vmul.f32 %v4204_v52, %v2304_v1  ;;  %v2308_v47 = vrot.slane %v2307_v15, 2  ;;  %v1408_v8 = vsel %vm5696_vm5, %v5020_v27, 0.0 }
 0x29f   : > { %v2282_v39 = vrot.slane %v2281_v21, 1  ;;  %v1874_v32 = vrot.slane %v1873_v35, 2  ;;  %v2336_v57 = vrot.slane %v2335_v25, 2  ;;  %v1860_v45 = vrot.slane %v1859_v28, 2 }
 0x2a0   : > { %v1436_v44 = vsel %vm5696_vm5, %v1383_v63, 0.0  ;;  %v1816_v30 = vrot.slane %v1383_v63, 2  ;;  %v1903_v41 = vadd.f32 %v1902_v40, %v1901_v58  ;;  %v1409_v52 = vrot.slane %v1408_v8, 4 }
 0x2a1   : > { %v2294_v34 = vrot.slane %v2293_v4, 2  ;;  %v2251_v16 = vrot.slane %v1383_v63, 5  ;;  %v1849_v59 = vadd.f32 %v1848_v46, %v1847_v11  ;;  %v2309_v27 = vadd.f32 %v2308_v47, %v2307_v15  ;;  %v3242_v47 = vld [vmem:[%s3566_s30 + $0x68] sm:$0xff] }
 0x2a2   : > { %v1437_v50 = vrot.slane %v1436_v44, 4  ;;  %v2283_v42 = vadd.f32 %v2282_v39, %v2281_v21  ;;  %v1875_v3 = vadd.f32 %v1874_v32, %v1873_v35  ;;  %v1885_v58 = vsel %vm1842_vm4, %v1816_v30, 0.0 }
 0x2a3   : > { %v1345_v13 = vpop.permute.xlu1 %1344  ;;  %v1904_v1 = vrot.slane %v1903_v41, 1  ;;  %v1410_v11 = vadd.f32 %v1409_v52, %v1408_v8  ;;  %v2319_v15 = vsel %vm1842_vm4, %v2251_v16, 0.0  ;;  %v1886_v35 = vrot.slane %v1885_v58, 4 }
 0x2a4   : > { %v5051_v53 = vmul.f32 %v3241_v31, %v1345_v13  ;;  %v5063_v13 = vadd.f32 %v1425_v24, %v1424_v48  ;;  %v2337_v31 = vadd.f32 %v2336_v57, %v2335_v25  ;;  %v2295_v48 = vadd.f32 %v2294_v34, %v2293_v4 }
 0x2a5   : > { %v2310_v25 = vrot.slane %v2309_v27, 1  ;;  %v1438_v21 = vadd.f32 %v1437_v50, %v1436_v44  ;;  %v5076_v32 = vmul.f32 %v4009_v49, %v1849_v59  ;;  %v5079_v8 = vmul.f32 %v4256_v12, %v2283_v42 }
 0x2a6   : > { %5847 = vst [vmem:[#allocation30_spill] sm:$0xff] %v5051_v53  ;;  %v1819_v23 = vrot.slane %v5051_v53, 2  ;;  %v2254_v33 = vrot.slane %v5051_v53, 5  ;;  %v1861_v53 = vadd.f32 %v1860_v45, %v1859_v28  ;;  %v3243_v28 = vld [vmem:[%s3566_s30 + $0x50] sm:$0xff]  ;;  %v2320_v45 = vrot.slane %v2319_v15, 4 }
 0x2a7   : > { %5848 = vst [vmem:[#allocation31_spill] sm:$0xff] %v5063_v13  ;;  %v1876_v30 = vrot.slane %v1875_v3, 1  ;;  %v1411_v52 = vrot.slane %v1410_v11, 2  ;;  %v2296_v34 = vrot.slane %v2295_v48, 1  ;;  %v2311_v16 = vadd.f32 %v2310_v25, %v2309_v27 }
 0x2a8   : > { %v1906_v37 = vsel %vm1842_vm4, %v1819_v23, 0.0  ;;  %v2340_v62 = vsel %vm1842_vm4, %v2254_v33, 0.0  ;;  %v2338_v23 = vrot.slane %v2337_v31, 1  ;;  %v1862_v4 = vrot.slane %v1861_v53, 1 }
 0x2a9   : > { %v1907_v46 = vrot.slane %v1906_v37, 4  ;;  %v2341_v24 = vrot.slane %v2340_v62, 4  ;;  %v1905_v33 = vadd.f32 %v1904_v1, %v1903_v41  ;;  %v2321_v36 = vadd.f32 %v2320_v45, %v2319_v15 }
 0x2aa   : > { %v2339_v44 = vadd.f32 %v2338_v23, %v2337_v31  ;;  %v1863_v59 = vadd.f32 %v1862_v4, %v1861_v53  ;;  %v5085_v13 = vadd.f32 %v1876_v30, %v1875_v3  ;;  %vm5700_vm12 = vcmask 1041409  }
 0x2ab   : > { %v1365_v63 = vpop.permute.xlu2 %1364  ;;  %v1350_v40 = vpop.permute.xlu0 %1349  ;;  %v5088_v41 = vmul.f32 %v4263_v7, %v1905_v33  ;;  %v3244_v33 = vld [vmem:[%s3566_s30 + $0x58] sm:$0xff]  ;;  %vm5699_vm11 = vcmask 1042434   ;;  %vm5698_vm13 = vcmask 1043459   ;;  %vm5697_vm15 = vcmask 1044484  }
 0x2ac   : > { %v5070_v57 = vmul.f32 %v3242_v47, %v1365_v63  ;;  %v5073_v39 = vmul.f32 %v3243_v28, %v1350_v40  ;;  %v1908_v63 = vadd.f32 %v1907_v46, %v1906_v37  ;;  %v2342_v47 = vadd.f32 %v2341_v24, %v2340_v62 }
 0x2ad   : > { %v1439_v40 = vrot.slane %v1438_v21, 2  ;;  %v1887_v28 = vadd.f32 %v1886_v35, %v1885_v58  ;;  %v5090_v37 = vadd.f32 %v1411_v52, %v1410_v11  ;;  %v2297_v62 = vadd.f32 %v2296_v34, %v2295_v48 }
 0x2ae   : > { %v1823_v50 = vrot.slane %v5070_v57, 2  ;;  %v1820_v49 = vrot.slane %v5073_v39, 2  ;;  %v2258_v12 = vrot.slane %v5070_v57, 5  ;;  %v2255_v42 = vrot.slane %v5073_v39, 5 }
 0x2af   : > { %v1909_v1 = vrot.slane %v1908_v63, 2  ;;  %v2343_v27 = vrot.slane %v2342_v47, 2  ;;  %v5095_v53 = vmul.f32 %v4029_v54, %v2339_v44  ;;  %v5097_v15 = vadd.f32 %v1439_v40, %v1438_v21 }
 0x2b0   : > { %v1934_v31 = vsel %vm1842_vm4, %v1823_v50, 0.0  ;;  %v1913_v58 = vsel %vm1842_vm4, %v1820_v49, 0.0  ;;  %v1888_v3 = vrot.slane %v1887_v28, 2  ;;  %v2347_v25 = vsel %vm1842_vm4, %v2255_v42, 0.0 }
 0x2b1   : > { %v5101_v11 = vmul.f32 %v4101_v0, %v1863_v59  ;;  %v2322_v48 = vrot.slane %v2321_v36, 2  ;;  %v2368_v46 = vsel %vm1842_vm4, %v2258_v12, 0.0  ;;  %v5105_v24 = vmul.f32 %v4606_v60, %v2311_v16 }
 0x2b2   : > { %v2483_v23 = vmul.f32 %v4315_v18, %v2297_v62  ;;  %v1935_v54 = vrot.slane %v1934_v31, 4  ;;  %v1914_v35 = vrot.slane %v1913_v58, 4  ;;  %v5110_v21 = vmul.f32 %v4642_v51, %v5042_v29  ;;  %v3245_v62 = vld [vmem:[%s3566_s30 + $0x78] sm:$0xff] }
 0x2b3   : > { %v1355_v7 = vpop.permute.xlu1 %1354  ;;  %v1910_v4 = vadd.f32 %v1909_v1, %v1908_v63  ;;  %v2344_v45 = vadd.f32 %v2343_v27, %v2342_v47  ;;  %v2348_v30 = vrot.slane %v2347_v25, 4  ;;  %v5115_v52 = vadd.f32 %v1888_v3, %v1887_v28  ;;  %v3246_v1 = vld [vmem:[%s3566_s30 + $0x60] sm:$0xff] }
 0x2b4   : > { %v5113_v0 = vmul.f32 %v3244_v33, %v1355_v7  ;;  %v2369_v34 = vrot.slane %v2368_v46, 4  ;;  %v2323_v18 = vadd.f32 %v2322_v48, %v2321_v36  ;;  %v2800_v51 = vrot.slane %v2483_v23, 6 }
 0x2b5   : > { %v1936_v29 = vadd.f32 %v1935_v54, %v1934_v31  ;;  %v1915_v63 = vadd.f32 %v1914_v35, %v1913_v58  ;;  %v1911_v44 = vrot.slane %v1910_v4, 1  ;;  %v2345_v40 = vrot.slane %v2344_v45, 1 }
 0x2b6   : > { %v1821_v16 = vrot.slane %v5113_v0, 2  ;;  %v2256_v47 = vrot.slane %v5113_v0, 5  ;;  %v2349_v28 = vadd.f32 %v2348_v30, %v2347_v25  ;;  %v2370_v59 = vadd.f32 %v2369_v34, %v2368_v46 }
 0x2b7   : > { %v2324_v27 = vrot.slane %v2323_v18, 1  ;;  %v1937_v58 = vrot.slane %v1936_v29, 2  ;;  %v1916_v7 = vrot.slane %v1915_v63, 2  ;;  %vm5695_vm2 = vcmask 1045509  }
 0x2b8   : > { %v1920_v49 = vsel %vm1842_vm4, %v1821_v16, 0.0  ;;  %v2354_v42 = vsel %vm1842_vm4, %v2256_v47, 0.0  ;;  %v5849_v25 = vrot.slane %v5015_v43, 7  ;;  %v1912_v23 = vadd.f32 %v1911_v44, %v1910_v4 }
 0x2b9   : > { %v1921_v12 = vrot.slane %v1920_v49, 4  ;;  %v2355_v3 = vrot.slane %v2354_v42, 4  ;;  %v2350_v54 = vrot.slane %v2349_v28, 2  ;;  %v2346_v33 = vadd.f32 %v2345_v40, %v2344_v45 }
 0x2ba   : > { %v2799_v46 = vsel %vm5700_vm12, %v5849_v25, %v5079_v8  ;;  %v2371_v34 = vrot.slane %v2370_v59, 2  ;;  %v1938_v43 = vadd.f32 %v1937_v58, %v1936_v29  ;;  %v1917_v60 = vadd.f32 %v1916_v7, %v1915_v63  ;;  %v3248_v7 = vld [vmem:[%s3566_s30 + $0x70] sm:$0xff] }
 0x2bb   : > { %v1375_v50 = vpop.permute.xlu2 %1374  ;;  %v1360_v31 = vpop.permute.xlu0 %1359  ;;  %v1922_v48 = vadd.f32 %v1921_v12, %v1920_v49  ;;  %v2356_v35 = vadd.f32 %v2355_v3, %v2354_v42  ;;  %v2801_v30 = vsel %vm5699_vm11, %v2800_v51, %v2799_v46  ;;  %v2325_v12 = vadd.f32 %v2324_v27, %v2323_v18 }
 0x2bc   : > { %v5123_v36 = vmul.f32 %v3245_v62, %v1375_v50  ;;  %v2804_v62 = vrot.slane %v5105_v24, 4  ;;  %v5135_v8 = vmul.f32 %v3246_v1, %v1360_v31  ;;  %v5850_v4 = vrot.slane %v5054_v26, 5 }
 0x2bd   : > { %v1923_v47 = vrot.slane %v1922_v48, 2  ;;  %v2357_v49 = vrot.slane %v2356_v35, 2  ;;  %v5141_v45 = vmul.f32 %v4428_v61, %v1912_v23  ;;  %v2351_v44 = vadd.f32 %v2350_v54, %v2349_v28 }
 0x2be   : > { %v1825_v16 = vrot.slane %v5123_v36, 2  ;;  %v2260_v50 = vrot.slane %v5123_v36, 5  ;;  %v2803_v51 = vsel %vm5698_vm13, %v5850_v4, %v2801_v30  ;;  %v2806_v40 = vrot.slane %v5110_v21, 3 }
 0x2bf   : > { %v5146_v18 = vmul.f32 %v4754_v22, %v5040_v9  ;;  %v5149_v24 = vmul.f32 %v4286_v10, %v2346_v33  ;;  %v2372_v29 = vadd.f32 %v2371_v34, %v2370_v59  ;;  %v1924_v42 = vadd.f32 %v1923_v47, %v1922_v48 }
 0x2c0   : > { %v1948_v63 = vsel %vm1842_vm4, %v1825_v16, 0.0  ;;  %v2382_v26 = vsel %vm1842_vm4, %v2260_v50, 0.0  ;;  %v2358_v1 = vadd.f32 %v2357_v49, %v2356_v35  ;;  %v5154_v61 = vmul.f32 %v4658_v6, %v2325_v12  ;;  %v3247_v50 = vld [vmem:[%s3566_s30 + $0x38] sm:$0xff]  ;;  %s3387_s30 = smov 64  }
 0x2c1   : > { %v2805_v28 = vsel %vm5697_vm15, %v2804_v62, %v2803_v51  ;;  %v1939_v21 = vrot.slane %v1938_v43, 1  ;;  %v1918_v27 = vrot.slane %v1917_v60, 1  ;;  %v1822_v22 = vrot.slane %v5135_v8, 2 }
 0x2c2   : > { %v2257_v9 = vrot.slane %v5135_v8, 5  ;;  %v2352_v59 = vrot.slane %v2351_v44, 1  ;;  %v1949_v3 = vrot.slane %v1948_v63, 4  ;;  %v2383_v31 = vrot.slane %v2382_v26, 4 }
 0x2c3   : > { %v1335_v58 = vpop.permute.xlu0 %1334  ;;  %v2373_v48 = vrot.slane %v2372_v29, 1  ;;  %v1927_v6 = vsel %vm1842_vm4, %v1822_v22, 0.0  ;;  %v1925_v46 = vrot.slane %v1924_v42, 1  ;;  %v2359_v23 = vrot.slane %v2358_v1, 1 }
 0x2c4   : > { %v2361_v25 = vsel %vm1842_vm4, %v2257_v9, 0.0  ;;  %v1928_v54 = vrot.slane %v1927_v6, 4  ;;  %v5164_v30 = vsel %vm5695_vm2, %v2806_v40, %v2805_v28  ;;  %v5166_v33 = vadd.f32 %v1939_v21, %v1938_v43 }
 0x2c5   : > { %v1919_v34 = vadd.f32 %v1918_v27, %v1917_v60  ;;  %v2362_v16 = vrot.slane %v2361_v25, 4  ;;  %v5169_v47 = vmul.f32 %v3247_v50, %v1335_v58  ;;  %v2353_v49 = vadd.f32 %v2352_v59, %v2351_v44 }
 0x2c6   : > { %v1950_v12 = vadd.f32 %v1949_v3, %v1948_v63  ;;  %v2384_v62 = vadd.f32 %v2383_v31, %v2382_v26  ;;  %v1929_v4 = vadd.f32 %v1928_v54, %v1927_v6  ;;  %v5176_v40 = vadd.f32 %v2373_v48, %v2372_v29 }
 0x2c7   : > { %v2363_v51 = vadd.f32 %v2362_v16, %v2361_v25  ;;  %v1817_v22 = vrot.slane %v5169_v47, 2  ;;  %v2252_v9 = vrot.slane %v5169_v47, 5  ;;  %v1926_v43 = vadd.f32 %v1925_v46, %v1924_v42 }
 0x2c8   : > { %v2360_v60 = vadd.f32 %v2359_v23, %v2358_v1  ;;  %v1930_v28 = vrot.slane %v1929_v4, 2  ;;  %v5179_v21 = vmul.f32 %v4439_v17, %v1919_v34  ;;  %vm5694_vm9 = vcmask 1046534  }
 0x2c9   : > { %v2364_v44 = vrot.slane %v2363_v51, 2  ;;  %v1892_v63 = vsel %vm1842_vm4, %v1817_v22, 0.0  ;;  %v2326_v26 = vsel %vm1842_vm4, %v2252_v9, 0.0  ;;  %v5184_v27 = vmul.f32 %v4388_v5, %v2353_v49 }
 0x2ca   : > { %v1951_v59 = vrot.slane %v1950_v12, 2  ;;  %v1931_v3 = vadd.f32 %v1930_v28, %v1929_v4  ;;  %v1893_v31 = vrot.slane %v1892_v63, 4  ;;  %v2385_v29 = vrot.slane %v2384_v62, 2 }
 0x2cb   : > { %v1370_v35 = vpop.permute.xlu1 %1369  ;;  %v2365_v58 = vadd.f32 %v2364_v44, %v2363_v51  ;;  %v2327_v42 = vrot.slane %v2326_v26, 4  ;;  %v5188_v17 = vmul.f32 %v4471_v56, %v1926_v43  ;;  %v2764_v54 = vrot.slane %v5179_v21, 6 }
 0x2cc   : > { %v5174_v10 = vmul.f32 %v3248_v7, %v1370_v35  ;;  %v5191_v7 = vmul.f32 %v4478_v19, %v2360_v60  ;;  %v1894_v48 = vadd.f32 %v1893_v31, %v1892_v63  ;;  %v1932_v25 = vrot.slane %v1931_v3, 1 }
 0x2cd   : > { %v2366_v5 = vrot.slane %v2365_v58, 1  ;;  %v2328_v46 = vadd.f32 %v2327_v42, %v2326_v26  ;;  %v2814_v35 = vrot.slane %v5184_v27, 6  ;;  %v1952_v50 = vadd.f32 %v1951_v59, %v1950_v12 }
 0x2ce   : > { %v1824_v1 = vrot.slane %v5174_v10, 2  ;;  %v2259_v6 = vrot.slane %v5174_v10, 5  ;;  %v1895_v34 = vrot.slane %v1894_v48, 2  ;;  %v5197_v56 = vadd.f32 %v2385_v29, %v2384_v62 }
 0x2cf   : > { %v2329_v49 = vrot.slane %v2328_v46, 2  ;;  %v2766_v51 = vrot.slane %v5188_v17, 5  ;;  %v2816_v60 = vrot.slane %v5191_v7, 5  ;;  %v1933_v28 = vadd.f32 %v1932_v25, %v1931_v3 }
 0x2d0   : > { %v1941_v23 = vsel %vm1842_vm4, %v1824_v1, 0.0  ;;  %v2375_v19 = vsel %vm1842_vm4, %v2259_v6, 0.0  ;;  %v1896_v22 = vadd.f32 %v1895_v34, %v1894_v48  ;;  %v2367_v44 = vadd.f32 %v2366_v5, %v2365_v58 }
 0x2d1   : > { %v1942_v16 = vrot.slane %v1941_v23, 4  ;;  %v2376_v43 = vrot.slane %v2375_v19, 4  ;;  %v2330_v63 = vadd.f32 %v2329_v49, %v2328_v46  ;;  %v2808_v12 = vrot.slane %v5154_v61, 2  ;;  %v5854_v49 = vld [vmem:[#allocation16_spill] sm:$0xff] }
 0x2d2   : > { %vm5693_vm4 = vcmask 1047559   ;;  %v5851_v59 = vrot.slane %v5115_v52, 1  ;;  %v1897_v42 = vrot.slane %v1896_v22, 1  ;;  %v2079_v58 = vmul.f32 %v4738_v14, %v5085_v13 }
 0x2d3   : > { %v5200_v4 = vpop.permute.xlu1 %1518  ;;  %v1943_v9 = vadd.f32 %v1942_v16, %v1941_v23  ;;  %v2377_v31 = vadd.f32 %v2376_v43, %v2375_v19  ;;  %v2331_v62 = vrot.slane %v2330_v63, 1  ;;  %v2809_v3 = vsel %vm5694_vm9, %v2808_v12, %v5164_v30  ;;  %v5856_v12 = vld [vmem:[#allocation17_spill] sm:$0xff] }
 0x2d4   : > { %3199 = vrcp.f32 %v5200_v4  ;;  %v1891_v29 = vadd.f32 %v5851_v59, %v5115_v52  ;;  %v1898_v6 = vadd.f32 %v1897_v42, %v1896_v22  ;;  %v5852_v61 = vrot.slane %v5001_v20, 7 }
 0x2d5   : > { %v1944_v26 = vrot.slane %v1943_v9, 2  ;;  %v2378_v17 = vrot.slane %v2377_v31, 2  ;;  %v2332_v48 = vadd.f32 %v2331_v62, %v2330_v63  ;;  %v5853_v23 = vrot.slane %v5101_v11, 6  ;;  %v5857_v62 = vld [vmem:[#allocation18_spill] sm:$0xff] }
 0x2d6   : > { %v2109_v25 = vmul.f32 %v4756_v55, %v1891_v29  ;;  %v2749_v5 = vsel %vm5700_vm12, %v5852_v61, %v5076_v32  ;;  %v2754_v16 = vrot.slane %v2079_v58, 4  ;;  %v2124_v14 = vmul.f32 %v5854_v49, %v1898_v6 }
 0x2d7   : > { %v1945_v1 = vadd.f32 %v1944_v26, %v1943_v9  ;;  %v2379_v52 = vadd.f32 %v2378_v17, %v2377_v31  ;;  %v2751_v34 = vsel %vm5699_vm11, %v5853_v23, %v2749_v5  ;;  %v2558_v30 = vmul.f32 %v4680_v2, %v2332_v48 }
 0x2d8   : > { %v5855_v13 = vrot.slane %v5045_v38, 5  ;;  %v2756_v19 = vrot.slane %v5146_v18, 3  ;;  %v2758_v9 = vrot.slane %v2109_v25, 2  ;;  %v2760_v26 = vrot.slane %v2124_v14, 1  ;;  %v5858_v18 = vld [vmem:[#allocation19_spill] sm:$0xff]  ;;  %v5860_v25 = vld [vmem:[#allocation20_spill] sm:$0xff] }
 0x2d9   : > { %v1946_v46 = vrot.slane %v1945_v1, 1  ;;  %v2380_v32 = vrot.slane %v2379_v52, 1  ;;  %v2810_v43 = vrot.slane %v2558_v30, 1  ;;  %v1953_v2 = vrot.slane %v1952_v50, 1 }
 0x2da   : > { %v2753_v55 = vsel %vm5698_vm13, %v5855_v13, %v2751_v34  ;;  %v5227_v20 = vpop.eup %3199  ;;  %v2199_v38 = vmul.f32 %v5856_v12, %v1933_v28  ;;  %v2214_v59 = vmul.f32 %v5857_v62, %v5166_v33  ;;  %v5862_v34 = vld [vmem:[#allocation22_spill] sm:$0xff]  ;;  %v5863_v21 = vrot.slane %v5149_v24, 7  ;;  %v5865_v24 = vld [vmem:[#allocation25_spill] sm:$0xff] }
 0x2db   : > { %v2755_v22 = vsel %vm5697_vm15, %v2754_v16, %v2753_v55  ;;  %v1947_v11 = vadd.f32 %v1946_v46, %v1945_v1  ;;  %v2811_v42 = vsel %vm5693_vm4, %v2810_v43, %v2809_v3  ;;  %v1954_v58 = vadd.f32 %v1953_v2, %v1952_v50  ;;  %v5861_v46 = vld [vmem:[#allocation21_spill] sm:$0xff] }
 0x2dc   : > { %v2757_v63 = vsel %vm5695_vm2, %v2756_v19, %v2755_v22  ;;  %v5859_v1 = vrot.slane %v5141_v45, 7  ;;  %2826 = vrot.lane.b32.xlu0 %v2811_v42, %s3387_s30  ;;  %v2768_v28 = vrot.slane %v2199_v38, 4  ;;  %v2770_v6 = vrot.slane %v2214_v59, 3  ;;  %v5866_v22 = vld [vmem:[#allocation31_spill] sm:$0xff]  ;;  %v3249_v62 = vld [vmem:[%s3597_s27 + $0x8] sm:$0xff] }
 0x2dd   : > { %v2759_v31 = vsel %vm5694_vm9, %v2758_v9, %v2757_v63  ;;  %v2229_v29 = vmul.f32 %v5858_v18, %v1947_v11  ;;  %v2244_v61 = vmul.f32 %v5860_v25, %v1954_v58  ;;  %v2381_v5 = vadd.f32 %v2380_v32, %v2379_v52  ;;  %v5864_v52 = vld [vmem:[#allocation23_spill] sm:$0xff]  ;;  %v5869_v18 = vld [vmem:[#allocation28_spill] sm:$0xff] }
 0x2de   : > { %v2761_v17 = vsel %vm5693_vm4, %v2760_v26, %v2759_v31  ;;  %v2763_v48 = vsel %vm5700_vm12, %v5859_v1, %v5088_v41  ;;  %v2387_v45 = vrot.slane %v5197_v56, 1  ;;  %v2633_v23 = vmul.f32 %v5861_v46, %v2367_v44  ;;  %v3250_v46 = vld [vmem:[%s3597_s27] sm:$0xff]  ;;  %s2980_s27 = sshll.u32 %s3562_s5, 4 }
 0x2df   : > { %2776 = vrot.lane.b32.xlu2 %v2761_v17, %s3388_s18  ;;  %v2765_v33 = vsel %vm5699_vm11, %v2764_v54, %v2763_v48  ;;  %v2772_v3 = vrot.slane %v2229_v29, 2  ;;  %v2648_v16 = vmul.f32 %v5862_v34, %v5176_v40  ;;  %v2813_v54 = vsel %vm5700_vm12, %v5863_v21, %v5095_v53  ;;  %v5871_v17 = vld [vmem:[#allocation29_spill] sm:$0xff]  ;;  %s486_s13 = scalar_lea.vmem [#allocation9], %s2980_s27 }
 0x2e0   : > { %v2767_v50 = vsel %vm5698_vm13, %v2766_v51, %v2765_v33  ;;  %v2774_v49 = vrot.slane %v2244_v61, 1  ;;  %v2388_v51 = vadd.f32 %v2387_v45, %v5197_v56  ;;  %v2663_v14 = vmul.f32 %v5864_v52, %v2381_v5  ;;  %s2860_s22 = sshll.u32 %s486_s13, 4  ;;  %s2861_s22 = int_to_ptr.vmem [resolvable:$true] %s2860_s22 }
 0x2e1   : > { %v2769_v41 = vsel %vm5697_vm15, %v2768_v28, %v2767_v50  ;;  %v2815_v44 = vsel %vm5699_vm11, %v2814_v35, %v2813_v54  ;;  %v2818_v55 = vrot.slane %v2633_v23, 4  ;;  %v2820_v40 = vrot.slane %v2648_v16, 3 }
 0x2e2   : > { %v2771_v30 = vsel %vm5695_vm2, %v2770_v6, %v2769_v41  ;;  %v2678_v53 = vmul.f32 %v5865_v24, %v2388_v51  ;;  %v2817_v32 = vsel %vm5698_vm13, %v2816_v60, %v2815_v44  ;;  %v2822_v56 = vrot.slane %v2663_v14, 2  ;;  %v5867_v60 = vld [vmem:[#allocation27_spill] sm:$0xff] }
 0x2e3   : > { %v2773_v13 = vsel %vm5694_vm9, %v2772_v3, %v2771_v30  ;;  %v1427_v9 = vrot.slane %v5866_v22, 1  ;;  %v1413_v11 = vrot.slane %v5090_v37, 1  ;;  %v2819_v27 = vsel %vm5697_vm15, %v2818_v55, %v2817_v32 }
 0x2e4   : > { %v2775_v19 = vsel %vm5693_vm4, %v2774_v49, %v2773_v13  ;;  %v5273_v35 = vrot.slane %v5200_v4, 1  ;;  %v1441_v43 = vrot.slane %v5097_v15, 1  ;;  %v2821_v63 = vsel %vm5695_vm2, %v2820_v40, %v2819_v27  ;;  %2834 = vrot.lane.b32.xlu0 %v3249_v62, %s3389_s29 }
 0x2e5   : > { %2778 = vrot.lane.b32.xlu1 %v2775_v19, %s3388_s18  ;;  %v2824_v26 = vrot.slane %v2678_v53, 1  ;;  %v5278_v7 = vrot.slane %v5200_v4, 2  ;;  %v5868_v2 = vrot.slane %v5867_v60, 1  ;;  %v5287_v12 = vsel %vm5696_vm5, %v5169_v47, 0.0  ;;  %s3331_s18 = scalar_lea.hbm %s5676_s12, 32 }
 0x2e6   : > { %v2823_v38 = vsel %vm5694_vm9, %v2822_v56, %v2821_v63  ;;  %v1555_v59 = vmul.f32 %v5227_v20, %v5200_v4  ;;  %v5870_v29 = vrot.slane %v5869_v18, 1  ;;  %v5872_v58 = vrot.slane %v5871_v17, 1  ;;  %p3333_p2 = scmp.lt.s32.totalorder %s3331_s18, %s3327_s24 }
 0x2e7   : > { %v5283_v31 = vadd.f32 %v5868_v2, %v5867_v60  ;;  %v2825_v47 = vsel %vm5693_vm4, %v2824_v26, %v2823_v38  ;;  %v5305_v48 = vrot.slane %v5200_v4, 3  ;;  %v5308_v33 = vadd.f32 %v1427_v9, %v5866_v22 }
 0x2e8   : > { %v5296_v42 = vadd.f32 %v5870_v29, %v5869_v18  ;;  %v5301_v1 = vadd.f32 %v5872_v58, %v5871_v17  ;;  %v5311_v28 = vadd.f32 %v1413_v11, %v5090_v37  ;;  %2828 = vrot.lane.b32.xlu2 %v2825_v47, %s3387_s30  ;;  %v1556_v6 = vsub.f32 1.0, %v1555_v59  ;;  %v5888_v17 = vld [vmem:[#allocation24_spill] sm:$0xff]  ;;  %p3334_p10 = por %p3333_p2, %p3332_p9 }
 0x2e9   : > { %3201 = vrcp.f32 %v5273_v35  ;;  %v5316_v3 = vadd.f32 %v1441_v43, %v5097_v15  ;;  %v1444_v25 = vrot.slane %v5287_v12, 4  ;;  %v5320_v61 = vrot.slane %v5200_v4, 4 }
 0x2ea   : > { %3203 = vrcp.f32 %v5278_v7  ;;  %v5324_v50 = vrot.slane %v5200_v4, 5  ;;  %v1557_v37 = vmul.f32 %v5227_v20, %v1556_v6  ;;  %v1563_v5 = vand.u32 2147483647, %v5200_v4  ;;  %p3335_p12 = pnand %p3334_p10, %p3330_p11 }
 0x2eb   : > { %v1565_v45 = vand.u32 2147483648, %v5200_v4  ;;  %vm1560_vm7 = vweird.f32 %v5227_v20  ;;  %v1578_v15 = vand.u32 2147483647, %v5273_v35  ;;  %v1580_v41 = vand.u32 2147483648, %v5273_v35 }
 0x2ec   : > { %3205 = vrcp.f32 %v5305_v48  ;;  %v5335_v23 = vrot.slane %v5200_v4, 6  ;;  %v1558_v34 = vadd.f32 %v5227_v20, %v1557_v37  ;;  %v1593_v16 = vand.u32 2147483647, %v5278_v7 }
 0x2ed   : > { %2832 = vrot.lane.b32.xlu1 %v3250_v46, %s3389_s29  ;;  %v1595_v21 = vand.u32 2147483648, %v5278_v7  ;;  %v5341_v54 = vrot.slane %v5200_v4, 7  ;;  %vm1559_vm8 = vweird.f32 %v5200_v4  ;;  %vm1574_vm14 = vweird.f32 %v5273_v35 }
 0x2ee   : > { %3207 = vrcp.f32 %v5320_v61  ;;  %vm5348_vm6 = vmor %vm1559_vm8, %vm1560_vm7  ;;  %vm5352_vm3 = vcmp.eq.f32.partialorder %v1563_v5, 8.507059e+37  ;;  %v1566_v52 = vor.u32 1.1754944e-38, %v1565_v45  ;;  %vm1589_vm10 = vweird.f32 %v5278_v7 }
 0x2ef   : > { %v3202_v30 = vpop.eup %3201  ;;  %v1608_v4 = vand.u32 2147483647, %v5305_v48  ;;  %v1562_v13 = vsel %vm5348_vm6, %v5227_v20, %v1558_v34  ;;  %vm5362_vm7 = vcmp.eq.f32.partialorder %v1578_v15, 8.507059e+37  ;;  %v1581_v40 = vor.u32 1.1754944e-38, %v1580_v41  ;;  %v5885_v34 = vld [vmem:[#allocation26_spill] sm:$0xff] }
 0x2f0   : > { %v3204_v14 = vpop.eup %3203  ;;  %v1570_v44 = vmul.f32 %v3202_v30, %v5273_v35  ;;  %vm5367_vm8 = vcmp.eq.f32.partialorder %v1593_v16, 8.507059e+37  ;;  %v1596_v53 = vor.u32 1.1754944e-38, %v1595_v21  ;;  %vm1604_vm1 = vweird.f32 %v5305_v48 }
 0x2f1   : > { %v1585_v19 = vmul.f32 %v3204_v14, %v5278_v7  ;;  %v1610_v20 = vand.u32 2147483648, %v5305_v48  ;;  %v1623_v22 = vand.u32 2147483647, %v5320_v61  ;;  %3209 = vrcp.f32 %v5324_v50 }
 0x2f2   : > { %v3206_v32 = vpop.eup %3205  ;;  %v1571_v56 = vsub.f32 1.0, %v1570_v44  ;;  %v1567_v9 = vsel %vm5352_vm3, %v1566_v52, %v1562_v13  ;;  %vm5378_vm6 = vcmp.eq.f32.partialorder %v1608_v4, 8.507059e+37  ;;  %vm1619_vm0 = vweird.f32 %v5320_v61 }
 0x2f3   : > { %v1586_v11 = vsub.f32 1.0, %v1585_v19  ;;  %v1600_v27 = vmul.f32 %v3206_v32, %v5305_v48  ;;  %vm1575_vm4 = vweird.f32 %v3202_v30  ;;  %v1625_v60 = vand.u32 2147483648, %v5320_v61 }
 0x2f4   : > { %v3208_v63 = vpop.eup %3207  ;;  %v1572_v26 = vmul.f32 %v3202_v30, %v1571_v56  ;;  %3211 = vrcp.f32 %v5335_v23  ;;  %vm1590_vm9 = vweird.f32 %v3204_v14  ;;  %v1568_v59 = vmul.f32 %v1567_v9, %v5301_v1  ;;  %vm1576_vm2 = vmor %vm1574_vm14, %vm1575_vm4 }
 0x2f5   : > { %v1587_v2 = vmul.f32 %v3204_v14, %v1586_v11  ;;  %v1601_v38 = vsub.f32 1.0, %v1600_v27  ;;  %v1615_v62 = vmul.f32 %v3208_v63, %v5320_v61  ;;  %v1611_v29 = vor.u32 1.1754944e-38, %v1610_v20  ;;  %vm1591_vm15 = vmor %vm1589_vm10, %vm1590_vm9 }
 0x2f6   : > { %v1573_v18 = vadd.f32 %v3202_v30, %v1572_v26  ;;  %vm5387_vm3 = vcmp.eq.f32.partialorder %v1623_v22, 8.507059e+37  ;;  %vm1605_vm5 = vweird.f32 %v3206_v32  ;;  %vm1620_vm13 = vweird.f32 %v3208_v63 }
 0x2f7   : > { %v1588_v58 = vadd.f32 %v3204_v14, %v1587_v2  ;;  %v1602_v47 = vmul.f32 %v3206_v32, %v1601_v38  ;;  %v1616_v6 = vsub.f32 1.0, %v1615_v62  ;;  %v3210_v37 = vpop.eup %3209  ;;  %v1626_v1 = vor.u32 1.1754944e-38, %v1625_v60 }
 0x2f8   : > { %v1577_v5 = vsel %vm1576_vm2, %v3202_v30, %v1573_v18  ;;  %3213 = vrcp.f32 %v5341_v54  ;;  %vm1606_vm2 = vmor %vm1604_vm1, %vm1605_vm5  ;;  %v1630_v7 = vmul.f32 %v3210_v37, %v5324_v50  ;;  %v1638_v30 = vand.u32 2147483647, %v5324_v50 }
 0x2f9   : > { %v1582_v45 = vsel %vm5362_vm7, %v1581_v40, %v1577_v5  ;;  %v1592_v15 = vsel %vm1591_vm15, %v3204_v14, %v1588_v58  ;;  %v1603_v41 = vadd.f32 %v3206_v32, %v1602_v47  ;;  %v1617_v35 = vmul.f32 %v3208_v63, %v1616_v6  ;;  %vm1621_vm15 = vmor %vm1619_vm0, %vm1620_vm13  ;;  %v5890_v47 = vld [vmem:[#allocation30_spill] sm:$0xff] }
 0x2fa   : > { %v3212_v46 = vpop.eup %3211  ;;  %v1583_v16 = vmul.f32 %v1582_v45, %v5885_v34  ;;  %v1597_v21 = vsel %vm5367_vm8, %v1596_v53, %v1592_v15  ;;  %v1640_v52 = vand.u32 2147483648, %v5324_v50  ;;  %v1631_v13 = vsub.f32 1.0, %v1630_v7 }
 0x2fb   : > { %v1607_v49 = vsel %vm1606_vm2, %v3206_v32, %v1603_v41  ;;  %v1618_v51 = vadd.f32 %v3208_v63, %v1617_v35  ;;  %v1645_v4 = vmul.f32 %v3212_v46, %v5335_v23  ;;  %v1653_v48 = vand.u32 2147483647, %v5335_v23 }
 0x2fc   : > { %v1612_v14 = vsel %vm5378_vm6, %v1611_v29, %v1607_v49  ;;  %v1655_v44 = vand.u32 2147483648, %v5335_v23  ;;  %v1598_v55 = vmul.f32 %v1597_v21, %v5311_v28  ;;  %vm1635_vm1 = vweird.f32 %v3210_v37 }
 0x2fd   : > { %v1622_v40 = vsel %vm1621_vm15, %v3208_v63, %v1618_v51  ;;  %v1646_v19 = vsub.f32 1.0, %v1645_v4  ;;  %v1613_v53 = vmul.f32 %v1612_v14, %v5296_v42  ;;  %v1632_v56 = vmul.f32 %v3210_v37, %v1631_v13 }
 0x2fe   : > { %v5416_v24 = vpop.eup %3213  ;;  %v1627_v32 = vsel %vm5387_vm3, %v1626_v1, %v1622_v40  ;;  %v2695_v61 = vrot.slane %v1583_v16, 7  ;;  %vm1634_vm0 = vweird.f32 %v5324_v50  ;;  %vm1650_vm5 = vweird.f32 %v3212_v46 }
 0x2ff   : > { %v1628_v20 = vmul.f32 %v1627_v32, %v5308_v33  ;;  %v1647_v22 = vmul.f32 %v3212_v46, %v1646_v19  ;;  %v1633_v9 = vadd.f32 %v3210_v37, %v1632_v56  ;;  %vm1639_vm13 = vcmp.eq.f32.partialorder %v1638_v30, 8.507059e+37  ;;  %vm1636_vm4 = vmor %vm1634_vm0, %vm1635_vm1 }
 0x300   : > { %vm1649_vm9 = vweird.f32 %v5335_v23  ;;  %v2697_v28 = vsel %vm5700_vm12, %v2695_v61, %v1568_v59  ;;  %v1641_v42 = vor.u32 1.1754944e-38, %v1640_v52  ;;  %vm1654_vm14 = vcmp.eq.f32.partialorder %v1653_v48, 8.507059e+37 }
 0x301   : > { %v1648_v11 = vadd.f32 %v3212_v46, %v1647_v22  ;;  %v2698_v27 = vrot.slane %v1598_v55, 6  ;;  %v1637_v43 = vsel %vm1636_vm4, %v3210_v37, %v1633_v9  ;;  %vm1651_vm10 = vmor %vm1649_vm9, %vm1650_vm5  ;;  %v1656_v63 = vor.u32 1.1754944e-38, %v1655_v44 }
 0x302   : > { %v1660_v33 = vmul.f32 %v5416_v24, %v5341_v54  ;;  %v2701_v50 = vrot.slane %v1613_v53, 5  ;;  %v1642_v26 = vsel %vm1639_vm13, %v1641_v42, %v1637_v43  ;;  %v2704_v23 = vrot.slane %v1628_v20, 4 }
 0x303   : > { %v1652_v60 = vsel %vm1651_vm10, %v3212_v46, %v1648_v11  ;;  %v2700_v2 = vsel %vm5699_vm11, %v2698_v27, %v2697_v28  ;;  %v1643_v38 = vmul.f32 %v1642_v26, %v5283_v31  ;;  %vm5886_vm7 = vcmask 1043459  }
 0x304   : > { %v1657_v62 = vsel %vm1654_vm14, %v1656_v63, %v1652_v60  ;;  %v2703_v59 = vsel %vm5886_vm7, %v2701_v50, %v2700_v2  ;;  %vm5887_vm8 = vcmask 1044484   ;;  %vm5889_vm6 = vcmask 254976   ;;  %v5461_v2 = vpop.permute.xlu0 %1522 }
 0x305   : > { %v1658_v18 = vmul.f32 %v1657_v62, %v5316_v3  ;;  %v2706_v29 = vsel %vm5887_vm8, %v2704_v23, %v2703_v59  ;;  %v1450_v58 = vsel %vm5889_vm6, %v5888_v17, 0.0  ;;  %vm5891_vm3 = vmmov %vm5889_vm6  ;;  %v2707_v37 = vrot.slane %v1643_v38, 3 }
 0x306   : > { %v1457_v6 = vsel %vm5891_vm3, %v5890_v47, 0.0  ;;  %vm5892_vm2 = vmmov %vm5891_vm3  ;;  %v1445_v31 = vadd.f32 %v1444_v25, %v5287_v12  ;;  %v1661_v1 = vsub.f32 1.0, %v1660_v33  ;;  %vm5894_vm1 = vcmask 1045509  }
 0x307   : > { %v1485_v5 = vsel %vm5892_vm2, %v5070_v57, 0.0  ;;  %v2710_v45 = vrot.slane %v1658_v18, 2  ;;  %vm5893_vm15 = vmmov %vm5892_vm2  ;;  %v2709_v15 = vsel %vm5894_vm1, %v2707_v37, %v2706_v29  ;;  %vm5897_vm13 = vcmask 1046534  }
 0x308   : > { %v1464_v3 = vsel %vm5893_vm15, %v5073_v39, 0.0  ;;  %vm5895_vm0 = vmmov %vm5892_vm2  ;;  %v1451_v57 = vrot.slane %v1450_v58, 4  ;;  %v1458_v34 = vrot.slane %v1457_v6, 4  ;;  %v1486_v16 = vrot.slane %v1485_v5, 4 }
 0x309   : > { %v1471_v41 = vsel %vm5895_vm0, %v5113_v0, 0.0  ;;  %vm5896_vm5 = vmmov %vm5895_vm0  ;;  %v2712_v46 = vsel %vm5897_vm13, %v2710_v45, %v2709_v15  ;;  %v1465_v25 = vrot.slane %v1464_v3, 4  ;;  %v1446_v21 = vrot.slane %v1445_v31, 2 }
 0x30a   : > { %v1478_v35 = vsel %vm5896_vm5, %v5135_v8, 0.0  ;;  %vm5898_vm9 = vmmov %vm5895_vm0  ;;  %v1662_v39 = vmul.f32 %v5416_v24, %v1661_v1  ;;  %v1472_v7 = vrot.slane %v1471_v41, 4  ;;  %v1452_v51 = vadd.f32 %v1451_v57, %v1450_v58 }
 0x30b   : > { %v1492_v12 = vsel %vm5898_vm9, %v5174_v10, 0.0  ;;  %v1479_v30 = vrot.slane %v1478_v35, 4  ;;  %v1459_v0 = vadd.f32 %v1458_v34, %v1457_v6  ;;  %v1487_v52 = vadd.f32 %v1486_v16, %v1485_v5  ;;  %vm5899_vm7 = vmmov %vm5895_vm0 }
 0x30c   : > { %v1493_v49 = vrot.slane %v1492_v12, 4  ;;  %v1466_v4 = vadd.f32 %v1465_v25, %v1464_v3  ;;  %v1447_v8 = vadd.f32 %v1446_v21, %v1445_v31  ;;  %v1663_v14 = vadd.f32 %v5416_v24, %v1662_v39 }
 0x30d   : > { %vm1665_vm4 = vweird.f32 %v5416_v24  ;;  %v1473_v13 = vadd.f32 %v1472_v7, %v1471_v41  ;;  %v1480_v48 = vadd.f32 %v1479_v30, %v1478_v35  ;;  %v1670_v10 = vand.u32 2147483648, %v5341_v54 }
 0x30e   : > { %v1494_v44 = vadd.f32 %v1493_v49, %v1492_v12  ;;  %vm1664_vm14 = vweird.f32 %v5341_v54  ;;  %v1668_v55 = vand.u32 2147483647, %v5341_v54  ;;  %v1453_v40 = vrot.slane %v1452_v51, 2 }
 0x30f   : > { %v1460_v19 = vrot.slane %v1459_v0, 2  ;;  %vm1666_vm10 = vmor %vm1664_vm14, %vm1665_vm4  ;;  %v1488_v53 = vrot.slane %v1487_v52, 2  ;;  %v1467_v32 = vrot.slane %v1466_v4, 2  ;;  %v1448_v56 = vrot.slane %v1447_v8, 1 }
 0x310   : > { %v1667_v61 = vsel %vm1666_vm10, %v5416_v24, %v1663_v14  ;;  %v1474_v20 = vrot.slane %v1473_v13, 2  ;;  %v1481_v22 = vrot.slane %v1480_v48, 2  ;;  %v1671_v9 = vor.u32 1.1754944e-38, %v1670_v10 }
 0x311   : > { %v1499_v28 = vsel %vm5899_vm7, %v5123_v36, 0.0  ;;  %v1495_v42 = vrot.slane %v1494_v44, 2  ;;  %vm1669_vm8 = vcmp.eq.f32.partialorder %v1668_v55, 8.507059e+37  ;;  %v1454_v11 = vadd.f32 %v1453_v40, %v1452_v51 }
 0x312   : > { %v1461_v27 = vadd.f32 %v1460_v19, %v1459_v0  ;;  %v1672_v43 = vsel %vm1669_vm8, %v1671_v9, %v1667_v61  ;;  %v1489_v54 = vadd.f32 %v1488_v53, %v1487_v52  ;;  %v1468_v63 = vadd.f32 %v1467_v32, %v1466_v4 }
 0x313   : > { %v1449_v33 = vadd.f32 %v1448_v56, %v1447_v8  ;;  %v1475_v50 = vadd.f32 %v1474_v20, %v1473_v13  ;;  %v1500_v26 = vrot.slane %v1499_v28, 4  ;;  %v1482_v60 = vadd.f32 %v1481_v22, %v1480_v48 }
 0x314   : > { %v1496_v24 = vadd.f32 %v1495_v42, %v1494_v44  ;;  %v1455_v38 = vrot.slane %v1454_v11, 1  ;;  %v1462_v62 = vrot.slane %v1461_v27, 1  ;;  %v1490_v59 = vrot.slane %v1489_v54, 1 }
 0x315   : > { %v1673_v23 = vmul.f32 %v1672_v43, %v1449_v33  ;;  %v1469_v18 = vrot.slane %v1468_v63, 1  ;;  %3215 = vrcp.f32 %v5461_v2  ;;  %v1476_v29 = vrot.slane %v1475_v50, 1 }
 0x316   : > { %v5464_v17 = vadd.f32 %v1500_v26, %v1499_v28  ;;  %v1483_v58 = vrot.slane %v1482_v60, 1  ;;  %v1497_v47 = vrot.slane %v1496_v24, 1  ;;  %vm5900_vm6 = vcmask 1047559  }
 0x317   : > { %v2713_v36 = vrot.slane %v1673_v23, 1  ;;  %v5470_v37 = vrot.slane %v5461_v2, 1  ;;  %v5473_v5 = vrot.slane %v5461_v2, 2  ;;  %v5475_v31 = vadd.f32 %v1455_v38, %v1454_v11 }
 0x318   : > { %v5478_v1 = vrot.slane %v5461_v2, 3  ;;  %v5480_v45 = vadd.f32 %v1462_v62, %v1461_v27  ;;  %v5482_v3 = vadd.f32 %v1490_v59, %v1489_v54  ;;  %v5484_v15 = vadd.f32 %v1469_v18, %v1468_v63 }
 0x319   : > { %v5467_v6 = vsel %vm5900_vm6, %v2713_v36, %v2712_v46  ;;  %3217 = vrcp.f32 %v5470_v37  ;;  %v5487_v41 = vadd.f32 %v1476_v29, %v1475_v50  ;;  %v1502_v35 = vrot.slane %v5464_v17, 2 }
 0x31a   : > { %v5491_v46 = vrot.slane %v5461_v2, 4  ;;  %3219 = vrcp.f32 %v5473_v5  ;;  %v5496_v34 = vadd.f32 %v1483_v58, %v1482_v60  ;;  %v5498_v16 = vadd.f32 %v1497_v47, %v1496_v24 }
 0x31b   : > { %v5494_v57 = vpop.eup %3215  ;;  %v5501_v12 = vrot.slane %v5461_v2, 5  ;;  %v1685_v25 = vand.u32 2147483648, %v5461_v2  ;;  %v5505_v21 = vrot.slane %v5461_v2, 6  ;;  %v1698_v39 = vand.u32 2147483647, %v5470_v37 }
 0x31c   : > { %v1700_v7 = vand.u32 2147483648, %v5470_v37  ;;  %3221 = vrcp.f32 %v5478_v1  ;;  %v5511_v30 = vrot.slane %v5461_v2, 7  ;;  %vm1679_vm3 = vweird.f32 %v5461_v2 }
 0x31d   : > { %v1713_v49 = vand.u32 2147483647, %v5473_v5  ;;  %v1715_v51 = vand.u32 2147483648, %v5473_v5  ;;  %v1675_v0 = vmul.f32 %v5494_v57, %v5461_v2  ;;  %v1683_v52 = vand.u32 2147483647, %v5461_v2 }
 0x31e   : > { %v1730_v4 = vand.u32 2147483648, %v5478_v1  ;;  %3223 = vrcp.f32 %v5491_v46  ;;  %v5521_v14 = vor.u32 1.1754944e-38, %v1685_v25  ;;  %vm1694_vm2 = vweird.f32 %v5470_v37 }
 0x31f   : > { %v3218_v8 = vpop.eup %3217  ;;  %vm1709_vm15 = vweird.f32 %v5473_v5  ;;  %v1728_v13 = vand.u32 2147483647, %v5478_v1  ;;  %v1676_v10 = vsub.f32 1.0, %v1675_v0  ;;  %vm1680_vm1 = vweird.f32 %v5494_v57 }
 0x320   : > { %v3220_v48 = vpop.eup %3219  ;;  %v1690_v44 = vmul.f32 %v3218_v8, %v5470_v37  ;;  %vm5528_vm0 = vcmp.eq.f32.partialorder %v1698_v39, 8.507059e+37  ;;  %v1701_v40 = vor.u32 1.1754944e-38, %v1700_v7  ;;  %vm5533_vm5 = vcmp.eq.f32.partialorder %v1713_v49, 8.507059e+37  ;;  %vm5563_vm6 = vmor %vm1679_vm3, %vm1680_vm1 }
 0x321   : > { %v1705_v19 = vmul.f32 %v3220_v48, %v5473_v5  ;;  %v1716_v32 = vor.u32 1.1754944e-38, %v1715_v51  ;;  %vm1724_vm13 = vweird.f32 %v5478_v1  ;;  %v1743_v56 = vand.u32 2147483647, %v5491_v46 }
 0x322   : > { %3225 = vrcp.f32 %v5501_v12  ;;  %v3222_v61 = vpop.eup %3221  ;;  %v1677_v20 = vmul.f32 %v5494_v57, %v1676_v10  ;;  %vm5541_vm9 = vcmp.eq.f32.partialorder %v1683_v52, 8.507059e+37  ;;  %v1691_v9 = vsub.f32 1.0, %v1690_v44 }
 0x323   : > { %v1731_v28 = vor.u32 1.1754944e-38, %v1730_v4  ;;  %v1745_v42 = vand.u32 2147483648, %v5491_v46  ;;  %vm1695_vm4 = vweird.f32 %v3218_v8  ;;  %v1706_v11 = vsub.f32 1.0, %v1705_v19 }
 0x324   : > { %v1720_v27 = vmul.f32 %v3222_v61, %v5478_v1  ;;  %vm5547_vm14 = vcmp.eq.f32.partialorder %v1728_v13, 8.507059e+37  ;;  %v3224_v54 = vpop.eup %3223  ;;  %v1678_v63 = vadd.f32 %v5494_v57, %v1677_v20  ;;  %v1692_v33 = vmul.f32 %v3218_v8, %v1691_v9  ;;  %vm1696_vm12 = vmor %vm1694_vm2, %vm1695_vm4 }
 0x325   : > { %vm1710_vm7 = vweird.f32 %v3220_v48  ;;  %3227 = vrcp.f32 %v5505_v21  ;;  %v1707_v50 = vmul.f32 %v3220_v48, %v1706_v11  ;;  %v1735_v60 = vmul.f32 %v3224_v54, %v5491_v46 }
 0x326   : > { %v1721_v26 = vsub.f32 1.0, %v1720_v27  ;;  %vm5555_vm8 = vcmp.eq.f32.partialorder %v1743_v56, 8.507059e+37  ;;  %v1693_v38 = vadd.f32 %v3218_v8, %v1692_v33  ;;  %v1746_v62 = vor.u32 1.1754944e-38, %v1745_v42  ;;  %vm1711_vm3 = vmor %vm1709_vm15, %vm1710_vm7 }
 0x327   : > { %vm1754_vm11 = vweird.f32 %v5501_v12  ;;  %v1760_v59 = vand.u32 2147483648, %v5501_v12  ;;  %v1708_v36 = vadd.f32 %v3220_v48, %v1707_v50  ;;  %vm1725_vm10 = vweird.f32 %v3222_v61 }
 0x328   : > { %v3226_v18 = vpop.eup %3225  ;;  %v1722_v29 = vmul.f32 %v3222_v61, %v1721_v26  ;;  %v1736_v58 = vsub.f32 1.0, %v1735_v60  ;;  %v1682_v2 = vsel %vm5563_vm6, %v5494_v57, %v1678_v63  ;;  %v1697_v47 = vsel %vm1696_vm12, %v3218_v8, %v1693_v38  ;;  %vm1726_vm12 = vmor %vm1724_vm13, %vm1725_vm10 }
 0x329   : > { %vm1740_vm1 = vweird.f32 %v3224_v54  ;;  %v1750_v25 = vmul.f32 %v3226_v18, %v5501_v12  ;;  %v1702_v37 = vsel %vm5528_vm0, %v1701_v40, %v1697_v47  ;;  %v1712_v39 = vsel %vm1711_vm3, %v3220_v48, %v1708_v36 }
 0x32a   : > { %v1723_v7 = vadd.f32 %v3222_v61, %v1722_v29  ;;  %v1737_v49 = vmul.f32 %v3224_v54, %v1736_v58  ;;  %v1717_v0 = vsel %vm5533_vm5, %v1716_v32, %v1712_v39  ;;  %v1758_v5 = vand.u32 2147483647, %v5501_v12 }
 0x32b   : > { %v3228_v51 = vpop.eup %3227  ;;  %v1751_v57 = vsub.f32 1.0, %v1750_v25  ;;  %v1761_v52 = vor.u32 1.1754944e-38, %v1760_v59  ;;  %v1687_v4 = vsel %vm5541_vm9, %v5521_v14, %v1682_v2  ;;  %v1703_v10 = vmul.f32 %v1702_v37, %v5480_v45 }
 0x32c   : > { %v1727_v8 = vsel %vm1726_vm12, %v3222_v61, %v1723_v7  ;;  %v1738_v13 = vadd.f32 %v3224_v54, %v1737_v49  ;;  %v1765_v48 = vmul.f32 %v3228_v51, %v5505_v21  ;;  %vm5913_vm2 = vweird.f32 %v5491_v46 }
 0x32d   : > { %v1732_v44 = vsel %vm5547_vm14, %v1731_v28, %v1727_v8  ;;  %vm1741_vm15 = vmor %vm5913_vm2, %vm1740_vm1  ;;  %v1752_v1 = vmul.f32 %v3226_v18, %v1751_v57  ;;  %vm1755_vm0 = vweird.f32 %v3226_v18  ;;  %v1718_v55 = vmul.f32 %v1717_v0, %v5484_v15 }
 0x32e   : > { %v1733_v40 = vmul.f32 %v1732_v44, %v5487_v41  ;;  %v1742_v14 = vsel %vm1741_vm15, %v3224_v54, %v1738_v13  ;;  %v1766_v19 = vsub.f32 1.0, %v1765_v48  ;;  %v1775_v45 = vand.u32 2147483648, %v5505_v21  ;;  %vm1756_vm5 = vmor %vm1754_vm11, %vm1755_vm0 }
 0x32f   : > { %v1747_v53 = vsel %vm5555_vm8, %v1746_v62, %v1742_v14  ;;  %v1753_v32 = vadd.f32 %v3226_v18, %v1752_v1  ;;  %3229 = vrcp.f32 %v5511_v30  ;;  %vm1770_vm13 = vweird.f32 %v3228_v51 }
 0x330   : > { %v1748_v56 = vmul.f32 %v1747_v53, %v5496_v34  ;;  %v1767_v46 = vmul.f32 %v3228_v51, %v1766_v19  ;;  %v1773_v15 = vand.u32 2147483647, %v5505_v21  ;;  %v1688_v41 = vmul.f32 %v1687_v4, %v5475_v31 }
 0x331   : > { %v1757_v61 = vsel %vm1756_vm5, %v3226_v18, %v1753_v32  ;;  %vm1759_vm9 = vcmp.eq.f32.partialorder %v1758_v5, 8.507059e+37  ;;  %v2716_v20 = vrot.slane %v1703_v10, 7  ;;  %vm1769_vm4 = vweird.f32 %v5505_v21 }
 0x332   : > { %v1762_v22 = vsel %vm1759_vm9, %v1761_v52, %v1757_v61  ;;  %v1768_v9 = vadd.f32 %v3228_v51, %v1767_v46  ;;  %v2718_v28 = vrot.slane %v1718_v55, 6  ;;  %vm1771_vm14 = vmor %vm1769_vm4, %vm1770_vm13  ;;  %v1776_v34 = vor.u32 1.1754944e-38, %v1775_v45 }
 0x333   : > { %v1763_v42 = vmul.f32 %v1762_v22, %v5482_v3  ;;  %vm5914_vm10 = vcmask 1041409   ;;  %v2720_v11 = vrot.slane %v1733_v40, 5  ;;  %vm1774_vm11 = vcmp.eq.f32.partialorder %v1773_v15, 8.507059e+37 }
 0x334   : > { %v2717_v12 = vsel %vm5914_vm10, %v2716_v20, %v1688_v41  ;;  %v1772_v27 = vsel %vm1771_vm14, %v3228_v51, %v1768_v9  ;;  %vm5915_vm7 = vcmask 1042434   ;;  %v2722_v31 = vrot.slane %v1748_v56, 4 }
 0x335   : > { %v2719_v43 = vsel %vm5915_vm7, %v2718_v28, %v2717_v12  ;;  %v3230_v54 = vpop.eup %3229  ;;  %v1503_v63 = vadd.f32 %v1502_v35, %v5464_v17  ;;  %v1777_v33 = vsel %vm1774_vm11, %v1776_v34, %v1772_v27  ;;  %vm5916_vm8 = vcmask 1043459  }
 0x336   : > { %v2721_v21 = vsel %vm5916_vm8, %v2720_v11, %v2719_v43  ;;  %v2724_v50 = vrot.slane %v1763_v42, 3  ;;  %v1778_v3 = vmul.f32 %v1777_v33, %v5498_v16  ;;  %v1780_v26 = vmul.f32 %v3230_v54, %v5511_v30 }
 0x337   : > { %vm5917_vm6 = vcmask 1044484   ;;  %vm5918_vm3 = vcmask 1045509   ;;  %v1504_v62 = vrot.slane %v1503_v63, 1  ;;  %v1790_v59 = vand.u32 2147483648, %v5511_v30 }
 0x338   : > { %v2723_v60 = vsel %vm5917_vm6, %v2722_v31, %v2721_v21  ;;  %v1781_v23 = vsub.f32 1.0, %v1780_v26  ;;  %v2726_v38 = vrot.slane %v1778_v3, 2  ;;  %vm1785_vm1 = vweird.f32 %v3230_v54 }
 0x339   : > { %v2725_v24 = vsel %vm5918_vm3, %v2724_v50, %v2723_v60  ;;  %v1788_v17 = vand.u32 2147483647, %v5511_v30  ;;  %vm5919_vm12 = vcmask 1046534   ;;  %vm1784_vm2 = vweird.f32 %v5511_v30  ;;  %v2777_v39 = vpop.permute.xlu2 %2776 }
 0x33a   : > { %v1782_v18 = vmul.f32 %v3230_v54, %v1781_v23  ;;  %v2727_v35 = vsel %vm5919_vm12, %v2726_v38, %v2725_v24  ;;  %vm1786_vm15 = vmor %vm1784_vm2, %vm1785_vm1  ;;  %v1791_v36 = vor.u32 1.1754944e-38, %v1790_v59  ;;  %v1505_v29 = vadd.f32 %v1504_v62, %v1503_v63 }
 0x33b   : > { %vm1789_vm0 = vcmp.eq.f32.partialorder %v1788_v17, 8.507059e+37  ;;  %vm5920_vm5 = vcmask 1047559   ;;  %vm2842_vm13 = vcmask 785408   ;;  %vm5921_vm9 = vcmask 261120  }
 0x33c   : > { %v1783_v16 = vadd.f32 %v3230_v54, %v1782_v18  ;;  %vm5922_vm4 = vcmask 523264   ;;  %vm5923_vm14 = vmmov %vm5921_vm9 }
 0x33d   : > { %v2838_v52 = vsel %vm5923_vm14, %v5467_v6, %v2777_v39  ;;  %vm5924_vm10 = vmmov %vm5922_vm4 }
 0x33e   : > { %v1787_v58 = vsel %vm1786_vm15, %v3230_v54, %v1783_v16 }
 0x33f   : > { %v1792_v2 = vsel %vm1789_vm0, %v1791_v36, %v1787_v58 }
 0x340   : > { %v1793_v47 = vmul.f32 %v1792_v2, %v1505_v29 }
 0x342   : > { %v2728_v25 = vrot.slane %v1793_v47, 1  ;;  %v2829_v51 = vpop.permute.xlu2 %2828 }
 0x344   : > { %v2729_v37 = vsel %vm5920_vm5, %v2728_v25, %v2727_v35 }
 0x34e   : > { %v2827_v7 = vpop.permute.xlu0 %2826 }
 0x34f   : > { %v2840_v4 = vsel %vm5924_vm10, %v2838_v52, %v2827_v7 }
 0x356   : > { %v2835_v57 = vpop.permute.xlu0 %2834 }
 0x357   : > { %v2779_v49 = vpop.permute.xlu1 %2778 }
 0x358   : > { %v2839_v0 = vsel %vm5921_vm9, %v2729_v37, %v2779_v49 }
 0x359   : > { %v2841_v30 = vsel %vm5922_vm4, %v2839_v0, %v2829_v51 }
 0x35a   : > { %v2844_v5 = vsel %vm2842_vm13, %v2841_v30, %v2835_v57 }
 0x35b   : > { %2846 = vst [vmem:[%s486_s13 + $0x8] sm:$0xff] %v2844_v5 }
 0x35f   : > { %v2833_v8 = vpop.permute.xlu1 %2832 }
 0x360   : > { %v2843_v13 = vsel %vm2842_vm13, %v2840_v4, %v2833_v8 }
 0x361   : > { %2845 = vst [vmem:[%s486_s13] sm:$0xff] %v2843_v13 }
 0x362   : > { %3338 = shalt.err (!%p3335_p12)
}
 0x363   : > { %s3390_s5 = smov 128   ;;  %s3391_s23 = smov 8  }
 0x364   : > { %3068 = dma.vmem_to_hbm [thread:$0]  (%p3532_p3), %s2861_s22, 256, %s2863_s10, %s2848_s16, %s3390_s5, %s3390_s5, %s3391_s23  }
 0x365 PF: > { %s2877_s17 = sand.u32 1, %s3369_s25   ;;  %p5926_p13 = scmp.ge.s32.totalorder %s3381_s28, 2 }
 0x366   : > { %s2878_s15 = scalar_lea.sflag [#allocation6], %s2877_s17 }
 0x367   : > { %p3079_p0 = pnand %p5926_p13, %p3498_p6 }
 0x369   : > { %p3080_p5 = pneg %p3079_p0 }
 0x36b   : > { %3364 = dma.done.wait (%p3080_p5), %s2878_s15, 256  }
 0x36c   : > { %3366 = vsyncadd (%p3080_p5), %s2878_s15, 4294967040  ;;  %s5927_s13 = sld [smem:[#allocation13_spill]]  ;;  %p30_p7 = scmp.ge.s32.totalorder %s3516_s19, 4  }
 0x36d   : > { %s5928_s27 = sld [smem:[#allocation15_spill]]  ;;  %s5929_s25 = smov %s3373_s26 }
 0x36e   : > { %s5931_s28 = smov %s3516_s19  ;;  %32 = sbr.rel (!%p30_p7) target bundleno = 10 (0xa), region = 123 }
 0x372   : > { %s5930_s26 = smov %s5927_s13 }
 0x373   :  { %2884 = vsyncpa [#allocation5], 1 }
 0x374   :  { %2886 = vsyncpa [#allocation5 + $0x1], 1 }
 0x375   :  { %2887 = vsyncpa [#allocation8], 1 }
 0x376   :  { %2888 = vsyncpa [#allocation6], 1 }
 0x377   :  { %2890 = vsyncpa [#allocation6 + $0x1], 1 }

</bundles_post_ra>
